<compile_context>
chip_gen: v7x
topology: tpu7x:2x2x1
jax: 0.10.0
libtpu: 0.0.40
codegen_flags: <defaults>
</compile_context>

<pallas_src>
import functools

import jax
import jax.numpy as jnp
import numpy as np
from jax.experimental import pallas as pl
from jax.experimental.pallas import tpu as pltpu

EPS = 1e-5
K = 5            # conv kernel size
C1 = 6           # conv1 output channels
C2 = 16          # conv2 output channels
FC1, FC2 = 120, 84


def _vmem():
    return pl.BlockSpec(memory_space=pltpu.MemorySpace.VMEM)


def _hbm():
    return pl.BlockSpec(memory_space=pl.ANY)


# ------------------------------ fused kernel --------------------------------

def _lenet5_kernel(B,
                   x_ref, t1_ref, rs1_ref, cs1_ref, r1_ref, r1t_ref, g1_ref, be1_ref,
                   t2_hbm, rs2_ref, r2_ref, r2t_ref, g2_ref, be2_ref,
                   cs2_hbm, fw1_hbm,
                   fb1_ref, fw2_ref, fb2_ref, fw3_ref, fb3_ref,
                   o_ref,
                   t2_ref, cs2_ref, fw1_ref, dma_sem):
    f32 = jnp.float32
    bf16 = jnp.bfloat16

    # ---- start prefetch of the layer-2 / FC weights (HBM -> VMEM) so their
    # DMA overlaps with the layer-1 compute below.
    cp_t2 = pltpu.make_async_copy(t2_hbm, t2_ref, dma_sem.at[0])
    cp_cs2 = pltpu.make_async_copy(cs2_hbm, cs2_ref, dma_sem.at[1])
    cp_fw1 = pltpu.make_async_copy(fw1_hbm, fw1_ref, dma_sem.at[2])
    cp_t2.start()
    cp_cs2.start()
    cp_fw1.start()

    # Static shapes (derived from the refs; B is a closure constant).
    _, BHo1, _W = x_ref.shape
    Ho1 = BHo1 // B
    Wo1 = t1_ref.shape[2] // C1
    Hp1, Wp1 = Ho1 // 2, Wo1 // 2
    Ho2 = Hp1 - K + 1
    Wo2 = t2_ref.shape[2] // C2
    Hp2, Wp2 = Ho2 // 2, Wo2 // 2

    def dotf(a, b):
        return jnp.dot(a, b, preferred_element_type=f32)

    def bn_relu(y, r_ref, rt_ref, g_ref, be_ref, n_count):
        # Training-mode BatchNorm2d (per-channel batch stats over (N,H,W),
        # biased variance) folded into one FMA, then ReLU.  Sigma(y) and
        # Sigma(y^2) are reduced in one pass; mean is folded into the shift.
        s = jnp.concatenate(
            [jnp.sum(y, axis=0, keepdims=True),
             jnp.sum(y * y, axis=0, keepdims=True)], axis=0)          # (2, C*W)
        st = dotf(s, r_ref[...]) * (1.0 / n_count)                     # (2, C)
        mean = st[0:1, :]
        var = st[1:2, :] - mean * mean                                 # biased
        scale = g_ref[...] * jax.lax.rsqrt(var + EPS)                  # (1, C)
        shift = be_ref[...] - mean * scale                             # (1, C)
        e = dotf(jnp.concatenate([scale, shift], axis=0), rt_ref[...])  # (2, C*W)
        return jnp.maximum(y * e[0:1, :] + e[1:2, :], 0.0)

    def maxpool(a, rs_ref, cs_ref):
        # 2x2 / stride-2 max-pool.  Row taps first (tiny left matmuls), then
        # column taps (right matmuls) on the row-pooled matrix, halving the
        # column-selector MXU work vs column-first.
        ab = a.astype(bf16)
        rp = jnp.maximum(dotf(rs_ref[0], ab), dotf(rs_ref[1], ab))
        rpb = rp.astype(bf16)
        return jnp.maximum(dotf(rpb, cs_ref[0]), dotf(rpb, cs_ref[1]))

    # ---- layer1: Conv2d(1,6,5) as K batched Toeplitz matmuls + BN + ReLU + pool
    y1 = dotf(x_ref[0], t1_ref[0])
    for kh in range(1, K):
        y1 = y1 + dotf(x_ref[kh], t1_ref[kh])            # (B*Ho1, C1*Wo1) f32
    a1 = bn_relu(y1, r1_ref, r1t_ref, g1_ref, be1_ref, float(B * Ho1 * Wo1))
    p1 = maxpool(a1, rs1_ref, cs1_ref)                   # (B*Hp1, C1*Wp1) f32

    # ---- layer2: Conv2d(6,16,5) + BN + ReLU + pool ----
    def conv2_lhs(kh):
        # stack the kh-shifted rows of every sample -> (B*Ho2, C1*Wp1)
        return jnp.concatenate(
            [p1[b * Hp1 + kh: b * Hp1 + kh + Ho2, :] for b in range(B)],
            axis=0).astype(bf16)

    cp_t2.wait()
    y2 = dotf(conv2_lhs(0), t2_ref[0])
    for kh in range(1, K):
        y2 = y2 + dotf(conv2_lhs(kh), t2_ref[kh])        # (B*Ho2, C2*Wo2) f32
    a2 = bn_relu(y2, r2_ref, r2t_ref, g2_ref, be2_ref, float(B * Ho2 * Wo2))

    cp_cs2.wait()
    p2 = maxpool(a2, rs2_ref, cs2_ref)                   # (Hp2*B, C2*Wp2), rows (h, b)

    # ---- MLP: fc(704->120)+ReLU, fc1(120->84)+ReLU, fc2(84->nc), batched over B
    # The NCHW flatten is absorbed into fw1's row permutation; p2's rows are
    # emitted in (h, b) order so each h contributes one M=B matmul.
    cp_fw1.wait()
    acc = dotf(p2[0:B, :].astype(bf16), fw1_ref[0])
    for h in range(1, Hp2):
        acc = acc + dotf(p2[h * B:(h + 1) * B, :].astype(bf16), fw1_ref[h])
    h1 = jnp.maximum(acc + fb1_ref[...], 0.0)            # (B, 120)
    h2 = jnp.maximum(dotf(h1.astype(bf16), fw2_ref[...]) + fb2_ref[...], 0.0)
    o_ref[...] = dotf(h2.astype(bf16), fw3_ref[...]) + fb3_ref[...]


# -------------------------------- wrapper ------------------------------------

def lenet5_forward(x_nchw, prep):
    B, cin, H, W = x_nchw.shape
    assert cin == 1
    Ho1 = H - K + 1
    x = x_nchw.reshape(B, H, W)
    # Row-shifted, batch-stacked input: x_sh[kh, b*Ho1 + r, :] = x[b, r+kh, :]
    x_sh = jnp.stack(
        [x[:, kh:kh + Ho1, :].reshape(B * Ho1, W) for kh in range(K)],
        axis=0).astype(jnp.bfloat16)
    nc = prep["fw3"].shape[1]

    args = (x_sh,
            prep["t1"], prep["rs1"], prep["cs1"], prep["r1"], prep["r1t"],
            prep["g1"], prep["be1"],
            prep["t2"], prep["rs2"], prep["r2"], prep["r2t"],
            prep["g2"], prep["be2"],
            prep["cs2"], prep["fw1"],
            prep["fb1"], prep["fw2"], prep["fb2"], prep["fw3"], prep["fb3"])

    in_specs = [_vmem()] * len(args)
    in_specs[8] = _hbm()     # t2  : prefetched in-kernel, overlapped DMA
    in_specs[14] = _hbm()    # cs2
    in_specs[15] = _hbm()    # fw1

    return pl.pallas_call(
        functools.partial(_lenet5_kernel, B),
        out_shape=jax.ShapeDtypeStruct((B, nc), jnp.float32),
        in_specs=in_specs,
        out_specs=_vmem(),
        scratch_shapes=[
            pltpu.VMEM(prep["t2"].shape, jnp.bfloat16),
            pltpu.VMEM(prep["cs2"].shape, jnp.bfloat16),
            pltpu.VMEM(prep["fw1"].shape, jnp.bfloat16),
            pltpu.SemaphoreType.DMA((3,)),
        ],
    )(*args)


# -------------------- one-time parameter preparation -------------------------

def prepare_params(p, B, H, W):
    """Transform torch-layout parameters into the fused kernel's layout.

    Builds (in bf16) the Toeplitz-over-width conv matrices, 0/1 pooling
    row/column selectors, channel-indicator matrices for BN, and the
    NCHW-flatten-permuted fc weight.  Done once per (B, H, W)."""
    f32, bf16 = jnp.float32, jnp.bfloat16
    Ho1, Wo1 = H - K + 1, W - K + 1
    Hp1, Wp1 = Ho1 // 2, Wo1 // 2
    Ho2, Wo2 = Hp1 - K + 1, Wp1 - K + 1
    Hp2, Wp2 = Ho2 // 2, Wo2 // 2
    assert Ho1 % 2 == 0 and Wo1 % 2 == 0 and Ho2 % 2 == 0 and Wo2 % 2 == 0
    assert C2 * Hp2 * Wp2 == p["fc_w"].shape[1]

    w1 = np.asarray(p["conv1_w"], np.float32)    # (6, 1, 5, 5)
    w2 = np.asarray(p["conv2_w"], np.float32)    # (16, 6, 5, 5)
    # conv1_b / conv2_b are dropped: exactly cancelled by training-mode BN.

    # conv1 Toeplitz: t1[kh, wo+kw, c*Wo1+wo] = w1[c, 0, kh, kw]
    kh, c, wo, kw = np.meshgrid(np.arange(K), np.arange(C1), np.arange(Wo1),
                                np.arange(K), indexing="ij")
    t1 = np.zeros((K, W, C1 * Wo1), np.float32)
    t1[kh, wo + kw, c * Wo1 + wo] = w1[c, 0, kh, kw]

    # conv2 Toeplitz: t2[kh, ci*Wp1+wo+kw, co*Wo2+wo] = w2[co, ci, kh, kw]
    kh, co, ci, wo, kw = np.meshgrid(np.arange(K), np.arange(C2), np.arange(C1),
                                     np.arange(Wo2), np.arange(K), indexing="ij")
    t2 = np.zeros((K, C1 * Wp1, C2 * Wo2), np.float32)
    t2[kh, ci * Wp1 + wo + kw, co * Wo2 + wo] = w2[co, ci, kh, kw]

    def chan_indicator(c_count, w_count):
        m = np.zeros((c_count * w_count, c_count), np.float32)
        c_i, w_i = np.meshgrid(np.arange(c_count), np.arange(w_count), indexing="ij")
        m[c_i * w_count + w_i, c_i] = 1.0
        return m

    def col_select(c_count, wo_count):
        wp = wo_count // 2
        s = np.zeros((2, c_count * wo_count, c_count * wp), np.float32)
        c_i, j_i = np.meshgrid(np.arange(c_count), np.arange(wp), indexing="ij")
        for dw in range(2):
            s[dw, c_i * wo_count + 2 * j_i + dw, c_i * wp + j_i] = 1.0
        return s

    def row_select(batch, ho_count, hb_order):
        hp = ho_count // 2
        s = np.zeros((2, batch * hp, batch * ho_count), np.float32)
        for dh in range(2):
            for b in range(batch):
                for i in range(hp):
                    r = (i * batch + b) if hb_order else (b * hp + i)
                    s[dh, r, b * ho_count + 2 * i + dh] = 1.0
        return s

    r1 = chan_indicator(C1, Wo1)
    r2 = chan_indicator(C2, Wo2)

    # fc weight: (120, 704) -> (Hp2, C2*Wp2, 120) so the kernel's (h, c, w)
    # pooled layout matches torch's NCHW (c, h, w) flatten.
    fc_w = np.asarray(p["fc_w"], np.float32)
    fw1 = fc_w.reshape(FC1, C2, Hp2, Wp2).transpose(2, 1, 3, 0).reshape(
        Hp2, C2 * Wp2, FC1)

    return dict(
        t1=jnp.asarray(t1, bf16),
        rs1=jnp.asarray(row_select(B, Ho1, False), bf16),
        cs1=jnp.asarray(col_select(C1, Wo1), bf16),
        r1=jnp.asarray(r1, f32), r1t=jnp.asarray(r1.T, f32),
        g1=jnp.asarray(p["bn1_g"], f32).reshape(1, C1),
        be1=jnp.asarray(p["bn1_b"], f32).reshape(1, C1),
        t2=jnp.asarray(t2, bf16),
        rs2=jnp.asarray(row_select(B, Ho2, True), bf16),   # (h, b) row order
        cs2=jnp.asarray(col_select(C2, Wo2), bf16),
        r2=jnp.asarray(r2, f32), r2t=jnp.asarray(r2.T, f32),
        g2=jnp.asarray(p["bn2_g"], f32).reshape(1, C2),
        be2=jnp.asarray(p["bn2_b"], f32).reshape(1, C2),
        fw1=jnp.asarray(fw1, bf16),
        fb1=jnp.asarray(p["fc_b"], f32).reshape(1, -1),
        fw2=jnp.asarray(np.asarray(p["fc1_w"], np.float32).T, bf16),
        fb2=jnp.asarray(p["fc1_b"], f32).reshape(1, -1),
        fw3=jnp.asarray(np.asarray(p["fc2_w"], np.float32).T, bf16),
        fb3=jnp.asarray(p["fc2_b"], f32).reshape(1, -1),
    )


def init_params(key, num_classes):
    """Torch-layout parameters with PyTorch default uniform init."""
    ks = jax.random.split(key, 10)

    def u(k, shape, fan_in):
        bound = 1.0 / float(np.sqrt(fan_in))
        return jax.random.uniform(k, shape, jnp.float32, -bound, bound)

    return dict(
        conv1_w=u(ks[0], (C1, 1, K, K), K * K),
        conv1_b=u(ks[1], (C1,), K * K),                  # cancelled by BN, unused
        bn1_g=jnp.ones((C1,), jnp.float32), bn1_b=jnp.zeros((C1,), jnp.float32),
        conv2_w=u(ks[2], (C2, C1, K, K), C1 * K * K),
        conv2_b=u(ks[3], (C2,), C1 * K * K),             # cancelled by BN, unused
        bn2_g=jnp.ones((C2,), jnp.float32), bn2_b=jnp.zeros((C2,), jnp.float32),
        fc_w=u(ks[4], (FC1, 704), 704), fc_b=u(ks[5], (FC1,), 704),
        fc1_w=u(ks[6], (FC2, FC1), FC1), fc1_b=u(ks[7], (FC2,), FC1),
        fc2_w=u(ks[8], (num_classes, FC2), FC2), fc2_b=u(ks[9], (num_classes,), FC2),
    )


if __name__ == "__main__":
    num_classes = 10
    key = jax.random.PRNGKey(0)
    kx, kp = jax.random.split(key)
    # H=28, W=56 so the flattened feature size is 16 * 4 * 11 = 704, matching
    # nn.Linear(704, 120) in the reference module.
    B, H, W = 2, 28, 56
    x = jax.random.normal(kx, (B, 1, H, W), jnp.float32)
    params = init_params(kp, num_classes)
    prep = prepare_params(params, B, H, W)

    out = jax.jit(lenet5_forward)(x, prep)
    out = jax.block_until_ready(out)
    assert out.shape == (B, num_classes)
    assert bool(jnp.all(jnp.isfinite(out)))
    print("KERNEL_OK")
</pallas_src>

<mosaic_0001>
module attributes {stable_mosaic.version = 11 : i64} {
  func.func @_lenet5_kernel(%arg0: memref<5x48x56xbf16, #tpu.memory_space<vmem>>, %arg1: memref<5x56x312xbf16, #tpu.memory_space<vmem>>, %arg2: memref<2x24x48xbf16, #tpu.memory_space<vmem>>, %arg3: memref<2x312x156xbf16, #tpu.memory_space<vmem>>, %arg4: memref<312x6xf32, #tpu.memory_space<vmem>>, %arg5: memref<6x312xf32, #tpu.memory_space<vmem>>, %arg6: memref<1x6xf32, #tpu.memory_space<vmem>>, %arg7: memref<1x6xf32, #tpu.memory_space<vmem>>, %arg8: memref<5x156x352xbf16, #tpu.memory_space<any>>, %arg9: memref<2x8x16xbf16, #tpu.memory_space<vmem>>, %arg10: memref<352x16xf32, #tpu.memory_space<vmem>>, %arg11: memref<16x352xf32, #tpu.memory_space<vmem>>, %arg12: memref<1x16xf32, #tpu.memory_space<vmem>>, %arg13: memref<1x16xf32, #tpu.memory_space<vmem>>, %arg14: memref<2x352x176xbf16, #tpu.memory_space<any>>, %arg15: memref<4x176x120xbf16, #tpu.memory_space<any>>, %arg16: memref<1x120xf32, #tpu.memory_space<vmem>>, %arg17: memref<120x84xbf16, #tpu.memory_space<vmem>>, %arg18: memref<1x84xf32, #tpu.memory_space<vmem>>, %arg19: memref<84x10xbf16, #tpu.memory_space<vmem>>, %arg20: memref<1x10xf32, #tpu.memory_space<vmem>>, %arg21: memref<2x10xf32, #tpu.memory_space<vmem>>, %arg22: memref<5x156x352xbf16, #tpu.memory_space<vmem>>, %arg23: memref<2x352x176xbf16, #tpu.memory_space<vmem>>, %arg24: memref<4x176x120xbf16, #tpu.memory_space<vmem>>, %arg25: memref<3x!tpu.dma_semaphore, #tpu.memory_space<semaphore_mem>>) attributes {dimension_semantics = [], scalar_prefetch = 0 : i64, scratch_operands = 4 : i64, tpu.core_type = #tpu.core_type<tc>} {
    %c0_i32 = arith.constant 0 : i32
    %0 = tpu.memref_slice %arg25[%c0_i32] : memref<3x!tpu.dma_semaphore, #tpu.memory_space<semaphore_mem>> -> memref<1x!tpu.dma_semaphore, #tpu.memory_space<semaphore_mem>>
    %1 = tpu.memref_squeeze %0 : memref<1x!tpu.dma_semaphore, #tpu.memory_space<semaphore_mem>> -> memref<!tpu.dma_semaphore, #tpu.memory_space<semaphore_mem>>
    tpu.enqueue_dma source(%arg8 : memref<5x156x352xbf16, #tpu.memory_space<any>>) target(%arg22 : memref<5x156x352xbf16, #tpu.memory_space<vmem>>) target_semaphore(%1 : memref<!tpu.dma_semaphore, #tpu.memory_space<semaphore_mem>>)
    %c1_i32 = arith.constant 1 : i32
    %2 = tpu.memref_slice %arg25[%c1_i32] : memref<3x!tpu.dma_semaphore, #tpu.memory_space<semaphore_mem>> -> memref<1x!tpu.dma_semaphore, #tpu.memory_space<semaphore_mem>>
    %3 = tpu.memref_squeeze %2 : memref<1x!tpu.dma_semaphore, #tpu.memory_space<semaphore_mem>> -> memref<!tpu.dma_semaphore, #tpu.memory_space<semaphore_mem>>
    tpu.enqueue_dma source(%arg14 : memref<2x352x176xbf16, #tpu.memory_space<any>>) target(%arg23 : memref<2x352x176xbf16, #tpu.memory_space<vmem>>) target_semaphore(%3 : memref<!tpu.dma_semaphore, #tpu.memory_space<semaphore_mem>>)
    %c2_i32 = arith.constant 2 : i32
    %4 = tpu.memref_slice %arg25[%c2_i32] : memref<3x!tpu.dma_semaphore, #tpu.memory_space<semaphore_mem>> -> memref<1x!tpu.dma_semaphore, #tpu.memory_space<semaphore_mem>>
    %5 = tpu.memref_squeeze %4 : memref<1x!tpu.dma_semaphore, #tpu.memory_space<semaphore_mem>> -> memref<!tpu.dma_semaphore, #tpu.memory_space<semaphore_mem>>
    tpu.enqueue_dma source(%arg15 : memref<4x176x120xbf16, #tpu.memory_space<any>>) target(%arg24 : memref<4x176x120xbf16, #tpu.memory_space<vmem>>) target_semaphore(%5 : memref<!tpu.dma_semaphore, #tpu.memory_space<semaphore_mem>>)
    %c0 = arith.constant 0 : index
    %c0_0 = arith.constant 0 : index
    %c0_1 = arith.constant 0 : index
    %6 = vector.load %arg0[%c0, %c0_0, %c0_1] : memref<5x48x56xbf16, #tpu.memory_space<vmem>>, vector<1x48x56xbf16>
    %7 = vector.shape_cast %6 : vector<1x48x56xbf16> to vector<48x56xbf16>
    %c0_2 = arith.constant 0 : index
    %c0_3 = arith.constant 0 : index
    %c0_4 = arith.constant 0 : index
    %8 = vector.load %arg1[%c0_2, %c0_3, %c0_4] : memref<5x56x312xbf16, #tpu.memory_space<vmem>>, vector<1x56x312xbf16>
    %9 = vector.shape_cast %8 : vector<1x56x312xbf16> to vector<56x312xbf16>
    %cst = arith.constant dense<0.000000e+00> : vector<48x312xf32>
    %10 = tpu.matmul %7, %9, %cst {dimension_numbers = #tpu.dot_dimension_numbers<[1], [0], [0], [1], [0, 0, 1, 1], [], []>} : vector<48x56xbf16>, vector<56x312xbf16>, vector<48x312xf32> -> vector<48x312xf32>
    %c1 = arith.constant 1 : index
    %c0_5 = arith.constant 0 : index
    %c0_6 = arith.constant 0 : index
    %11 = vector.load %arg0[%c1, %c0_5, %c0_6] : memref<5x48x56xbf16, #tpu.memory_space<vmem>>, vector<1x48x56xbf16>
    %12 = vector.shape_cast %11 : vector<1x48x56xbf16> to vector<48x56xbf16>
    %c1_7 = arith.constant 1 : index
    %c0_8 = arith.constant 0 : index
    %c0_9 = arith.constant 0 : index
    %13 = vector.load %arg1[%c1_7, %c0_8, %c0_9] : memref<5x56x312xbf16, #tpu.memory_space<vmem>>, vector<1x56x312xbf16>
    %14 = vector.shape_cast %13 : vector<1x56x312xbf16> to vector<56x312xbf16>
    %cst_10 = arith.constant dense<0.000000e+00> : vector<48x312xf32>
    %15 = tpu.matmul %12, %14, %cst_10 {dimension_numbers = #tpu.dot_dimension_numbers<[1], [0], [0], [1], [0, 0, 1, 1], [], []>} : vector<48x56xbf16>, vector<56x312xbf16>, vector<48x312xf32> -> vector<48x312xf32>
    %16 = arith.addf %10, %15 : vector<48x312xf32>
    %c2 = arith.constant 2 : index
    %c0_11 = arith.constant 0 : index
    %c0_12 = arith.constant 0 : index
    %17 = vector.load %arg0[%c2, %c0_11, %c0_12] : memref<5x48x56xbf16, #tpu.memory_space<vmem>>, vector<1x48x56xbf16>
    %18 = vector.shape_cast %17 : vector<1x48x56xbf16> to vector<48x56xbf16>
    %c2_13 = arith.constant 2 : index
    %c0_14 = arith.constant 0 : index
    %c0_15 = arith.constant 0 : index
    %19 = vector.load %arg1[%c2_13, %c0_14, %c0_15] : memref<5x56x312xbf16, #tpu.memory_space<vmem>>, vector<1x56x312xbf16>
    %20 = vector.shape_cast %19 : vector<1x56x312xbf16> to vector<56x312xbf16>
    %cst_16 = arith.constant dense<0.000000e+00> : vector<48x312xf32>
    %21 = tpu.matmul %18, %20, %cst_16 {dimension_numbers = #tpu.dot_dimension_numbers<[1], [0], [0], [1], [0, 0, 1, 1], [], []>} : vector<48x56xbf16>, vector<56x312xbf16>, vector<48x312xf32> -> vector<48x312xf32>
    %22 = arith.addf %16, %21 : vector<48x312xf32>
    %c3 = arith.constant 3 : index
    %c0_17 = arith.constant 0 : index
    %c0_18 = arith.constant 0 : index
    %23 = vector.load %arg0[%c3, %c0_17, %c0_18] : memref<5x48x56xbf16, #tpu.memory_space<vmem>>, vector<1x48x56xbf16>
    %24 = vector.shape_cast %23 : vector<1x48x56xbf16> to vector<48x56xbf16>
    %c3_19 = arith.constant 3 : index
    %c0_20 = arith.constant 0 : index
    %c0_21 = arith.constant 0 : index
    %25 = vector.load %arg1[%c3_19, %c0_20, %c0_21] : memref<5x56x312xbf16, #tpu.memory_space<vmem>>, vector<1x56x312xbf16>
    %26 = vector.shape_cast %25 : vector<1x56x312xbf16> to vector<56x312xbf16>
    %cst_22 = arith.constant dense<0.000000e+00> : vector<48x312xf32>
    %27 = tpu.matmul %24, %26, %cst_22 {dimension_numbers = #tpu.dot_dimension_numbers<[1], [0], [0], [1], [0, 0, 1, 1], [], []>} : vector<48x56xbf16>, vector<56x312xbf16>, vector<48x312xf32> -> vector<48x312xf32>
    %28 = arith.addf %22, %27 : vector<48x312xf32>
    %c4 = arith.constant 4 : index
    %c0_23 = arith.constant 0 : index
    %c0_24 = arith.constant 0 : index
    %29 = vector.load %arg0[%c4, %c0_23, %c0_24] : memref<5x48x56xbf16, #tpu.memory_space<vmem>>, vector<1x48x56xbf16>
    %30 = vector.shape_cast %29 : vector<1x48x56xbf16> to vector<48x56xbf16>
    %c4_25 = arith.constant 4 : index
    %c0_26 = arith.constant 0 : index
    %c0_27 = arith.constant 0 : index
    %31 = vector.load %arg1[%c4_25, %c0_26, %c0_27] : memref<5x56x312xbf16, #tpu.memory_space<vmem>>, vector<1x56x312xbf16>
    %32 = vector.shape_cast %31 : vector<1x56x312xbf16> to vector<56x312xbf16>
    %cst_28 = arith.constant dense<0.000000e+00> : vector<48x312xf32>
    %33 = tpu.matmul %30, %32, %cst_28 {dimension_numbers = #tpu.dot_dimension_numbers<[1], [0], [0], [1], [0, 0, 1, 1], [], []>} : vector<48x56xbf16>, vector<56x312xbf16>, vector<48x312xf32> -> vector<48x312xf32>
    %34 = arith.addf %28, %33 : vector<48x312xf32>
    %cst_29 = arith.constant dense<0.000000e+00> : vector<312xf32>
    %35 = vector.multi_reduction <add>, %34, %cst_29 [0] : vector<48x312xf32> to vector<312xf32>
    %36 = vector.shape_cast %35 : vector<312xf32> to vector<1x312xf32>
    %37 = arith.mulf %34, %34 : vector<48x312xf32>
    %cst_30 = arith.constant dense<0.000000e+00> : vector<312xf32>
    %38 = vector.multi_reduction <add>, %37, %cst_30 [0] : vector<48x312xf32> to vector<312xf32>
    %39 = vector.shape_cast %38 : vector<312xf32> to vector<1x312xf32>
    %40 = tpu.concatenate %36, %39 in 0 : vector<1x312xf32>, vector<1x312xf32> -> vector<2x312xf32>
    %c0_31 = arith.constant 0 : index
    %c0_32 = arith.constant 0 : index
    %41 = vector.load %arg4[%c0_31, %c0_32] : memref<312x6xf32, #tpu.memory_space<vmem>>, vector<312x6xf32>
    %cst_33 = arith.constant dense<0.000000e+00> : vector<2x6xf32>
    %42 = tpu.matmul %40, %41, %cst_33 {dimension_numbers = #tpu.dot_dimension_numbers<[1], [0], [0], [1], [0, 0, 1, 1], [], []>} : vector<2x312xf32>, vector<312x6xf32>, vector<2x6xf32> -> vector<2x6xf32>
    %cst_34 = arith.constant 4.00641031E-4 : f32
    %43 = vector.broadcast %cst_34 : f32 to vector<2x6xf32>
    %44 = arith.mulf %42, %43 : vector<2x6xf32>
    %45 = vector.extract_strided_slice %44 {offsets = [0, 0], sizes = [1, 6], strides = [1, 1]} : vector<2x6xf32> to vector<1x6xf32>
    %46 = vector.extract_strided_slice %44 {offsets = [1, 0], sizes = [1, 6], strides = [1, 1]} : vector<2x6xf32> to vector<1x6xf32>
    %47 = arith.mulf %45, %45 : vector<1x6xf32>
    %48 = arith.subf %46, %47 : vector<1x6xf32>
    %c0_35 = arith.constant 0 : index
    %c0_36 = arith.constant 0 : index
    %49 = vector.load %arg6[%c0_35, %c0_36] : memref<1x6xf32, #tpu.memory_space<vmem>>, vector<1x6xf32>
    %cst_37 = arith.constant 9.99999974E-6 : f32
    %50 = vector.broadcast %cst_37 : f32 to vector<1x6xf32>
    %51 = arith.addf %48, %50 : vector<1x6xf32>
    %52 = math.rsqrt %51 : vector<1x6xf32>
    %53 = arith.mulf %49, %52 : vector<1x6xf32>
    %c0_38 = arith.constant 0 : index
    %c0_39 = arith.constant 0 : index
    %54 = vector.load %arg7[%c0_38, %c0_39] : memref<1x6xf32, #tpu.memory_space<vmem>>, vector<1x6xf32>
    %55 = arith.mulf %45, %53 : vector<1x6xf32>
    %56 = arith.subf %54, %55 : vector<1x6xf32>
    %57 = tpu.concatenate %53, %56 in 0 : vector<1x6xf32>, vector<1x6xf32> -> vector<2x6xf32>
    %c0_40 = arith.constant 0 : index
    %c0_41 = arith.constant 0 : index
    %58 = vector.load %arg5[%c0_40, %c0_41] : memref<6x312xf32, #tpu.memory_space<vmem>>, vector<6x312xf32>
    %cst_42 = arith.constant dense<0.000000e+00> : vector<2x312xf32>
    %59 = tpu.matmul %57, %58, %cst_42 {dimension_numbers = #tpu.dot_dimension_numbers<[1], [0], [0], [1], [0, 0, 1, 1], [], []>} : vector<2x6xf32>, vector<6x312xf32>, vector<2x312xf32> -> vector<2x312xf32>
    %60 = vector.extract_strided_slice %59 {offsets = [0, 0], sizes = [1, 312], strides = [1, 1]} : vector<2x312xf32> to vector<1x312xf32>
    %61 = vector.broadcast %60 : vector<1x312xf32> to vector<48x312xf32>
    %62 = arith.mulf %34, %61 : vector<48x312xf32>
    %63 = vector.extract_strided_slice %59 {offsets = [1, 0], sizes = [1, 312], strides = [1, 1]} : vector<2x312xf32> to vector<1x312xf32>
    %64 = vector.broadcast %63 : vector<1x312xf32> to vector<48x312xf32>
    %65 = arith.addf %62, %64 : vector<48x312xf32>
    %cst_43 = arith.constant 0.000000e+00 : f32
    %66 = vector.broadcast %cst_43 : f32 to vector<48x312xf32>
    %67 = arith.maximumf %65, %66 : vector<48x312xf32>
    %68 = arith.truncf %67 : vector<48x312xf32> to vector<48x312xbf16>
    %c0_44 = arith.constant 0 : index
    %c0_45 = arith.constant 0 : index
    %c0_46 = arith.constant 0 : index
    %69 = vector.load %arg2[%c0_44, %c0_45, %c0_46] : memref<2x24x48xbf16, #tpu.memory_space<vmem>>, vector<1x24x48xbf16>
    %70 = vector.shape_cast %69 : vector<1x24x48xbf16> to vector<24x48xbf16>
    %cst_47 = arith.constant dense<0.000000e+00> : vector<24x312xf32>
    %71 = tpu.matmul %70, %68, %cst_47 {dimension_numbers = #tpu.dot_dimension_numbers<[1], [0], [0], [1], [0, 0, 1, 1], [], []>} : vector<24x48xbf16>, vector<48x312xbf16>, vector<24x312xf32> -> vector<24x312xf32>
    %c1_48 = arith.constant 1 : index
    %c0_49 = arith.constant 0 : index
    %c0_50 = arith.constant 0 : index
    %72 = vector.load %arg2[%c1_48, %c0_49, %c0_50] : memref<2x24x48xbf16, #tpu.memory_space<vmem>>, vector<1x24x48xbf16>
    %73 = vector.shape_cast %72 : vector<1x24x48xbf16> to vector<24x48xbf16>
    %cst_51 = arith.constant dense<0.000000e+00> : vector<24x312xf32>
    %74 = tpu.matmul %73, %68, %cst_51 {dimension_numbers = #tpu.dot_dimension_numbers<[1], [0], [0], [1], [0, 0, 1, 1], [], []>} : vector<24x48xbf16>, vector<48x312xbf16>, vector<24x312xf32> -> vector<24x312xf32>
    %75 = arith.maximumf %71, %74 : vector<24x312xf32>
    %76 = arith.truncf %75 : vector<24x312xf32> to vector<24x312xbf16>
    %c0_52 = arith.constant 0 : index
    %c0_53 = arith.constant 0 : index
    %c0_54 = arith.constant 0 : index
    %77 = vector.load %arg3[%c0_52, %c0_53, %c0_54] : memref<2x312x156xbf16, #tpu.memory_space<vmem>>, vector<1x312x156xbf16>
    %78 = vector.shape_cast %77 : vector<1x312x156xbf16> to vector<312x156xbf16>
    %cst_55 = arith.constant dense<0.000000e+00> : vector<24x156xf32>
    %79 = tpu.matmul %76, %78, %cst_55 {dimension_numbers = #tpu.dot_dimension_numbers<[1], [0], [0], [1], [0, 0, 1, 1], [], []>} : vector<24x312xbf16>, vector<312x156xbf16>, vector<24x156xf32> -> vector<24x156xf32>
    %c1_56 = arith.constant 1 : index
    %c0_57 = arith.constant 0 : index
    %c0_58 = arith.constant 0 : index
    %80 = vector.load %arg3[%c1_56, %c0_57, %c0_58] : memref<2x312x156xbf16, #tpu.memory_space<vmem>>, vector<1x312x156xbf16>
    %81 = vector.shape_cast %80 : vector<1x312x156xbf16> to vector<312x156xbf16>
    %cst_59 = arith.constant dense<0.000000e+00> : vector<24x156xf32>
    %82 = tpu.matmul %76, %81, %cst_59 {dimension_numbers = #tpu.dot_dimension_numbers<[1], [0], [0], [1], [0, 0, 1, 1], [], []>} : vector<24x312xbf16>, vector<312x156xbf16>, vector<24x156xf32> -> vector<24x156xf32>
    %83 = arith.maximumf %79, %82 : vector<24x156xf32>
    %c0_i32_60 = arith.constant 0 : i32
    %84 = tpu.memref_slice %arg25[%c0_i32_60] : memref<3x!tpu.dma_semaphore, #tpu.memory_space<semaphore_mem>> -> memref<1x!tpu.dma_semaphore, #tpu.memory_space<semaphore_mem>>
    %85 = tpu.memref_squeeze %84 : memref<1x!tpu.dma_semaphore, #tpu.memory_space<semaphore_mem>> -> memref<!tpu.dma_semaphore, #tpu.memory_space<semaphore_mem>>
    tpu.wait_dma2 semaphore(%85 : memref<!tpu.dma_semaphore, #tpu.memory_space<semaphore_mem>>) src(%arg8 : memref<5x156x352xbf16, #tpu.memory_space<any>>) dst(%arg22 : memref<5x156x352xbf16, #tpu.memory_space<vmem>>)
    %86 = vector.extract_strided_slice %83 {offsets = [0, 0], sizes = [8, 156], strides = [1, 1]} : vector<24x156xf32> to vector<8x156xf32>
    %87 = vector.extract_strided_slice %83 {offsets = [12, 0], sizes = [8, 156], strides = [1, 1]} : vector<24x156xf32> to vector<8x156xf32>
    %88 = tpu.concatenate %86, %87 in 0 : vector<8x156xf32>, vector<8x156xf32> -> vector<16x156xf32>
    %89 = arith.truncf %88 : vector<16x156xf32> to vector<16x156xbf16>
    %c0_61 = arith.constant 0 : index
    %c0_62 = arith.constant 0 : index
    %c0_63 = arith.constant 0 : index
    %90 = vector.load %arg22[%c0_61, %c0_62, %c0_63] : memref<5x156x352xbf16, #tpu.memory_space<vmem>>, vector<1x156x352xbf16>
    %91 = vector.shape_cast %90 : vector<1x156x352xbf16> to vector<156x352xbf16>
    %cst_64 = arith.constant dense<0.000000e+00> : vector<16x352xf32>
    %92 = tpu.matmul %89, %91, %cst_64 {dimension_numbers = #tpu.dot_dimension_numbers<[1], [0], [0], [1], [0, 0, 1, 1], [], []>} : vector<16x156xbf16>, vector<156x352xbf16>, vector<16x352xf32> -> vector<16x352xf32>
    %93 = vector.extract_strided_slice %83 {offsets = [1, 0], sizes = [8, 156], strides = [1, 1]} : vector<24x156xf32> to vector<8x156xf32>
    %94 = vector.extract_strided_slice %83 {offsets = [13, 0], sizes = [8, 156], strides = [1, 1]} : vector<24x156xf32> to vector<8x156xf32>
    %95 = tpu.concatenate %93, %94 in 0 : vector<8x156xf32>, vector<8x156xf32> -> vector<16x156xf32>
    %96 = arith.truncf %95 : vector<16x156xf32> to vector<16x156xbf16>
    %c1_65 = arith.constant 1 : index
    %c0_66 = arith.constant 0 : index
    %c0_67 = arith.constant 0 : index
    %97 = vector.load %arg22[%c1_65, %c0_66, %c0_67] : memref<5x156x352xbf16, #tpu.memory_space<vmem>>, vector<1x156x352xbf16>
    %98 = vector.shape_cast %97 : vector<1x156x352xbf16> to vector<156x352xbf16>
    %cst_68 = arith.constant dense<0.000000e+00> : vector<16x352xf32>
    %99 = tpu.matmul %96, %98, %cst_68 {dimension_numbers = #tpu.dot_dimension_numbers<[1], [0], [0], [1], [0, 0, 1, 1], [], []>} : vector<16x156xbf16>, vector<156x352xbf16>, vector<16x352xf32> -> vector<16x352xf32>
    %100 = arith.addf %92, %99 : vector<16x352xf32>
    %101 = vector.extract_strided_slice %83 {offsets = [2, 0], sizes = [8, 156], strides = [1, 1]} : vector<24x156xf32> to vector<8x156xf32>
    %102 = vector.extract_strided_slice %83 {offsets = [14, 0], sizes = [8, 156], strides = [1, 1]} : vector<24x156xf32> to vector<8x156xf32>
    %103 = tpu.concatenate %101, %102 in 0 : vector<8x156xf32>, vector<8x156xf32> -> vector<16x156xf32>
    %104 = arith.truncf %103 : vector<16x156xf32> to vector<16x156xbf16>
    %c2_69 = arith.constant 2 : index
    %c0_70 = arith.constant 0 : index
    %c0_71 = arith.constant 0 : index
    %105 = vector.load %arg22[%c2_69, %c0_70, %c0_71] : memref<5x156x352xbf16, #tpu.memory_space<vmem>>, vector<1x156x352xbf16>
    %106 = vector.shape_cast %105 : vector<1x156x352xbf16> to vector<156x352xbf16>
    %cst_72 = arith.constant dense<0.000000e+00> : vector<16x352xf32>
    %107 = tpu.matmul %104, %106, %cst_72 {dimension_numbers = #tpu.dot_dimension_numbers<[1], [0], [0], [1], [0, 0, 1, 1], [], []>} : vector<16x156xbf16>, vector<156x352xbf16>, vector<16x352xf32> -> vector<16x352xf32>
    %108 = arith.addf %100, %107 : vector<16x352xf32>
    %109 = vector.extract_strided_slice %83 {offsets = [3, 0], sizes = [8, 156], strides = [1, 1]} : vector<24x156xf32> to vector<8x156xf32>
    %110 = vector.extract_strided_slice %83 {offsets = [15, 0], sizes = [8, 156], strides = [1, 1]} : vector<24x156xf32> to vector<8x156xf32>
    %111 = tpu.concatenate %109, %110 in 0 : vector<8x156xf32>, vector<8x156xf32> -> vector<16x156xf32>
    %112 = arith.truncf %111 : vector<16x156xf32> to vector<16x156xbf16>
    %c3_73 = arith.constant 3 : index
    %c0_74 = arith.constant 0 : index
    %c0_75 = arith.constant 0 : index
    %113 = vector.load %arg22[%c3_73, %c0_74, %c0_75] : memref<5x156x352xbf16, #tpu.memory_space<vmem>>, vector<1x156x352xbf16>
    %114 = vector.shape_cast %113 : vector<1x156x352xbf16> to vector<156x352xbf16>
    %cst_76 = arith.constant dense<0.000000e+00> : vector<16x352xf32>
    %115 = tpu.matmul %112, %114, %cst_76 {dimension_numbers = #tpu.dot_dimension_numbers<[1], [0], [0], [1], [0, 0, 1, 1], [], []>} : vector<16x156xbf16>, vector<156x352xbf16>, vector<16x352xf32> -> vector<16x352xf32>
    %116 = arith.addf %108, %115 : vector<16x352xf32>
    %117 = vector.extract_strided_slice %83 {offsets = [4, 0], sizes = [8, 156], strides = [1, 1]} : vector<24x156xf32> to vector<8x156xf32>
    %118 = vector.extract_strided_slice %83 {offsets = [16, 0], sizes = [8, 156], strides = [1, 1]} : vector<24x156xf32> to vector<8x156xf32>
    %119 = tpu.concatenate %117, %118 in 0 : vector<8x156xf32>, vector<8x156xf32> -> vector<16x156xf32>
    %120 = arith.truncf %119 : vector<16x156xf32> to vector<16x156xbf16>
    %c4_77 = arith.constant 4 : index
    %c0_78 = arith.constant 0 : index
    %c0_79 = arith.constant 0 : index
    %121 = vector.load %arg22[%c4_77, %c0_78, %c0_79] : memref<5x156x352xbf16, #tpu.memory_space<vmem>>, vector<1x156x352xbf16>
    %122 = vector.shape_cast %121 : vector<1x156x352xbf16> to vector<156x352xbf16>
    %cst_80 = arith.constant dense<0.000000e+00> : vector<16x352xf32>
    %123 = tpu.matmul %120, %122, %cst_80 {dimension_numbers = #tpu.dot_dimension_numbers<[1], [0], [0], [1], [0, 0, 1, 1], [], []>} : vector<16x156xbf16>, vector<156x352xbf16>, vector<16x352xf32> -> vector<16x352xf32>
    %124 = arith.addf %116, %123 : vector<16x352xf32>
    %cst_81 = arith.constant dense<0.000000e+00> : vector<352xf32>
    %125 = vector.multi_reduction <add>, %124, %cst_81 [0] : vector<16x352xf32> to vector<352xf32>
    %126 = vector.shape_cast %125 : vector<352xf32> to vector<1x352xf32>
    %127 = arith.mulf %124, %124 : vector<16x352xf32>
    %cst_82 = arith.constant dense<0.000000e+00> : vector<352xf32>
    %128 = vector.multi_reduction <add>, %127, %cst_82 [0] : vector<16x352xf32> to vector<352xf32>
    %129 = vector.shape_cast %128 : vector<352xf32> to vector<1x352xf32>
    %130 = tpu.concatenate %126, %129 in 0 : vector<1x352xf32>, vector<1x352xf32> -> vector<2x352xf32>
    %c0_83 = arith.constant 0 : index
    %c0_84 = arith.constant 0 : index
    %131 = vector.load %arg10[%c0_83, %c0_84] : memref<352x16xf32, #tpu.memory_space<vmem>>, vector<352x16xf32>
    %cst_85 = arith.constant dense<0.000000e+00> : vector<2x16xf32>
    %132 = tpu.matmul %130, %131, %cst_85 {dimension_numbers = #tpu.dot_dimension_numbers<[1], [0], [0], [1], [0, 0, 1, 1], [], []>} : vector<2x352xf32>, vector<352x16xf32>, vector<2x16xf32> -> vector<2x16xf32>
    %cst_86 = arith.constant 0.00284090918 : f32
    %133 = vector.broadcast %cst_86 : f32 to vector<2x16xf32>
    %134 = arith.mulf %132, %133 : vector<2x16xf32>
    %135 = vector.extract_strided_slice %134 {offsets = [0, 0], sizes = [1, 16], strides = [1, 1]} : vector<2x16xf32> to vector<1x16xf32>
    %136 = vector.extract_strided_slice %134 {offsets = [1, 0], sizes = [1, 16], strides = [1, 1]} : vector<2x16xf32> to vector<1x16xf32>
    %137 = arith.mulf %135, %135 : vector<1x16xf32>
    %138 = arith.subf %136, %137 : vector<1x16xf32>
    %c0_87 = arith.constant 0 : index
    %c0_88 = arith.constant 0 : index
    %139 = vector.load %arg12[%c0_87, %c0_88] : memref<1x16xf32, #tpu.memory_space<vmem>>, vector<1x16xf32>
    %cst_89 = arith.constant 9.99999974E-6 : f32
    %140 = vector.broadcast %cst_89 : f32 to vector<1x16xf32>
    %141 = arith.addf %138, %140 : vector<1x16xf32>
    %142 = math.rsqrt %141 : vector<1x16xf32>
    %143 = arith.mulf %139, %142 : vector<1x16xf32>
    %c0_90 = arith.constant 0 : index
    %c0_91 = arith.constant 0 : index
    %144 = vector.load %arg13[%c0_90, %c0_91] : memref<1x16xf32, #tpu.memory_space<vmem>>, vector<1x16xf32>
    %145 = arith.mulf %135, %143 : vector<1x16xf32>
    %146 = arith.subf %144, %145 : vector<1x16xf32>
    %147 = tpu.concatenate %143, %146 in 0 : vector<1x16xf32>, vector<1x16xf32> -> vector<2x16xf32>
    %c0_92 = arith.constant 0 : index
    %c0_93 = arith.constant 0 : index
    %148 = vector.load %arg11[%c0_92, %c0_93] : memref<16x352xf32, #tpu.memory_space<vmem>>, vector<16x352xf32>
    %cst_94 = arith.constant dense<0.000000e+00> : vector<2x352xf32>
    %149 = tpu.matmul %147, %148, %cst_94 {dimension_numbers = #tpu.dot_dimension_numbers<[1], [0], [0], [1], [0, 0, 1, 1], [], []>} : vector<2x16xf32>, vector<16x352xf32>, vector<2x352xf32> -> vector<2x352xf32>
    %150 = vector.extract_strided_slice %149 {offsets = [0, 0], sizes = [1, 352], strides = [1, 1]} : vector<2x352xf32> to vector<1x352xf32>
    %151 = vector.broadcast %150 : vector<1x352xf32> to vector<16x352xf32>
    %152 = arith.mulf %124, %151 : vector<16x352xf32>
    %153 = vector.extract_strided_slice %149 {offsets = [1, 0], sizes = [1, 352], strides = [1, 1]} : vector<2x352xf32> to vector<1x352xf32>
    %154 = vector.broadcast %153 : vector<1x352xf32> to vector<16x352xf32>
    %155 = arith.addf %152, %154 : vector<16x352xf32>
    %cst_95 = arith.constant 0.000000e+00 : f32
    %156 = vector.broadcast %cst_95 : f32 to vector<16x352xf32>
    %157 = arith.maximumf %155, %156 : vector<16x352xf32>
    %c1_i32_96 = arith.constant 1 : i32
    %158 = tpu.memref_slice %arg25[%c1_i32_96] : memref<3x!tpu.dma_semaphore, #tpu.memory_space<semaphore_mem>> -> memref<1x!tpu.dma_semaphore, #tpu.memory_space<semaphore_mem>>
    %159 = tpu.memref_squeeze %158 : memref<1x!tpu.dma_semaphore, #tpu.memory_space<semaphore_mem>> -> memref<!tpu.dma_semaphore, #tpu.memory_space<semaphore_mem>>
    tpu.wait_dma2 semaphore(%159 : memref<!tpu.dma_semaphore, #tpu.memory_space<semaphore_mem>>) src(%arg14 : memref<2x352x176xbf16, #tpu.memory_space<any>>) dst(%arg23 : memref<2x352x176xbf16, #tpu.memory_space<vmem>>)
    %160 = arith.truncf %157 : vector<16x352xf32> to vector<16x352xbf16>
    %c0_97 = arith.constant 0 : index
    %c0_98 = arith.constant 0 : index
    %c0_99 = arith.constant 0 : index
    %161 = vector.load %arg9[%c0_97, %c0_98, %c0_99] : memref<2x8x16xbf16, #tpu.memory_space<vmem>>, vector<1x8x16xbf16>
    %162 = vector.shape_cast %161 : vector<1x8x16xbf16> to vector<8x16xbf16>
    %cst_100 = arith.constant dense<0.000000e+00> : vector<8x352xf32>
    %163 = tpu.matmul %162, %160, %cst_100 {dimension_numbers = #tpu.dot_dimension_numbers<[1], [0], [0], [1], [0, 0, 1, 1], [], []>} : vector<8x16xbf16>, vector<16x352xbf16>, vector<8x352xf32> -> vector<8x352xf32>
    %c1_101 = arith.constant 1 : index
    %c0_102 = arith.constant 0 : index
    %c0_103 = arith.constant 0 : index
    %164 = vector.load %arg9[%c1_101, %c0_102, %c0_103] : memref<2x8x16xbf16, #tpu.memory_space<vmem>>, vector<1x8x16xbf16>
    %165 = vector.shape_cast %164 : vector<1x8x16xbf16> to vector<8x16xbf16>
    %cst_104 = arith.constant dense<0.000000e+00> : vector<8x352xf32>
    %166 = tpu.matmul %165, %160, %cst_104 {dimension_numbers = #tpu.dot_dimension_numbers<[1], [0], [0], [1], [0, 0, 1, 1], [], []>} : vector<8x16xbf16>, vector<16x352xbf16>, vector<8x352xf32> -> vector<8x352xf32>
    %167 = arith.maximumf %163, %166 : vector<8x352xf32>
    %168 = arith.truncf %167 : vector<8x352xf32> to vector<8x352xbf16>
    %c0_105 = arith.constant 0 : index
    %c0_106 = arith.constant 0 : index
    %c0_107 = arith.constant 0 : index
    %169 = vector.load %arg23[%c0_105, %c0_106, %c0_107] : memref<2x352x176xbf16, #tpu.memory_space<vmem>>, vector<1x352x176xbf16>
    %170 = vector.shape_cast %169 : vector<1x352x176xbf16> to vector<352x176xbf16>
    %cst_108 = arith.constant dense<0.000000e+00> : vector<8x176xf32>
    %171 = tpu.matmul %168, %170, %cst_108 {dimension_numbers = #tpu.dot_dimension_numbers<[1], [0], [0], [1], [0, 0, 1, 1], [], []>} : vector<8x352xbf16>, vector<352x176xbf16>, vector<8x176xf32> -> vector<8x176xf32>
    %c1_109 = arith.constant 1 : index
    %c0_110 = arith.constant 0 : index
    %c0_111 = arith.constant 0 : index
    %172 = vector.load %arg23[%c1_109, %c0_110, %c0_111] : memref<2x352x176xbf16, #tpu.memory_space<vmem>>, vector<1x352x176xbf16>
    %173 = vector.shape_cast %172 : vector<1x352x176xbf16> to vector<352x176xbf16>
    %cst_112 = arith.constant dense<0.000000e+00> : vector<8x176xf32>
    %174 = tpu.matmul %168, %173, %cst_112 {dimension_numbers = #tpu.dot_dimension_numbers<[1], [0], [0], [1], [0, 0, 1, 1], [], []>} : vector<8x352xbf16>, vector<352x176xbf16>, vector<8x176xf32> -> vector<8x176xf32>
    %175 = arith.maximumf %171, %174 : vector<8x176xf32>
    %c2_i32_113 = arith.constant 2 : i32
    %176 = tpu.memref_slice %arg25[%c2_i32_113] : memref<3x!tpu.dma_semaphore, #tpu.memory_space<semaphore_mem>> -> memref<1x!tpu.dma_semaphore, #tpu.memory_space<semaphore_mem>>
    %177 = tpu.memref_squeeze %176 : memref<1x!tpu.dma_semaphore, #tpu.memory_space<semaphore_mem>> -> memref<!tpu.dma_semaphore, #tpu.memory_space<semaphore_mem>>
    tpu.wait_dma2 semaphore(%177 : memref<!tpu.dma_semaphore, #tpu.memory_space<semaphore_mem>>) src(%arg15 : memref<4x176x120xbf16, #tpu.memory_space<any>>) dst(%arg24 : memref<4x176x120xbf16, #tpu.memory_space<vmem>>)
    %178 = vector.extract_strided_slice %175 {offsets = [0, 0], sizes = [2, 176], strides = [1, 1]} : vector<8x176xf32> to vector<2x176xf32>
    %179 = arith.truncf %178 : vector<2x176xf32> to vector<2x176xbf16>
    %c0_114 = arith.constant 0 : index
    %c0_115 = arith.constant 0 : index
    %c0_116 = arith.constant 0 : index
    %180 = vector.load %arg24[%c0_114, %c0_115, %c0_116] : memref<4x176x120xbf16, #tpu.memory_space<vmem>>, vector<1x176x120xbf16>
    %181 = vector.shape_cast %180 : vector<1x176x120xbf16> to vector<176x120xbf16>
    %cst_117 = arith.constant dense<0.000000e+00> : vector<2x120xf32>
    %182 = tpu.matmul %179, %181, %cst_117 {dimension_numbers = #tpu.dot_dimension_numbers<[1], [0], [0], [1], [0, 0, 1, 1], [], []>} : vector<2x176xbf16>, vector<176x120xbf16>, vector<2x120xf32> -> vector<2x120xf32>
    %183 = vector.extract_strided_slice %175 {offsets = [2, 0], sizes = [2, 176], strides = [1, 1]} : vector<8x176xf32> to vector<2x176xf32>
    %184 = arith.truncf %183 : vector<2x176xf32> to vector<2x176xbf16>
    %c1_118 = arith.constant 1 : index
    %c0_119 = arith.constant 0 : index
    %c0_120 = arith.constant 0 : index
    %185 = vector.load %arg24[%c1_118, %c0_119, %c0_120] : memref<4x176x120xbf16, #tpu.memory_space<vmem>>, vector<1x176x120xbf16>
    %186 = vector.shape_cast %185 : vector<1x176x120xbf16> to vector<176x120xbf16>
    %cst_121 = arith.constant dense<0.000000e+00> : vector<2x120xf32>
    %187 = tpu.matmul %184, %186, %cst_121 {dimension_numbers = #tpu.dot_dimension_numbers<[1], [0], [0], [1], [0, 0, 1, 1], [], []>} : vector<2x176xbf16>, vector<176x120xbf16>, vector<2x120xf32> -> vector<2x120xf32>
    %188 = arith.addf %182, %187 : vector<2x120xf32>
    %189 = vector.extract_strided_slice %175 {offsets = [4, 0], sizes = [2, 176], strides = [1, 1]} : vector<8x176xf32> to vector<2x176xf32>
    %190 = arith.truncf %189 : vector<2x176xf32> to vector<2x176xbf16>
    %c2_122 = arith.constant 2 : index
    %c0_123 = arith.constant 0 : index
    %c0_124 = arith.constant 0 : index
    %191 = vector.load %arg24[%c2_122, %c0_123, %c0_124] : memref<4x176x120xbf16, #tpu.memory_space<vmem>>, vector<1x176x120xbf16>
    %192 = vector.shape_cast %191 : vector<1x176x120xbf16> to vector<176x120xbf16>
    %cst_125 = arith.constant dense<0.000000e+00> : vector<2x120xf32>
    %193 = tpu.matmul %190, %192, %cst_125 {dimension_numbers = #tpu.dot_dimension_numbers<[1], [0], [0], [1], [0, 0, 1, 1], [], []>} : vector<2x176xbf16>, vector<176x120xbf16>, vector<2x120xf32> -> vector<2x120xf32>
    %194 = arith.addf %188, %193 : vector<2x120xf32>
    %195 = vector.extract_strided_slice %175 {offsets = [6, 0], sizes = [2, 176], strides = [1, 1]} : vector<8x176xf32> to vector<2x176xf32>
    %196 = arith.truncf %195 : vector<2x176xf32> to vector<2x176xbf16>
    %c3_126 = arith.constant 3 : index
    %c0_127 = arith.constant 0 : index
    %c0_128 = arith.constant 0 : index
    %197 = vector.load %arg24[%c3_126, %c0_127, %c0_128] : memref<4x176x120xbf16, #tpu.memory_space<vmem>>, vector<1x176x120xbf16>
    %198 = vector.shape_cast %197 : vector<1x176x120xbf16> to vector<176x120xbf16>
    %cst_129 = arith.constant dense<0.000000e+00> : vector<2x120xf32>
    %199 = tpu.matmul %196, %198, %cst_129 {dimension_numbers = #tpu.dot_dimension_numbers<[1], [0], [0], [1], [0, 0, 1, 1], [], []>} : vector<2x176xbf16>, vector<176x120xbf16>, vector<2x120xf32> -> vector<2x120xf32>
    %200 = arith.addf %194, %199 : vector<2x120xf32>
    %c0_130 = arith.constant 0 : index
    %c0_131 = arith.constant 0 : index
    %201 = vector.load %arg16[%c0_130, %c0_131] : memref<1x120xf32, #tpu.memory_space<vmem>>, vector<1x120xf32>
    %202 = vector.broadcast %201 : vector<1x120xf32> to vector<2x120xf32>
    %203 = arith.addf %200, %202 : vector<2x120xf32>
    %cst_132 = arith.constant 0.000000e+00 : f32
    %204 = vector.broadcast %cst_132 : f32 to vector<2x120xf32>
    %205 = arith.maximumf %203, %204 : vector<2x120xf32>
    %206 = arith.truncf %205 : vector<2x120xf32> to vector<2x120xbf16>
    %c0_133 = arith.constant 0 : index
    %c0_134 = arith.constant 0 : index
    %207 = vector.load %arg17[%c0_133, %c0_134] : memref<120x84xbf16, #tpu.memory_space<vmem>>, vector<120x84xbf16>
    %cst_135 = arith.constant dense<0.000000e+00> : vector<2x84xf32>
    %208 = tpu.matmul %206, %207, %cst_135 {dimension_numbers = #tpu.dot_dimension_numbers<[1], [0], [0], [1], [0, 0, 1, 1], [], []>} : vector<2x120xbf16>, vector<120x84xbf16>, vector<2x84xf32> -> vector<2x84xf32>
    %c0_136 = arith.constant 0 : index
    %c0_137 = arith.constant 0 : index
    %209 = vector.load %arg18[%c0_136, %c0_137] : memref<1x84xf32, #tpu.memory_space<vmem>>, vector<1x84xf32>
    %210 = vector.broadcast %209 : vector<1x84xf32> to vector<2x84xf32>
    %211 = arith.addf %208, %210 : vector<2x84xf32>
    %cst_138 = arith.constant 0.000000e+00 : f32
    %212 = vector.broadcast %cst_138 : f32 to vector<2x84xf32>
    %213 = arith.maximumf %211, %212 : vector<2x84xf32>
    %214 = arith.truncf %213 : vector<2x84xf32> to vector<2x84xbf16>
    %c0_139 = arith.constant 0 : index
    %c0_140 = arith.constant 0 : index
    %215 = vector.load %arg19[%c0_139, %c0_140] : memref<84x10xbf16, #tpu.memory_space<vmem>>, vector<84x10xbf16>
    %cst_141 = arith.constant dense<0.000000e+00> : vector<2x10xf32>
    %216 = tpu.matmul %214, %215, %cst_141 {dimension_numbers = #tpu.dot_dimension_numbers<[1], [0], [0], [1], [0, 0, 1, 1], [], []>} : vector<2x84xbf16>, vector<84x10xbf16>, vector<2x10xf32> -> vector<2x10xf32>
    %c0_142 = arith.constant 0 : index
    %c0_143 = arith.constant 0 : index
    %217 = vector.load %arg20[%c0_142, %c0_143] : memref<1x10xf32, #tpu.memory_space<vmem>>, vector<1x10xf32>
    %218 = vector.broadcast %217 : vector<1x10xf32> to vector<2x10xf32>
    %219 = arith.addf %216, %218 : vector<2x10xf32>
    %c0_144 = arith.constant 0 : index
    %c0_145 = arith.constant 0 : index
    %220 = vector.load %arg21[%c0_144, %c0_145] : memref<2x10xf32, #tpu.memory_space<vmem>>, vector<2x10xf32>
    tpu.vector_store %arg21[%c0_144, %c0_145], %219 {strides = array<i32>} : memref<2x10xf32, #tpu.memory_space<vmem>>, vector<2x10xf32>,
    return
  }
}

</mosaic_0001>

<bundles_post_ra>
// kernel: lenet5_forward.1
= control target key start
LH: loop header
LB: loop body
LE: loop exit
PB: predicated region body
PF: predicated region fallthrough
CT: control target
= control target key end

     0   :  { %s11303_s0 = inlined_call_operand.vmem [shape: bf16[5,48,56], index: 0, kind: input, shape index: {}]   ;;  %s11304_s1 = inlined_call_operand.vmem [shape: bf16[5,56,312], index: 1, kind: input, shape index: {}]   ;;  %s11305_s2 = inlined_call_operand.vmem [shape: bf16[2,24,48], index: 2, kind: input, shape index: {}]   ;;  %s11306_s3 = inlined_call_operand.vmem [shape: bf16[2,312,156], index: 3, kind: input, shape index: {}]   ;;  %s11307_s4 = inlined_call_operand.vmem [shape: f32[312,6], index: 4, kind: input, shape index: {}]   ;;  %s11308_s5 = inlined_call_operand.vmem [shape: f32[6,312], index: 5, kind: input, shape index: {}]   ;;  %s11309_s6 = inlined_call_operand.vmem [shape: f32[1,6], index: 6, kind: input, shape index: {}]   ;;  %s11310_s7 = inlined_call_operand.vmem [shape: f32[1,6], index: 7, kind: input, shape index: {}]   ;;  %s11311_s8 = inlined_call_operand.vmem [shape: bf16[5,156,352], index: 8, kind: input, shape index: {}]   ;;  %s11312_s9 = inlined_call_operand.vmem [shape: bf16[2,8,16], index: 9, kind: input, shape index: {}]   ;;  %s11313_s10 = inlined_call_operand.vmem [shape: f32[352,16], index: 10, kind: input, shape index: {}]   ;;  %s11314_s11 = inlined_call_operand.vmem [shape: f32[16,352], index: 11, kind: input, shape index: {}]   ;;  %s11315_s12 = inlined_call_operand.vmem [shape: f32[1,16], index: 12, kind: input, shape index: {}]   ;;  %s11316_s13 = inlined_call_operand.vmem [shape: f32[1,16], index: 13, kind: input, shape index: {}]   ;;  %s11317_s14 = inlined_call_operand.vmem [shape: bf16[2,352,176], index: 14, kind: input, shape index: {}]   ;;  %s11318_s15 = inlined_call_operand.vmem [shape: bf16[4,176,120], index: 15, kind: input, shape index: {}]   ;;  %s11319_s16 = inlined_call_operand.vmem [shape: f32[1,120], index: 16, kind: input, shape index: {}]   ;;  %s11320_s17 = inlined_call_operand.vmem [shape: bf16[120,84], index: 17, kind: input, shape index: {}]   ;;  %s11321_s18 = inlined_call_operand.vmem [shape: f32[1,84], index: 18, kind: input, shape index: {}]   ;;  %s11322_s19 = inlined_call_operand.vmem [shape: bf16[84,10], index: 19, kind: input, shape index: {}]   ;;  %s11323_s20 = inlined_call_operand.vmem [shape: f32[1,10], index: 20, kind: input, shape index: {}]   ;;  %s11324_s21 = inlined_call_operand.hbm [shape: f32[2,10], index: 21, kind: output, shape index: {}]  }
   0x1   :  { %11337 = sst [smem:[#allocation43_spill]] %s11303_s0 }
   0x2   :  { %11338 = sst [smem:[#allocation44_spill]] %s11304_s1 }
   0x3   :  { %11339 = sst [smem:[#allocation45_spill]] %s11305_s2 }
   0x4   :  { %11340 = sst [smem:[#allocation46_spill]] %s11306_s3 }
   0x5   :  { %11341 = sst [smem:[#allocation47_spill]] %s11307_s4 }
   0x6   :  { %11342 = sst [smem:[#allocation48_spill]] %s11308_s5 }
   0x7   :  { %26 = vsyncpa [#allocation7], 0  ;;  %v96_v0 = vld [vmem:[%s11311_s8] sm:$0xff]  ;;  %v98_v1 = vld [vmem:[%s11311_s8 + $0x8] sm:$0xff] }
   0x8   :  { %97 = vst [vmem:[#allocation2] sm:$0xff] %v96_v0  ;;  %99 = vst [vmem:[#allocation2 + $0x8] sm:$0xff] %v98_v1  ;;  %v100_v2 = vld [vmem:[%s11311_s8 + $0x10] sm:$0xff]  ;;  %v102_v3 = vld [vmem:[%s11311_s8 + $0x18] sm:$0xff] }
   0x9   :  { %v104_v4 = vld [vmem:[%s11311_s8 + $0x20] sm:$0xff]  ;;  %101 = vst [vmem:[#allocation2 + $0x10] sm:$0xff] %v100_v2  ;;  %103 = vst [vmem:[#allocation2 + $0x18] sm:$0xff] %v102_v3  ;;  %v106_v5 = vld [vmem:[%s11311_s8 + $0x28] sm:$0xff] }
   0xa   :  { %105 = vst [vmem:[#allocation2 + $0x20] sm:$0xff] %v104_v4  ;;  %v108_v6 = vld [vmem:[%s11311_s8 + $0x30] sm:$0xff]  ;;  %v110_v7 = vld [vmem:[%s11311_s8 + $0x38] sm:$0xff]  ;;  %107 = vst [vmem:[#allocation2 + $0x28] sm:$0xff] %v106_v5 }
   0xb   :  { %109 = vst [vmem:[#allocation2 + $0x30] sm:$0xff] %v108_v6  ;;  %111 = vst [vmem:[#allocation2 + $0x38] sm:$0xff] %v110_v7  ;;  %v112_v8 = vld [vmem:[%s11311_s8 + $0x40] sm:$0xff]  ;;  %v114_v9 = vld [vmem:[%s11311_s8 + $0x48] sm:$0xff] }
   0xc   :  { %v116_v10 = vld [vmem:[%s11311_s8 + $0x50] sm:$0xff]  ;;  %113 = vst [vmem:[#allocation2 + $0x40] sm:$0xff] %v112_v8  ;;  %115 = vst [vmem:[#allocation2 + $0x48] sm:$0xff] %v114_v9  ;;  %v118_v11 = vld [vmem:[%s11311_s8 + $0x58] sm:$0xff] }
   0xd   :  { %117 = vst [vmem:[#allocation2 + $0x50] sm:$0xff] %v116_v10  ;;  %v120_v12 = vld [vmem:[%s11311_s8 + $0x60] sm:$0xff]  ;;  %v122_v13 = vld [vmem:[%s11311_s8 + $0x68] sm:$0xff]  ;;  %119 = vst [vmem:[#allocation2 + $0x58] sm:$0xff] %v118_v11 }
   0xe   :  { %121 = vst [vmem:[#allocation2 + $0x60] sm:$0xff] %v120_v12  ;;  %123 = vst [vmem:[#allocation2 + $0x68] sm:$0xff] %v122_v13  ;;  %v124_v14 = vld [vmem:[%s11311_s8 + $0x70] sm:$0xff]  ;;  %v126_v15 = vld [vmem:[%s11311_s8 + $0x78] sm:$0xff] }
   0xf   :  { %v128_v16 = vld [vmem:[%s11311_s8 + $0x80] sm:$0xff]  ;;  %125 = vst [vmem:[#allocation2 + $0x70] sm:$0xff] %v124_v14  ;;  %127 = vst [vmem:[#allocation2 + $0x78] sm:$0xff] %v126_v15  ;;  %v130_v17 = vld [vmem:[%s11311_s8 + $0x88] sm:$0xff] }
  0x10   :  { %129 = vst [vmem:[#allocation2 + $0x80] sm:$0xff] %v128_v16  ;;  %v132_v18 = vld [vmem:[%s11311_s8 + $0x90] sm:$0xff]  ;;  %v134_v19 = vld [vmem:[%s11311_s8 + $0x98] sm:$0xff]  ;;  %131 = vst [vmem:[#allocation2 + $0x88] sm:$0xff] %v130_v17 }
  0x11   :  { %133 = vst [vmem:[#allocation2 + $0x90] sm:$0xff] %v132_v18  ;;  %135 = vst [vmem:[#allocation2 + $0x98] sm:$0xff] %v134_v19  ;;  %v136_v20 = vld [vmem:[%s11311_s8 + $0xa0] sm:$0xff]  ;;  %v138_v21 = vld [vmem:[%s11311_s8 + $0xa8] sm:$0xff] }
  0x12   :  { %v140_v22 = vld [vmem:[%s11311_s8 + $0xb0] sm:$0xff]  ;;  %137 = vst [vmem:[#allocation2 + $0xa0] sm:$0xff] %v136_v20  ;;  %139 = vst [vmem:[#allocation2 + $0xa8] sm:$0xff] %v138_v21  ;;  %v142_v23 = vld [vmem:[%s11311_s8 + $0xb8] sm:$0xff] }
  0x13   :  { %141 = vst [vmem:[#allocation2 + $0xb0] sm:$0xff] %v140_v22  ;;  %v144_v24 = vld [vmem:[%s11311_s8 + $0xc0] sm:$0xff]  ;;  %v146_v25 = vld [vmem:[%s11311_s8 + $0xc8] sm:$0xff]  ;;  %143 = vst [vmem:[#allocation2 + $0xb8] sm:$0xff] %v142_v23 }
  0x14   :  { %145 = vst [vmem:[#allocation2 + $0xc0] sm:$0xff] %v144_v24  ;;  %147 = vst [vmem:[#allocation2 + $0xc8] sm:$0xff] %v146_v25  ;;  %v148_v26 = vld [vmem:[%s11311_s8 + $0xd0] sm:$0xff]  ;;  %v150_v27 = vld [vmem:[%s11311_s8 + $0xd8] sm:$0xff] }
  0x15   :  { %v152_v28 = vld [vmem:[%s11311_s8 + $0xe0] sm:$0xff]  ;;  %149 = vst [vmem:[#allocation2 + $0xd0] sm:$0xff] %v148_v26  ;;  %151 = vst [vmem:[#allocation2 + $0xd8] sm:$0xff] %v150_v27  ;;  %v154_v29 = vld [vmem:[%s11311_s8 + $0xe8] sm:$0xff] }
  0x16   :  { %153 = vst [vmem:[#allocation2 + $0xe0] sm:$0xff] %v152_v28  ;;  %v156_v30 = vld [vmem:[%s11311_s8 + $0xf0] sm:$0xff]  ;;  %v158_v31 = vld [vmem:[%s11311_s8 + $0xf8] sm:$0xff]  ;;  %155 = vst [vmem:[#allocation2 + $0xe8] sm:$0xff] %v154_v29 }
  0x17   :  { %157 = vst [vmem:[#allocation2 + $0xf0] sm:$0xff] %v156_v30  ;;  %159 = vst [vmem:[#allocation2 + $0xf8] sm:$0xff] %v158_v31  ;;  %v160_v32 = vld [vmem:[%s11311_s8 + $0x100] sm:$0xff]  ;;  %v162_v33 = vld [vmem:[%s11311_s8 + $0x108] sm:$0xff] }
  0x18   :  { %v164_v34 = vld [vmem:[%s11311_s8 + $0x110] sm:$0xff]  ;;  %161 = vst [vmem:[#allocation2 + $0x100] sm:$0xff] %v160_v32  ;;  %163 = vst [vmem:[#allocation2 + $0x108] sm:$0xff] %v162_v33  ;;  %v166_v35 = vld [vmem:[%s11311_s8 + $0x118] sm:$0xff] }
  0x19   :  { %165 = vst [vmem:[#allocation2 + $0x110] sm:$0xff] %v164_v34  ;;  %v168_v36 = vld [vmem:[%s11311_s8 + $0x120] sm:$0xff]  ;;  %v170_v37 = vld [vmem:[%s11311_s8 + $0x128] sm:$0xff]  ;;  %167 = vst [vmem:[#allocation2 + $0x118] sm:$0xff] %v166_v35 }
  0x1a   :  { %169 = vst [vmem:[#allocation2 + $0x120] sm:$0xff] %v168_v36  ;;  %171 = vst [vmem:[#allocation2 + $0x128] sm:$0xff] %v170_v37  ;;  %v172_v38 = vld [vmem:[%s11311_s8 + $0x130] sm:$0xff]  ;;  %v174_v39 = vld [vmem:[%s11311_s8 + $0x138] sm:$0xff] }
  0x1b   :  { %v176_v40 = vld [vmem:[%s11311_s8 + $0x140] sm:$0xff]  ;;  %173 = vst [vmem:[#allocation2 + $0x130] sm:$0xff] %v172_v38  ;;  %175 = vst [vmem:[#allocation2 + $0x138] sm:$0xff] %v174_v39  ;;  %v178_v41 = vld [vmem:[%s11311_s8 + $0x148] sm:$0xff] }
  0x1c   :  { %177 = vst [vmem:[#allocation2 + $0x140] sm:$0xff] %v176_v40  ;;  %v180_v42 = vld [vmem:[%s11311_s8 + $0x150] sm:$0xff]  ;;  %v182_v43 = vld [vmem:[%s11311_s8 + $0x158] sm:$0xff]  ;;  %179 = vst [vmem:[#allocation2 + $0x148] sm:$0xff] %v178_v41 }
  0x1d   :  { %181 = vst [vmem:[#allocation2 + $0x150] sm:$0xff] %v180_v42  ;;  %183 = vst [vmem:[#allocation2 + $0x158] sm:$0xff] %v182_v43  ;;  %v184_v44 = vld [vmem:[%s11311_s8 + $0x160] sm:$0xff]  ;;  %v186_v45 = vld [vmem:[%s11311_s8 + $0x168] sm:$0xff] }
  0x1e   :  { %v188_v46 = vld [vmem:[%s11311_s8 + $0x170] sm:$0xff]  ;;  %185 = vst [vmem:[#allocation2 + $0x160] sm:$0xff] %v184_v44  ;;  %187 = vst [vmem:[#allocation2 + $0x168] sm:$0xff] %v186_v45  ;;  %v190_v47 = vld [vmem:[%s11311_s8 + $0x178] sm:$0xff] }
  0x1f   :  { %189 = vst [vmem:[#allocation2 + $0x170] sm:$0xff] %v188_v46  ;;  %v192_v48 = vld [vmem:[%s11311_s8 + $0x180] sm:$0xff]  ;;  %v194_v49 = vld [vmem:[%s11311_s8 + $0x188] sm:$0xff]  ;;  %191 = vst [vmem:[#allocation2 + $0x178] sm:$0xff] %v190_v47 }
  0x20   :  { %193 = vst [vmem:[#allocation2 + $0x180] sm:$0xff] %v192_v48  ;;  %195 = vst [vmem:[#allocation2 + $0x188] sm:$0xff] %v194_v49  ;;  %v196_v50 = vld [vmem:[%s11311_s8 + $0x190] sm:$0xff]  ;;  %v198_v51 = vld [vmem:[%s11311_s8 + $0x198] sm:$0xff] }
  0x21   :  { %v200_v52 = vld [vmem:[%s11311_s8 + $0x1a0] sm:$0xff]  ;;  %197 = vst [vmem:[#allocation2 + $0x190] sm:$0xff] %v196_v50  ;;  %199 = vst [vmem:[#allocation2 + $0x198] sm:$0xff] %v198_v51  ;;  %v202_v53 = vld [vmem:[%s11311_s8 + $0x1a8] sm:$0xff] }
  0x22   :  { %201 = vst [vmem:[#allocation2 + $0x1a0] sm:$0xff] %v200_v52  ;;  %v204_v54 = vld [vmem:[%s11311_s8 + $0x1b0] sm:$0xff]  ;;  %v206_v55 = vld [vmem:[%s11311_s8 + $0x1b8] sm:$0xff]  ;;  %203 = vst [vmem:[#allocation2 + $0x1a8] sm:$0xff] %v202_v53 }
  0x23   :  { %205 = vst [vmem:[#allocation2 + $0x1b0] sm:$0xff] %v204_v54  ;;  %207 = vst [vmem:[#allocation2 + $0x1b8] sm:$0xff] %v206_v55  ;;  %v208_v56 = vld [vmem:[%s11311_s8 + $0x1c0] sm:$0xff]  ;;  %v210_v57 = vld [vmem:[%s11311_s8 + $0x1c8] sm:$0xff] }
  0x24   :  { %v212_v58 = vld [vmem:[%s11311_s8 + $0x1d0] sm:$0xff]  ;;  %209 = vst [vmem:[#allocation2 + $0x1c0] sm:$0xff] %v208_v56  ;;  %211 = vst [vmem:[#allocation2 + $0x1c8] sm:$0xff] %v210_v57  ;;  %v214_v59 = vld [vmem:[%s11311_s8 + $0x1d8] sm:$0xff] }
  0x25   :  { %213 = vst [vmem:[#allocation2 + $0x1d0] sm:$0xff] %v212_v58  ;;  %v216_v60 = vld [vmem:[%s11311_s8 + $0x1e0] sm:$0xff]  ;;  %v218_v61 = vld [vmem:[%s11311_s8 + $0x1e8] sm:$0xff]  ;;  %215 = vst [vmem:[#allocation2 + $0x1d8] sm:$0xff] %v214_v59 }
  0x26   :  { %217 = vst [vmem:[#allocation2 + $0x1e0] sm:$0xff] %v216_v60  ;;  %219 = vst [vmem:[#allocation2 + $0x1e8] sm:$0xff] %v218_v61  ;;  %v220_v62 = vld [vmem:[%s11311_s8 + $0x1f0] sm:$0xff]  ;;  %v222_v63 = vld [vmem:[%s11311_s8 + $0x1f8] sm:$0xff] }
  0x27   :  { %v224_v0 = vld [vmem:[%s11311_s8 + $0x200] sm:$0xff]  ;;  %221 = vst [vmem:[#allocation2 + $0x1f0] sm:$0xff] %v220_v62  ;;  %223 = vst [vmem:[#allocation2 + $0x1f8] sm:$0xff] %v222_v63  ;;  %v226_v1 = vld [vmem:[%s11311_s8 + $0x208] sm:$0xff] }
  0x28   :  { %225 = vst [vmem:[#allocation2 + $0x200] sm:$0xff] %v224_v0  ;;  %v228_v2 = vld [vmem:[%s11311_s8 + $0x210] sm:$0xff]  ;;  %v230_v3 = vld [vmem:[%s11311_s8 + $0x218] sm:$0xff]  ;;  %227 = vst [vmem:[#allocation2 + $0x208] sm:$0xff] %v226_v1 }
  0x29   :  { %229 = vst [vmem:[#allocation2 + $0x210] sm:$0xff] %v228_v2  ;;  %231 = vst [vmem:[#allocation2 + $0x218] sm:$0xff] %v230_v3  ;;  %v232_v4 = vld [vmem:[%s11311_s8 + $0x220] sm:$0xff]  ;;  %v234_v5 = vld [vmem:[%s11311_s8 + $0x228] sm:$0xff] }
  0x2a   :  { %v236_v6 = vld [vmem:[%s11311_s8 + $0x230] sm:$0xff]  ;;  %233 = vst [vmem:[#allocation2 + $0x220] sm:$0xff] %v232_v4  ;;  %235 = vst [vmem:[#allocation2 + $0x228] sm:$0xff] %v234_v5  ;;  %v238_v7 = vld [vmem:[%s11311_s8 + $0x238] sm:$0xff] }
  0x2b   :  { %237 = vst [vmem:[#allocation2 + $0x230] sm:$0xff] %v236_v6  ;;  %v240_v8 = vld [vmem:[%s11311_s8 + $0x240] sm:$0xff]  ;;  %v242_v9 = vld [vmem:[%s11311_s8 + $0x248] sm:$0xff]  ;;  %239 = vst [vmem:[#allocation2 + $0x238] sm:$0xff] %v238_v7 }
  0x2c   :  { %241 = vst [vmem:[#allocation2 + $0x240] sm:$0xff] %v240_v8  ;;  %243 = vst [vmem:[#allocation2 + $0x248] sm:$0xff] %v242_v9  ;;  %v244_v10 = vld [vmem:[%s11311_s8 + $0x250] sm:$0xff]  ;;  %v246_v11 = vld [vmem:[%s11311_s8 + $0x258] sm:$0xff] }
  0x2d   :  { %v248_v12 = vld [vmem:[%s11311_s8 + $0x260] sm:$0xff]  ;;  %245 = vst [vmem:[#allocation2 + $0x250] sm:$0xff] %v244_v10  ;;  %247 = vst [vmem:[#allocation2 + $0x258] sm:$0xff] %v246_v11  ;;  %v250_v13 = vld [vmem:[%s11311_s8 + $0x268] sm:$0xff] }
  0x2e   :  { %249 = vst [vmem:[#allocation2 + $0x260] sm:$0xff] %v248_v12  ;;  %v252_v14 = vld [vmem:[%s11311_s8 + $0x270] sm:$0xff]  ;;  %v254_v15 = vld [vmem:[%s11311_s8 + $0x278] sm:$0xff]  ;;  %251 = vst [vmem:[#allocation2 + $0x268] sm:$0xff] %v250_v13 }
  0x2f   :  { %253 = vst [vmem:[#allocation2 + $0x270] sm:$0xff] %v252_v14  ;;  %255 = vst [vmem:[#allocation2 + $0x278] sm:$0xff] %v254_v15  ;;  %v256_v16 = vld [vmem:[%s11311_s8 + $0x280] sm:$0xff]  ;;  %v258_v17 = vld [vmem:[%s11311_s8 + $0x288] sm:$0xff] }
  0x30   :  { %v260_v18 = vld [vmem:[%s11311_s8 + $0x290] sm:$0xff]  ;;  %257 = vst [vmem:[#allocation2 + $0x280] sm:$0xff] %v256_v16  ;;  %259 = vst [vmem:[#allocation2 + $0x288] sm:$0xff] %v258_v17  ;;  %v262_v19 = vld [vmem:[%s11311_s8 + $0x298] sm:$0xff] }
  0x31   :  { %261 = vst [vmem:[#allocation2 + $0x290] sm:$0xff] %v260_v18  ;;  %v264_v20 = vld [vmem:[%s11311_s8 + $0x2a0] sm:$0xff]  ;;  %v266_v21 = vld [vmem:[%s11311_s8 + $0x2a8] sm:$0xff]  ;;  %263 = vst [vmem:[#allocation2 + $0x298] sm:$0xff] %v262_v19 }
  0x32   :  { %265 = vst [vmem:[#allocation2 + $0x2a0] sm:$0xff] %v264_v20  ;;  %267 = vst [vmem:[#allocation2 + $0x2a8] sm:$0xff] %v266_v21  ;;  %v268_v22 = vld [vmem:[%s11311_s8 + $0x2b0] sm:$0xff]  ;;  %v270_v23 = vld [vmem:[%s11311_s8 + $0x2b8] sm:$0xff] }
  0x33   :  { %v272_v24 = vld [vmem:[%s11311_s8 + $0x2c0] sm:$0xff]  ;;  %269 = vst [vmem:[#allocation2 + $0x2b0] sm:$0xff] %v268_v22  ;;  %271 = vst [vmem:[#allocation2 + $0x2b8] sm:$0xff] %v270_v23  ;;  %v274_v25 = vld [vmem:[%s11311_s8 + $0x2c8] sm:$0xff] }
  0x34   :  { %273 = vst [vmem:[#allocation2 + $0x2c0] sm:$0xff] %v272_v24  ;;  %v276_v26 = vld [vmem:[%s11311_s8 + $0x2d0] sm:$0xff]  ;;  %v278_v27 = vld [vmem:[%s11311_s8 + $0x2d8] sm:$0xff]  ;;  %275 = vst [vmem:[#allocation2 + $0x2c8] sm:$0xff] %v274_v25 }
  0x35   :  { %277 = vst [vmem:[#allocation2 + $0x2d0] sm:$0xff] %v276_v26  ;;  %279 = vst [vmem:[#allocation2 + $0x2d8] sm:$0xff] %v278_v27  ;;  %v280_v28 = vld [vmem:[%s11311_s8 + $0x2e0] sm:$0xff]  ;;  %v282_v29 = vld [vmem:[%s11311_s8 + $0x2e8] sm:$0xff] }
  0x36   :  { %v284_v30 = vld [vmem:[%s11311_s8 + $0x2f0] sm:$0xff]  ;;  %281 = vst [vmem:[#allocation2 + $0x2e0] sm:$0xff] %v280_v28  ;;  %283 = vst [vmem:[#allocation2 + $0x2e8] sm:$0xff] %v282_v29  ;;  %v286_v31 = vld [vmem:[%s11311_s8 + $0x2f8] sm:$0xff] }
  0x37   :  { %285 = vst [vmem:[#allocation2 + $0x2f0] sm:$0xff] %v284_v30  ;;  %v288_v32 = vld [vmem:[%s11311_s8 + $0x300] sm:$0xff]  ;;  %v290_v33 = vld [vmem:[%s11311_s8 + $0x308] sm:$0xff]  ;;  %287 = vst [vmem:[#allocation2 + $0x2f8] sm:$0xff] %v286_v31 }
  0x38   :  { %289 = vst [vmem:[#allocation2 + $0x300] sm:$0xff] %v288_v32  ;;  %291 = vst [vmem:[#allocation2 + $0x308] sm:$0xff] %v290_v33  ;;  %v292_v34 = vld [vmem:[%s11311_s8 + $0x310] sm:$0xff]  ;;  %v294_v35 = vld [vmem:[%s11311_s8 + $0x318] sm:$0xff] }
  0x39   :  { %v296_v36 = vld [vmem:[%s11311_s8 + $0x320] sm:$0xff]  ;;  %293 = vst [vmem:[#allocation2 + $0x310] sm:$0xff] %v292_v34  ;;  %295 = vst [vmem:[#allocation2 + $0x318] sm:$0xff] %v294_v35  ;;  %v298_v37 = vld [vmem:[%s11311_s8 + $0x328] sm:$0xff] }
  0x3a   :  { %297 = vst [vmem:[#allocation2 + $0x320] sm:$0xff] %v296_v36  ;;  %v300_v38 = vld [vmem:[%s11311_s8 + $0x330] sm:$0xff]  ;;  %v302_v39 = vld [vmem:[%s11311_s8 + $0x338] sm:$0xff]  ;;  %299 = vst [vmem:[#allocation2 + $0x328] sm:$0xff] %v298_v37 }
  0x3b   :  { %301 = vst [vmem:[#allocation2 + $0x330] sm:$0xff] %v300_v38  ;;  %303 = vst [vmem:[#allocation2 + $0x338] sm:$0xff] %v302_v39  ;;  %v304_v40 = vld [vmem:[%s11311_s8 + $0x340] sm:$0xff]  ;;  %v306_v41 = vld [vmem:[%s11311_s8 + $0x348] sm:$0xff] }
  0x3c   :  { %v308_v42 = vld [vmem:[%s11311_s8 + $0x350] sm:$0xff]  ;;  %305 = vst [vmem:[#allocation2 + $0x340] sm:$0xff] %v304_v40  ;;  %307 = vst [vmem:[#allocation2 + $0x348] sm:$0xff] %v306_v41  ;;  %v310_v43 = vld [vmem:[%s11311_s8 + $0x358] sm:$0xff] }
  0x3d   :  { %309 = vst [vmem:[#allocation2 + $0x350] sm:$0xff] %v308_v42  ;;  %v312_v44 = vld [vmem:[%s11311_s8 + $0x360] sm:$0xff]  ;;  %v314_v45 = vld [vmem:[%s11311_s8 + $0x368] sm:$0xff]  ;;  %311 = vst [vmem:[#allocation2 + $0x358] sm:$0xff] %v310_v43 }
  0x3e   :  { %313 = vst [vmem:[#allocation2 + $0x360] sm:$0xff] %v312_v44  ;;  %315 = vst [vmem:[#allocation2 + $0x368] sm:$0xff] %v314_v45  ;;  %v316_v46 = vld [vmem:[%s11311_s8 + $0x370] sm:$0xff]  ;;  %v318_v47 = vld [vmem:[%s11311_s8 + $0x378] sm:$0xff] }
  0x3f   :  { %v320_v48 = vld [vmem:[%s11311_s8 + $0x380] sm:$0xff]  ;;  %317 = vst [vmem:[#allocation2 + $0x370] sm:$0xff] %v316_v46  ;;  %319 = vst [vmem:[#allocation2 + $0x378] sm:$0xff] %v318_v47  ;;  %v322_v49 = vld [vmem:[%s11311_s8 + $0x388] sm:$0xff] }
  0x40   :  { %321 = vst [vmem:[#allocation2 + $0x380] sm:$0xff] %v320_v48  ;;  %v324_v50 = vld [vmem:[%s11311_s8 + $0x390] sm:$0xff]  ;;  %v326_v51 = vld [vmem:[%s11311_s8 + $0x398] sm:$0xff]  ;;  %323 = vst [vmem:[#allocation2 + $0x388] sm:$0xff] %v322_v49 }
  0x41   :  { %325 = vst [vmem:[#allocation2 + $0x390] sm:$0xff] %v324_v50  ;;  %327 = vst [vmem:[#allocation2 + $0x398] sm:$0xff] %v326_v51  ;;  %v328_v52 = vld [vmem:[%s11311_s8 + $0x3a0] sm:$0xff]  ;;  %v330_v53 = vld [vmem:[%s11311_s8 + $0x3a8] sm:$0xff] }
  0x42   :  { %v332_v54 = vld [vmem:[%s11311_s8 + $0x3b0] sm:$0xff]  ;;  %329 = vst [vmem:[#allocation2 + $0x3a0] sm:$0xff] %v328_v52  ;;  %331 = vst [vmem:[#allocation2 + $0x3a8] sm:$0xff] %v330_v53  ;;  %v334_v55 = vld [vmem:[%s11311_s8 + $0x3b8] sm:$0xff] }
  0x43   :  { %333 = vst [vmem:[#allocation2 + $0x3b0] sm:$0xff] %v332_v54  ;;  %v336_v56 = vld [vmem:[%s11311_s8 + $0x3c0] sm:$0xff]  ;;  %v338_v57 = vld [vmem:[%s11311_s8 + $0x3c8] sm:$0xff]  ;;  %335 = vst [vmem:[#allocation2 + $0x3b8] sm:$0xff] %v334_v55 }
  0x44   :  { %337 = vst [vmem:[#allocation2 + $0x3c0] sm:$0xff] %v336_v56  ;;  %339 = vst [vmem:[#allocation2 + $0x3c8] sm:$0xff] %v338_v57  ;;  %v340_v58 = vld [vmem:[%s11311_s8 + $0x3d0] sm:$0xff]  ;;  %v342_v59 = vld [vmem:[%s11311_s8 + $0x3d8] sm:$0xff] }
  0x45   :  { %v344_v60 = vld [vmem:[%s11311_s8 + $0x3e0] sm:$0xff]  ;;  %341 = vst [vmem:[#allocation2 + $0x3d0] sm:$0xff] %v340_v58  ;;  %343 = vst [vmem:[#allocation2 + $0x3d8] sm:$0xff] %v342_v59  ;;  %v346_v61 = vld [vmem:[%s11311_s8 + $0x3e8] sm:$0xff] }
  0x46   :  { %345 = vst [vmem:[#allocation2 + $0x3e0] sm:$0xff] %v344_v60  ;;  %v348_v62 = vld [vmem:[%s11311_s8 + $0x3f0] sm:$0xff]  ;;  %v350_v63 = vld [vmem:[%s11311_s8 + $0x3f8] sm:$0xff]  ;;  %347 = vst [vmem:[#allocation2 + $0x3e8] sm:$0xff] %v346_v61 }
  0x47   :  { %349 = vst [vmem:[#allocation2 + $0x3f0] sm:$0xff] %v348_v62  ;;  %351 = vst [vmem:[#allocation2 + $0x3f8] sm:$0xff] %v350_v63  ;;  %v352_v0 = vld [vmem:[%s11311_s8 + $0x400] sm:$0xff]  ;;  %v354_v1 = vld [vmem:[%s11311_s8 + $0x408] sm:$0xff] }
  0x48   :  { %v356_v2 = vld [vmem:[%s11311_s8 + $0x410] sm:$0xff]  ;;  %353 = vst [vmem:[#allocation2 + $0x400] sm:$0xff] %v352_v0  ;;  %355 = vst [vmem:[#allocation2 + $0x408] sm:$0xff] %v354_v1  ;;  %v358_v3 = vld [vmem:[%s11311_s8 + $0x418] sm:$0xff] }
  0x49   :  { %357 = vst [vmem:[#allocation2 + $0x410] sm:$0xff] %v356_v2  ;;  %v360_v4 = vld [vmem:[%s11311_s8 + $0x420] sm:$0xff]  ;;  %v362_v5 = vld [vmem:[%s11311_s8 + $0x428] sm:$0xff]  ;;  %359 = vst [vmem:[#allocation2 + $0x418] sm:$0xff] %v358_v3 }
  0x4a   :  { %361 = vst [vmem:[#allocation2 + $0x420] sm:$0xff] %v360_v4  ;;  %363 = vst [vmem:[#allocation2 + $0x428] sm:$0xff] %v362_v5  ;;  %v364_v6 = vld [vmem:[%s11311_s8 + $0x430] sm:$0xff]  ;;  %v366_v7 = vld [vmem:[%s11311_s8 + $0x438] sm:$0xff] }
  0x4b   :  { %v368_v8 = vld [vmem:[%s11311_s8 + $0x440] sm:$0xff]  ;;  %365 = vst [vmem:[#allocation2 + $0x430] sm:$0xff] %v364_v6  ;;  %367 = vst [vmem:[#allocation2 + $0x438] sm:$0xff] %v366_v7  ;;  %v370_v9 = vld [vmem:[%s11311_s8 + $0x448] sm:$0xff] }
  0x4c   :  { %369 = vst [vmem:[#allocation2 + $0x440] sm:$0xff] %v368_v8  ;;  %v372_v10 = vld [vmem:[%s11311_s8 + $0x450] sm:$0xff]  ;;  %v374_v11 = vld [vmem:[%s11311_s8 + $0x458] sm:$0xff]  ;;  %371 = vst [vmem:[#allocation2 + $0x448] sm:$0xff] %v370_v9 }
  0x4d   :  { %373 = vst [vmem:[#allocation2 + $0x450] sm:$0xff] %v372_v10  ;;  %375 = vst [vmem:[#allocation2 + $0x458] sm:$0xff] %v374_v11  ;;  %v376_v12 = vld [vmem:[%s11311_s8 + $0x460] sm:$0xff]  ;;  %v378_v13 = vld [vmem:[%s11311_s8 + $0x468] sm:$0xff] }
  0x4e   :  { %v380_v14 = vld [vmem:[%s11311_s8 + $0x470] sm:$0xff]  ;;  %377 = vst [vmem:[#allocation2 + $0x460] sm:$0xff] %v376_v12  ;;  %379 = vst [vmem:[#allocation2 + $0x468] sm:$0xff] %v378_v13  ;;  %v382_v15 = vld [vmem:[%s11311_s8 + $0x478] sm:$0xff] }
  0x4f   :  { %381 = vst [vmem:[#allocation2 + $0x470] sm:$0xff] %v380_v14  ;;  %v384_v16 = vld [vmem:[%s11311_s8 + $0x480] sm:$0xff]  ;;  %v386_v17 = vld [vmem:[%s11311_s8 + $0x488] sm:$0xff]  ;;  %383 = vst [vmem:[#allocation2 + $0x478] sm:$0xff] %v382_v15 }
  0x50   :  { %385 = vst [vmem:[#allocation2 + $0x480] sm:$0xff] %v384_v16  ;;  %387 = vst [vmem:[#allocation2 + $0x488] sm:$0xff] %v386_v17  ;;  %v388_v18 = vld [vmem:[%s11311_s8 + $0x490] sm:$0xff]  ;;  %v390_v19 = vld [vmem:[%s11311_s8 + $0x498] sm:$0xff] }
  0x51   :  { %v392_v20 = vld [vmem:[%s11311_s8 + $0x4a0] sm:$0xff]  ;;  %389 = vst [vmem:[#allocation2 + $0x490] sm:$0xff] %v388_v18  ;;  %391 = vst [vmem:[#allocation2 + $0x498] sm:$0xff] %v390_v19  ;;  %v394_v21 = vld [vmem:[%s11311_s8 + $0x4a8] sm:$0xff] }
  0x52   :  { %393 = vst [vmem:[#allocation2 + $0x4a0] sm:$0xff] %v392_v20  ;;  %395 = vst [vmem:[#allocation2 + $0x4a8] sm:$0xff] %v394_v21 }
  0x53   :  { %403 = vsyncadd [#allocation5], 19200  ;;  %v422_v22 = vld [vmem:[%s11317_s14] sm:$0xf]  ;;  %v424_v23 = vld [vmem:[%s11317_s14 + $0x8] sm:$0xf] }
  0x54   :  { %423 = vst [vmem:[#allocation3] sm:$0xf] %v422_v22  ;;  %425 = vst [vmem:[#allocation3 + $0x4] sm:$0xf] %v424_v23  ;;  %v426_v24 = vld [vmem:[%s11317_s14 + $0x4] sm:$0xf] }
  0x55   :  { %v428_v25 = vld [vmem:[%s11317_s14 + $0xc] sm:$0xff]   ;;  %v432_v26 = vld [vmem:[%s11317_s14 + $0x18] sm:$0xf]  ;;  %427 = vst [vmem:[#allocation3 + $0x8] sm:$0xf] %v426_v24  ;;  %v436_v28 = vld [vmem:[%s11317_s14 + $0x1c] sm:$0xff]  }
  0x56   :  { %429 = vst [vmem:[#allocation3 + $0xc] sm:$0xff] %v428_v25   ;;  %433 = vst [vmem:[#allocation3 + $0x14] sm:$0xf] %v432_v26  ;;  %v434_v27 = vld [vmem:[%s11317_s14 + $0x14] sm:$0xf]  ;;  %v444_v31 = vld [vmem:[%s11317_s14 + $0x2c] sm:$0xff]  }
  0x57   :  { %v440_v29 = vld [vmem:[%s11317_s14 + $0x28] sm:$0xf]  ;;  %435 = vst [vmem:[#allocation3 + $0x18] sm:$0xf] %v434_v27  ;;  %437 = vst [vmem:[#allocation3 + $0x1c] sm:$0xff] %v436_v28   ;;  %v452_v34 = vld [vmem:[%s11317_s14 + $0x3c] sm:$0xff]  }
  0x58   :  { %441 = vst [vmem:[#allocation3 + $0x24] sm:$0xf] %v440_v29  ;;  %v442_v30 = vld [vmem:[%s11317_s14 + $0x24] sm:$0xf]  ;;  %v448_v32 = vld [vmem:[%s11317_s14 + $0x38] sm:$0xf] }
  0x59   :  { %443 = vst [vmem:[#allocation3 + $0x28] sm:$0xf] %v442_v30  ;;  %445 = vst [vmem:[#allocation3 + $0x2c] sm:$0xff] %v444_v31   ;;  %v450_v33 = vld [vmem:[%s11317_s14 + $0x34] sm:$0xf]  ;;  %v460_v37 = vld [vmem:[%s11317_s14 + $0x4c] sm:$0xff]  }
  0x5a   :  { %449 = vst [vmem:[#allocation3 + $0x34] sm:$0xf] %v448_v32  ;;  %v456_v35 = vld [vmem:[%s11317_s14 + $0x48] sm:$0xf]  ;;  %451 = vst [vmem:[#allocation3 + $0x38] sm:$0xf] %v450_v33 }
  0x5b   :  { %453 = vst [vmem:[#allocation3 + $0x3c] sm:$0xff] %v452_v34   ;;  %457 = vst [vmem:[#allocation3 + $0x44] sm:$0xf] %v456_v35  ;;  %v458_v36 = vld [vmem:[%s11317_s14 + $0x44] sm:$0xf]  ;;  %v468_v40 = vld [vmem:[%s11317_s14 + $0x5c] sm:$0xff]  }
  0x5c   :  { %v464_v38 = vld [vmem:[%s11317_s14 + $0x58] sm:$0xf]  ;;  %459 = vst [vmem:[#allocation3 + $0x48] sm:$0xf] %v458_v36  ;;  %461 = vst [vmem:[#allocation3 + $0x4c] sm:$0xff] %v460_v37   ;;  %v476_v43 = vld [vmem:[%s11317_s14 + $0x6c] sm:$0xff]  }
  0x5d   :  { %465 = vst [vmem:[#allocation3 + $0x54] sm:$0xf] %v464_v38  ;;  %v466_v39 = vld [vmem:[%s11317_s14 + $0x54] sm:$0xf]  ;;  %v472_v41 = vld [vmem:[%s11317_s14 + $0x68] sm:$0xf] }
  0x5e   :  { %467 = vst [vmem:[#allocation3 + $0x58] sm:$0xf] %v466_v39  ;;  %469 = vst [vmem:[#allocation3 + $0x5c] sm:$0xff] %v468_v40   ;;  %v474_v42 = vld [vmem:[%s11317_s14 + $0x64] sm:$0xf]  ;;  %v484_v46 = vld [vmem:[%s11317_s14 + $0x7c] sm:$0xff]  }
  0x5f   :  { %473 = vst [vmem:[#allocation3 + $0x64] sm:$0xf] %v472_v41  ;;  %v480_v44 = vld [vmem:[%s11317_s14 + $0x78] sm:$0xf]  ;;  %475 = vst [vmem:[#allocation3 + $0x68] sm:$0xf] %v474_v42 }
  0x60   :  { %477 = vst [vmem:[#allocation3 + $0x6c] sm:$0xff] %v476_v43   ;;  %481 = vst [vmem:[#allocation3 + $0x74] sm:$0xf] %v480_v44  ;;  %v482_v45 = vld [vmem:[%s11317_s14 + $0x74] sm:$0xf]  ;;  %v492_v49 = vld [vmem:[%s11317_s14 + $0x8c] sm:$0xff]  }
  0x61   :  { %v488_v47 = vld [vmem:[%s11317_s14 + $0x88] sm:$0xf]  ;;  %483 = vst [vmem:[#allocation3 + $0x78] sm:$0xf] %v482_v45  ;;  %485 = vst [vmem:[#allocation3 + $0x7c] sm:$0xff] %v484_v46   ;;  %v500_v52 = vld [vmem:[%s11317_s14 + $0x9c] sm:$0xff]  }
  0x62   :  { %489 = vst [vmem:[#allocation3 + $0x84] sm:$0xf] %v488_v47  ;;  %v490_v48 = vld [vmem:[%s11317_s14 + $0x84] sm:$0xf]  ;;  %v496_v50 = vld [vmem:[%s11317_s14 + $0x98] sm:$0xf] }
  0x63   :  { %491 = vst [vmem:[#allocation3 + $0x88] sm:$0xf] %v490_v48  ;;  %493 = vst [vmem:[#allocation3 + $0x8c] sm:$0xff] %v492_v49   ;;  %v498_v51 = vld [vmem:[%s11317_s14 + $0x94] sm:$0xf]  ;;  %v508_v55 = vld [vmem:[%s11317_s14 + $0xac] sm:$0xff]  }
  0x64   :  { %497 = vst [vmem:[#allocation3 + $0x94] sm:$0xf] %v496_v50  ;;  %v504_v53 = vld [vmem:[%s11317_s14 + $0xa8] sm:$0xf]  ;;  %499 = vst [vmem:[#allocation3 + $0x98] sm:$0xf] %v498_v51 }
  0x65   :  { %501 = vst [vmem:[#allocation3 + $0x9c] sm:$0xff] %v500_v52   ;;  %505 = vst [vmem:[#allocation3 + $0xa4] sm:$0xf] %v504_v53  ;;  %v506_v54 = vld [vmem:[%s11317_s14 + $0xa4] sm:$0xf]  ;;  %v516_v58 = vld [vmem:[%s11317_s14 + $0xbc] sm:$0xff]  }
  0x66   :  { %v512_v56 = vld [vmem:[%s11317_s14 + $0xb8] sm:$0xf]  ;;  %507 = vst [vmem:[#allocation3 + $0xa8] sm:$0xf] %v506_v54  ;;  %509 = vst [vmem:[#allocation3 + $0xac] sm:$0xff] %v508_v55   ;;  %v524_v61 = vld [vmem:[%s11317_s14 + $0xcc] sm:$0xff]  }
  0x67   :  { %513 = vst [vmem:[#allocation3 + $0xb4] sm:$0xf] %v512_v56  ;;  %v514_v57 = vld [vmem:[%s11317_s14 + $0xb4] sm:$0xf]  ;;  %v520_v59 = vld [vmem:[%s11317_s14 + $0xc8] sm:$0xf] }
  0x68   :  { %515 = vst [vmem:[#allocation3 + $0xb8] sm:$0xf] %v514_v57  ;;  %517 = vst [vmem:[#allocation3 + $0xbc] sm:$0xff] %v516_v58   ;;  %v522_v60 = vld [vmem:[%s11317_s14 + $0xc4] sm:$0xf]  ;;  %v532_v0 = vld [vmem:[%s11317_s14 + $0xdc] sm:$0xff]  }
  0x69   :  { %521 = vst [vmem:[#allocation3 + $0xc4] sm:$0xf] %v520_v59  ;;  %v528_v62 = vld [vmem:[%s11317_s14 + $0xd8] sm:$0xf]  ;;  %523 = vst [vmem:[#allocation3 + $0xc8] sm:$0xf] %v522_v60 }
  0x6a   :  { %525 = vst [vmem:[#allocation3 + $0xcc] sm:$0xff] %v524_v61   ;;  %529 = vst [vmem:[#allocation3 + $0xd4] sm:$0xf] %v528_v62  ;;  %v530_v63 = vld [vmem:[%s11317_s14 + $0xd4] sm:$0xf]  ;;  %v540_v3 = vld [vmem:[%s11317_s14 + $0xec] sm:$0xff]  }
  0x6b   :  { %v536_v1 = vld [vmem:[%s11317_s14 + $0xe8] sm:$0xf]  ;;  %531 = vst [vmem:[#allocation3 + $0xd8] sm:$0xf] %v530_v63  ;;  %533 = vst [vmem:[#allocation3 + $0xdc] sm:$0xff] %v532_v0   ;;  %v548_v6 = vld [vmem:[%s11317_s14 + $0xfc] sm:$0xff]  }
  0x6c   :  { %537 = vst [vmem:[#allocation3 + $0xe4] sm:$0xf] %v536_v1  ;;  %v538_v2 = vld [vmem:[%s11317_s14 + $0xe4] sm:$0xf]  ;;  %v544_v4 = vld [vmem:[%s11317_s14 + $0xf8] sm:$0xf] }
  0x6d   :  { %539 = vst [vmem:[#allocation3 + $0xe8] sm:$0xf] %v538_v2  ;;  %541 = vst [vmem:[#allocation3 + $0xec] sm:$0xff] %v540_v3   ;;  %v546_v5 = vld [vmem:[%s11317_s14 + $0xf4] sm:$0xf]  ;;  %v556_v9 = vld [vmem:[%s11317_s14 + $0x10c] sm:$0xff]  }
  0x6e   :  { %545 = vst [vmem:[#allocation3 + $0xf4] sm:$0xf] %v544_v4  ;;  %v552_v7 = vld [vmem:[%s11317_s14 + $0x108] sm:$0xf]  ;;  %547 = vst [vmem:[#allocation3 + $0xf8] sm:$0xf] %v546_v5 }
  0x6f   :  { %549 = vst [vmem:[#allocation3 + $0xfc] sm:$0xff] %v548_v6   ;;  %553 = vst [vmem:[#allocation3 + $0x104] sm:$0xf] %v552_v7  ;;  %v554_v8 = vld [vmem:[%s11317_s14 + $0x104] sm:$0xf]  ;;  %v564_v12 = vld [vmem:[%s11317_s14 + $0x11c] sm:$0xff]  }
  0x70   :  { %v560_v10 = vld [vmem:[%s11317_s14 + $0x118] sm:$0xf]  ;;  %555 = vst [vmem:[#allocation3 + $0x108] sm:$0xf] %v554_v8  ;;  %557 = vst [vmem:[#allocation3 + $0x10c] sm:$0xff] %v556_v9   ;;  %v572_v15 = vld [vmem:[%s11317_s14 + $0x12c] sm:$0xff]  }
  0x71   :  { %561 = vst [vmem:[#allocation3 + $0x114] sm:$0xf] %v560_v10  ;;  %v562_v11 = vld [vmem:[%s11317_s14 + $0x114] sm:$0xf]  ;;  %v568_v13 = vld [vmem:[%s11317_s14 + $0x128] sm:$0xf] }
  0x72   :  { %563 = vst [vmem:[#allocation3 + $0x118] sm:$0xf] %v562_v11  ;;  %565 = vst [vmem:[#allocation3 + $0x11c] sm:$0xff] %v564_v12   ;;  %v570_v14 = vld [vmem:[%s11317_s14 + $0x124] sm:$0xf]  ;;  %v580_v18 = vld [vmem:[%s11317_s14 + $0x13c] sm:$0xff]  }
  0x73   :  { %569 = vst [vmem:[#allocation3 + $0x124] sm:$0xf] %v568_v13  ;;  %v576_v16 = vld [vmem:[%s11317_s14 + $0x138] sm:$0xf]  ;;  %571 = vst [vmem:[#allocation3 + $0x128] sm:$0xf] %v570_v14 }
  0x74   :  { %573 = vst [vmem:[#allocation3 + $0x12c] sm:$0xff] %v572_v15   ;;  %577 = vst [vmem:[#allocation3 + $0x134] sm:$0xf] %v576_v16  ;;  %v578_v17 = vld [vmem:[%s11317_s14 + $0x134] sm:$0xf]  ;;  %v588_v21 = vld [vmem:[%s11317_s14 + $0x14c] sm:$0xff]  }
  0x75   :  { %v584_v19 = vld [vmem:[%s11317_s14 + $0x148] sm:$0xf]  ;;  %579 = vst [vmem:[#allocation3 + $0x138] sm:$0xf] %v578_v17  ;;  %581 = vst [vmem:[#allocation3 + $0x13c] sm:$0xff] %v580_v18   ;;  %v596_v24 = vld [vmem:[%s11317_s14 + $0x15c] sm:$0xff]  }
  0x76   :  { %585 = vst [vmem:[#allocation3 + $0x144] sm:$0xf] %v584_v19  ;;  %v586_v20 = vld [vmem:[%s11317_s14 + $0x144] sm:$0xf]  ;;  %v592_v22 = vld [vmem:[%s11317_s14 + $0x158] sm:$0xf] }
  0x77   :  { %587 = vst [vmem:[#allocation3 + $0x148] sm:$0xf] %v586_v20  ;;  %589 = vst [vmem:[#allocation3 + $0x14c] sm:$0xff] %v588_v21   ;;  %v594_v23 = vld [vmem:[%s11317_s14 + $0x154] sm:$0xf]  ;;  %v604_v27 = vld [vmem:[%s11317_s14 + $0x16c] sm:$0xff]  }
  0x78   :  { %593 = vst [vmem:[#allocation3 + $0x154] sm:$0xf] %v592_v22  ;;  %v600_v25 = vld [vmem:[%s11317_s14 + $0x168] sm:$0xf]  ;;  %595 = vst [vmem:[#allocation3 + $0x158] sm:$0xf] %v594_v23 }
  0x79   :  { %597 = vst [vmem:[#allocation3 + $0x15c] sm:$0xff] %v596_v24   ;;  %601 = vst [vmem:[#allocation3 + $0x164] sm:$0xf] %v600_v25  ;;  %v602_v26 = vld [vmem:[%s11317_s14 + $0x164] sm:$0xf]  ;;  %v612_v30 = vld [vmem:[%s11317_s14 + $0x17c] sm:$0xff]  }
  0x7a   :  { %v608_v28 = vld [vmem:[%s11317_s14 + $0x178] sm:$0xf]  ;;  %603 = vst [vmem:[#allocation3 + $0x168] sm:$0xf] %v602_v26  ;;  %605 = vst [vmem:[#allocation3 + $0x16c] sm:$0xff] %v604_v27   ;;  %v620_v33 = vld [vmem:[%s11317_s14 + $0x18c] sm:$0xff]  }
  0x7b   :  { %609 = vst [vmem:[#allocation3 + $0x174] sm:$0xf] %v608_v28  ;;  %v610_v29 = vld [vmem:[%s11317_s14 + $0x174] sm:$0xf]  ;;  %v616_v31 = vld [vmem:[%s11317_s14 + $0x188] sm:$0xf] }
  0x7c   :  { %611 = vst [vmem:[#allocation3 + $0x178] sm:$0xf] %v610_v29  ;;  %613 = vst [vmem:[#allocation3 + $0x17c] sm:$0xff] %v612_v30   ;;  %v618_v32 = vld [vmem:[%s11317_s14 + $0x184] sm:$0xf]  ;;  %v628_v36 = vld [vmem:[%s11317_s14 + $0x19c] sm:$0xff]  }
  0x7d   :  { %617 = vst [vmem:[#allocation3 + $0x184] sm:$0xf] %v616_v31  ;;  %v624_v34 = vld [vmem:[%s11317_s14 + $0x198] sm:$0xf]  ;;  %619 = vst [vmem:[#allocation3 + $0x188] sm:$0xf] %v618_v32 }
  0x7e   :  { %621 = vst [vmem:[#allocation3 + $0x18c] sm:$0xff] %v620_v33   ;;  %625 = vst [vmem:[#allocation3 + $0x194] sm:$0xf] %v624_v34  ;;  %v626_v35 = vld [vmem:[%s11317_s14 + $0x194] sm:$0xf]  ;;  %v636_v39 = vld [vmem:[%s11317_s14 + $0x1ac] sm:$0xff]  }
  0x7f   :  { %v632_v37 = vld [vmem:[%s11317_s14 + $0x1a8] sm:$0xf]  ;;  %627 = vst [vmem:[#allocation3 + $0x198] sm:$0xf] %v626_v35  ;;  %629 = vst [vmem:[#allocation3 + $0x19c] sm:$0xff] %v628_v36   ;;  %v644_v42 = vld [vmem:[%s11317_s14 + $0x1bc] sm:$0xff]  }
  0x80   :  { %633 = vst [vmem:[#allocation3 + $0x1a4] sm:$0xf] %v632_v37  ;;  %v634_v38 = vld [vmem:[%s11317_s14 + $0x1a4] sm:$0xf]  ;;  %v640_v40 = vld [vmem:[%s11317_s14 + $0x1b8] sm:$0xf] }
  0x81   :  { %635 = vst [vmem:[#allocation3 + $0x1a8] sm:$0xf] %v634_v38  ;;  %637 = vst [vmem:[#allocation3 + $0x1ac] sm:$0xff] %v636_v39   ;;  %v642_v41 = vld [vmem:[%s11317_s14 + $0x1b4] sm:$0xf]  ;;  %v652_v45 = vld [vmem:[%s11317_s14 + $0x1cc] sm:$0xff]  }
  0x82   :  { %641 = vst [vmem:[#allocation3 + $0x1b4] sm:$0xf] %v640_v40  ;;  %v648_v43 = vld [vmem:[%s11317_s14 + $0x1c8] sm:$0xf]  ;;  %643 = vst [vmem:[#allocation3 + $0x1b8] sm:$0xf] %v642_v41 }
  0x83   :  { %645 = vst [vmem:[#allocation3 + $0x1bc] sm:$0xff] %v644_v42   ;;  %649 = vst [vmem:[#allocation3 + $0x1c4] sm:$0xf] %v648_v43  ;;  %v650_v44 = vld [vmem:[%s11317_s14 + $0x1c4] sm:$0xf]  ;;  %v660_v48 = vld [vmem:[%s11317_s14 + $0x1dc] sm:$0xff]  }
  0x84   :  { %v656_v46 = vld [vmem:[%s11317_s14 + $0x1d8] sm:$0xf]  ;;  %651 = vst [vmem:[#allocation3 + $0x1c8] sm:$0xf] %v650_v44  ;;  %653 = vst [vmem:[#allocation3 + $0x1cc] sm:$0xff] %v652_v45   ;;  %v668_v51 = vld [vmem:[%s11317_s14 + $0x1ec] sm:$0xff]  }
  0x85   :  { %657 = vst [vmem:[#allocation3 + $0x1d4] sm:$0xf] %v656_v46  ;;  %v658_v47 = vld [vmem:[%s11317_s14 + $0x1d4] sm:$0xf]  ;;  %v664_v49 = vld [vmem:[%s11317_s14 + $0x1e8] sm:$0xf] }
  0x86   :  { %659 = vst [vmem:[#allocation3 + $0x1d8] sm:$0xf] %v658_v47  ;;  %661 = vst [vmem:[#allocation3 + $0x1dc] sm:$0xff] %v660_v48   ;;  %v666_v50 = vld [vmem:[%s11317_s14 + $0x1e4] sm:$0xf]  ;;  %v676_v54 = vld [vmem:[%s11317_s14 + $0x1fc] sm:$0xff]  }
  0x87   :  { %665 = vst [vmem:[#allocation3 + $0x1e4] sm:$0xf] %v664_v49  ;;  %v672_v52 = vld [vmem:[%s11317_s14 + $0x1f8] sm:$0xf]  ;;  %667 = vst [vmem:[#allocation3 + $0x1e8] sm:$0xf] %v666_v50 }
  0x88   :  { %669 = vst [vmem:[#allocation3 + $0x1ec] sm:$0xff] %v668_v51   ;;  %673 = vst [vmem:[#allocation3 + $0x1f4] sm:$0xf] %v672_v52  ;;  %v674_v53 = vld [vmem:[%s11317_s14 + $0x1f4] sm:$0xf]  ;;  %v684_v57 = vld [vmem:[%s11317_s14 + $0x20c] sm:$0xff]  }
  0x89   :  { %v680_v55 = vld [vmem:[%s11317_s14 + $0x208] sm:$0xf]  ;;  %675 = vst [vmem:[#allocation3 + $0x1f8] sm:$0xf] %v674_v53  ;;  %677 = vst [vmem:[#allocation3 + $0x1fc] sm:$0xff] %v676_v54   ;;  %v692_v60 = vld [vmem:[%s11317_s14 + $0x21c] sm:$0xff]  }
  0x8a   :  { %681 = vst [vmem:[#allocation3 + $0x204] sm:$0xf] %v680_v55  ;;  %v682_v56 = vld [vmem:[%s11317_s14 + $0x204] sm:$0xf]  ;;  %v688_v58 = vld [vmem:[%s11317_s14 + $0x218] sm:$0xf] }
  0x8b   :  { %683 = vst [vmem:[#allocation3 + $0x208] sm:$0xf] %v682_v56  ;;  %685 = vst [vmem:[#allocation3 + $0x20c] sm:$0xff] %v684_v57   ;;  %v690_v59 = vld [vmem:[%s11317_s14 + $0x214] sm:$0xf]  ;;  %v700_v63 = vld [vmem:[%s11317_s14 + $0x22c] sm:$0xff]  }
  0x8c   :  { %689 = vst [vmem:[#allocation3 + $0x214] sm:$0xf] %v688_v58  ;;  %v696_v61 = vld [vmem:[%s11317_s14 + $0x228] sm:$0xf]  ;;  %691 = vst [vmem:[#allocation3 + $0x218] sm:$0xf] %v690_v59 }
  0x8d   :  { %693 = vst [vmem:[#allocation3 + $0x21c] sm:$0xff] %v692_v60   ;;  %697 = vst [vmem:[#allocation3 + $0x224] sm:$0xf] %v696_v61  ;;  %v698_v62 = vld [vmem:[%s11317_s14 + $0x224] sm:$0xf]  ;;  %v708_v2 = vld [vmem:[%s11317_s14 + $0x23c] sm:$0xff]  }
  0x8e   :  { %v704_v0 = vld [vmem:[%s11317_s14 + $0x238] sm:$0xf]  ;;  %699 = vst [vmem:[#allocation3 + $0x228] sm:$0xf] %v698_v62  ;;  %701 = vst [vmem:[#allocation3 + $0x22c] sm:$0xff] %v700_v63   ;;  %v716_v5 = vld [vmem:[%s11317_s14 + $0x24c] sm:$0xff]  }
  0x8f   :  { %705 = vst [vmem:[#allocation3 + $0x234] sm:$0xf] %v704_v0  ;;  %v706_v1 = vld [vmem:[%s11317_s14 + $0x234] sm:$0xf]  ;;  %v712_v3 = vld [vmem:[%s11317_s14 + $0x248] sm:$0xf] }
  0x90   :  { %707 = vst [vmem:[#allocation3 + $0x238] sm:$0xf] %v706_v1  ;;  %709 = vst [vmem:[#allocation3 + $0x23c] sm:$0xff] %v708_v2   ;;  %v714_v4 = vld [vmem:[%s11317_s14 + $0x244] sm:$0xf]  ;;  %v724_v8 = vld [vmem:[%s11317_s14 + $0x25c] sm:$0xff]  }
  0x91   :  { %713 = vst [vmem:[#allocation3 + $0x244] sm:$0xf] %v712_v3  ;;  %v720_v6 = vld [vmem:[%s11317_s14 + $0x258] sm:$0xf]  ;;  %715 = vst [vmem:[#allocation3 + $0x248] sm:$0xf] %v714_v4 }
  0x92   :  { %717 = vst [vmem:[#allocation3 + $0x24c] sm:$0xff] %v716_v5   ;;  %721 = vst [vmem:[#allocation3 + $0x254] sm:$0xf] %v720_v6  ;;  %v722_v7 = vld [vmem:[%s11317_s14 + $0x254] sm:$0xf]  ;;  %v732_v11 = vld [vmem:[%s11317_s14 + $0x26c] sm:$0xff]  }
  0x93   :  { %v728_v9 = vld [vmem:[%s11317_s14 + $0x268] sm:$0xf]  ;;  %723 = vst [vmem:[#allocation3 + $0x258] sm:$0xf] %v722_v7  ;;  %725 = vst [vmem:[#allocation3 + $0x25c] sm:$0xff] %v724_v8   ;;  %v740_v14 = vld [vmem:[%s11317_s14 + $0x27c] sm:$0xff]  }
  0x94   :  { %729 = vst [vmem:[#allocation3 + $0x264] sm:$0xf] %v728_v9  ;;  %v730_v10 = vld [vmem:[%s11317_s14 + $0x264] sm:$0xf]  ;;  %v736_v12 = vld [vmem:[%s11317_s14 + $0x278] sm:$0xf] }
  0x95   :  { %731 = vst [vmem:[#allocation3 + $0x268] sm:$0xf] %v730_v10  ;;  %733 = vst [vmem:[#allocation3 + $0x26c] sm:$0xff] %v732_v11   ;;  %v738_v13 = vld [vmem:[%s11317_s14 + $0x274] sm:$0xf]  ;;  %v748_v17 = vld [vmem:[%s11317_s14 + $0x28c] sm:$0xff]  }
  0x96   :  { %737 = vst [vmem:[#allocation3 + $0x274] sm:$0xf] %v736_v12  ;;  %v744_v15 = vld [vmem:[%s11317_s14 + $0x288] sm:$0xf]  ;;  %739 = vst [vmem:[#allocation3 + $0x278] sm:$0xf] %v738_v13 }
  0x97   :  { %741 = vst [vmem:[#allocation3 + $0x27c] sm:$0xff] %v740_v14   ;;  %745 = vst [vmem:[#allocation3 + $0x284] sm:$0xf] %v744_v15  ;;  %v746_v16 = vld [vmem:[%s11317_s14 + $0x284] sm:$0xf]  ;;  %v756_v20 = vld [vmem:[%s11317_s14 + $0x29c] sm:$0xff]  }
  0x98   :  { %v752_v18 = vld [vmem:[%s11317_s14 + $0x298] sm:$0xf]  ;;  %747 = vst [vmem:[#allocation3 + $0x288] sm:$0xf] %v746_v16  ;;  %749 = vst [vmem:[#allocation3 + $0x28c] sm:$0xff] %v748_v17   ;;  %v764_v23 = vld [vmem:[%s11317_s14 + $0x2ac] sm:$0xff]  }
  0x99   :  { %753 = vst [vmem:[#allocation3 + $0x294] sm:$0xf] %v752_v18  ;;  %v754_v19 = vld [vmem:[%s11317_s14 + $0x294] sm:$0xf]  ;;  %v760_v21 = vld [vmem:[%s11317_s14 + $0x2a8] sm:$0xf] }
  0x9a   :  { %755 = vst [vmem:[#allocation3 + $0x298] sm:$0xf] %v754_v19  ;;  %757 = vst [vmem:[#allocation3 + $0x29c] sm:$0xff] %v756_v20   ;;  %v762_v22 = vld [vmem:[%s11317_s14 + $0x2a4] sm:$0xf] }
  0x9b   :  { %761 = vst [vmem:[#allocation3 + $0x2a4] sm:$0xf] %v760_v21  ;;  %v768_v24 = vld [vmem:[%s11317_s14 + $0x2b8] sm:$0xf]  ;;  %763 = vst [vmem:[#allocation3 + $0x2a8] sm:$0xf] %v762_v22 }
  0x9c   :  { %765 = vst [vmem:[#allocation3 + $0x2ac] sm:$0xff] %v764_v23   ;;  %769 = vst [vmem:[#allocation3 + $0x2b4] sm:$0xf] %v768_v24  ;;  %v770_v25 = vld [vmem:[%s11317_s14 + $0x2b4] sm:$0xf] }
  0x9d   :  { %v772_v26 = vld [vmem:[%s11317_s14 + $0x2bc] sm:$0xf]  ;;  %771 = vst [vmem:[#allocation3 + $0x2b8] sm:$0xf] %v770_v25 }
  0x9e   :  { %773 = vst [vmem:[#allocation3 + $0x2bc] sm:$0xf] %v772_v26 }
  0x9f   :  { %1156 = vsyncadd [#allocation5 + $0x1], 11264  ;;  %v9631_v27 = vld [vmem:[%s11318_s15] sm:$0xff]  ;;  %v9636_v28 = vld [vmem:[%s11318_s15 + $0x8] sm:$0xff] }
  0xa0   :  { %v9641_v29 = vld [vmem:[%s11318_s15 + $0x10] sm:$0xff]  ;;  %v9646_v30 = vld [vmem:[%s11318_s15 + $0x18] sm:$0xff]  ;;  %v9651_v31 = vld [vmem:[%s11318_s15 + $0x20] sm:$0xff] }
  0xa1   :  { %v9656_v32 = vld [vmem:[%s11318_s15 + $0x28] sm:$0xff]  ;;  %v9661_v33 = vld [vmem:[%s11318_s15 + $0x30] sm:$0xff]  ;;  %v9666_v34 = vld [vmem:[%s11318_s15 + $0x38] sm:$0xff] }
  0xa2   :  { %v9671_v35 = vld [vmem:[%s11318_s15 + $0x40] sm:$0xff]  ;;  %v9676_v36 = vld [vmem:[%s11318_s15 + $0x48] sm:$0xff]  ;;  %v9681_v37 = vld [vmem:[%s11318_s15 + $0x50] sm:$0xff] }
  0xa3   :  { %11343 = vst [vmem:[#allocation15_spill] sm:$0xff] %v9671_v35  ;;  %11344 = vst [vmem:[#allocation16_spill] sm:$0xff] %v9676_v36  ;;  %v9686_v38 = vld [vmem:[%s11318_s15 + $0x58] sm:$0xff]  ;;  %v9691_v39 = vld [vmem:[%s11318_s15 + $0x60] sm:$0xff] }
  0xa4   :  { %11345 = vst [vmem:[#allocation17_spill] sm:$0xff] %v9681_v37  ;;  %v9696_v40 = vld [vmem:[%s11318_s15 + $0x68] sm:$0xff]  ;;  %v9701_v41 = vld [vmem:[%s11318_s15 + $0x70] sm:$0xff]  ;;  %v9706_v42 = vld [vmem:[%s11318_s15 + $0x78] sm:$0xff] }
  0xa5   :  { %v9711_v43 = vld [vmem:[%s11318_s15 + $0x80] sm:$0xff]  ;;  %v9716_v44 = vld [vmem:[%s11318_s15 + $0x88] sm:$0xff]  ;;  %v9721_v45 = vld [vmem:[%s11318_s15 + $0x90] sm:$0xff] }
  0xa6   :  { %v9726_v46 = vld [vmem:[%s11318_s15 + $0x98] sm:$0xff]  ;;  %v9731_v47 = vld [vmem:[%s11318_s15 + $0xa0] sm:$0xff]  ;;  %v9736_v48 = vld [vmem:[%s11318_s15 + $0xa8] sm:$0xff] }
  0xa7   :  { %11346 = vst [vmem:[#allocation18_spill] sm:$0xff] %v9726_v46  ;;  %11347 = vst [vmem:[#allocation19_spill] sm:$0xff] %v9731_v47  ;;  %v9741_v49 = vld [vmem:[%s11318_s15 + $0xb0] sm:$0xff]  ;;  %v9746_v50 = vld [vmem:[%s11318_s15 + $0xb8] sm:$0xff] }
  0xa8   :  { %11348 = vst [vmem:[#allocation20_spill] sm:$0xff] %v9736_v48  ;;  %11349 = vst [vmem:[#allocation21_spill] sm:$0xff] %v9741_v49  ;;  %v9751_v51 = vld [vmem:[%s11318_s15 + $0xc0] sm:$0xff]  ;;  %v9756_v52 = vld [vmem:[%s11318_s15 + $0xc8] sm:$0xff] }
  0xa9   :  { %11350 = vst [vmem:[#allocation22_spill] sm:$0xff] %v9746_v50  ;;  %11351 = vst [vmem:[#allocation23_spill] sm:$0xff] %v9751_v51  ;;  %v9761_v53 = vld [vmem:[%s11318_s15 + $0xd0] sm:$0xff]  ;;  %v9766_v54 = vld [vmem:[%s11318_s15 + $0xd8] sm:$0xff] }
  0xaa   :  { %11352 = vst [vmem:[#allocation24_spill] sm:$0xff] %v9756_v52  ;;  %11353 = vst [vmem:[#allocation25_spill] sm:$0xff] %v9761_v53  ;;  %v9771_v55 = vld [vmem:[%s11318_s15 + $0xe0] sm:$0xff]  ;;  %v9776_v56 = vld [vmem:[%s11318_s15 + $0xe8] sm:$0xff] }
  0xab   :  { %11354 = vst [vmem:[#allocation26_spill] sm:$0xff] %v9766_v54  ;;  %11355 = vst [vmem:[#allocation27_spill] sm:$0xff] %v9771_v55  ;;  %v9781_v57 = vld [vmem:[%s11318_s15 + $0xf0] sm:$0xff]  ;;  %v9786_v58 = vld [vmem:[%s11318_s15 + $0xf8] sm:$0xff] }
  0xac   :  { %11356 = vst [vmem:[#allocation28_spill] sm:$0xff] %v9776_v56  ;;  %11357 = vst [vmem:[#allocation29_spill] sm:$0xff] %v9781_v57  ;;  %v9791_v59 = vld [vmem:[%s11318_s15 + $0x100] sm:$0xff]  ;;  %v9796_v60 = vld [vmem:[%s11318_s15 + $0x108] sm:$0xff] }
  0xad   :  { %11358 = vst [vmem:[#allocation30_spill] sm:$0xff] %v9786_v58  ;;  %11359 = vst [vmem:[#allocation31_spill] sm:$0xff] %v9791_v59  ;;  %v9801_v61 = vld [vmem:[%s11318_s15 + $0x110] sm:$0xff]  ;;  %v9806_v62 = vld [vmem:[%s11318_s15 + $0x118] sm:$0xff] }
  0xae   :  { %11360 = vst [vmem:[#allocation32_spill] sm:$0xff] %v9796_v60  ;;  %11361 = vst [vmem:[#allocation33_spill] sm:$0xff] %v9801_v61  ;;  %v9811_v63 = vld [vmem:[%s11318_s15 + $0x120] sm:$0xff]  ;;  %v9816_v0 = vld [vmem:[%s11318_s15 + $0x128] sm:$0xff] }
  0xaf   :  { %11362 = vst [vmem:[#allocation34_spill] sm:$0xff] %v9806_v62  ;;  %11363 = vst [vmem:[#allocation35_spill] sm:$0xff] %v9811_v63  ;;  %v9821_v1 = vld [vmem:[%s11318_s15 + $0x130] sm:$0xff]  ;;  %v9826_v2 = vld [vmem:[%s11318_s15 + $0x138] sm:$0xff] }
  0xb0   :  { %11364 = vst [vmem:[#allocation36_spill] sm:$0xff] %v9816_v0  ;;  %11365 = vst [vmem:[#allocation37_spill] sm:$0xff] %v9821_v1  ;;  %v9831_v3 = vld [vmem:[%s11318_s15 + $0x140] sm:$0xff]  ;;  %v9836_v4 = vld [vmem:[%s11318_s15 + $0x148] sm:$0xff] }
  0xb1   :  { %11366 = vst [vmem:[#allocation38_spill] sm:$0xff] %v9826_v2  ;;  %11367 = vst [vmem:[#allocation39_spill] sm:$0xff] %v9831_v3  ;;  %v9841_v5 = vld [vmem:[%s11318_s15 + $0x150] sm:$0xff]  ;;  %v9846_v6 = vld [vmem:[%s11318_s15 + $0x158] sm:$0xff] }
  0xb2   :  { %11368 = vst [vmem:[#allocation40_spill] sm:$0xff] %v9836_v4  ;;  %11369 = vst [vmem:[#allocation41_spill] sm:$0xff] %v9841_v5 }
  0xb3   :  { %11370 = vst [vmem:[#allocation42_spill] sm:$0xff] %v9846_v6 }
  0xb4   :  { %1285 = vsyncadd [#allocation5 + $0x2], 5632  ;;  %v11335_v7 = vmov 0.0   ;;  %s11371_s24 = sld [smem:[#allocation44_spill]]  ;;  %vm8664_vm0 = vmmov 0   ;;  %v11333_v16 = vmov 0  }
  0xb5   :  { %7723 = vmatprep.subr.bf16.mxu1 %v11335_v7  ;;  %7731 = vmatprep.mubr.msk.bf16.mxu1 %vm8664_vm0, %v11335_v7  ;;  %vm1409_vm1 = vcmask 1043456   ;;  %s11372_s28 = sld [smem:[#allocation43_spill]]  ;;  %vm1399_vm2 = vcmask 457728   ;;  %s11373_s4 = sld [smem:[#allocation47_spill]]  ;;  %vm2591_vm3 = vcmask 1040384   ;;  %vm2821_vm4 = vcmask 1045504  }
  0xb6   :  { %1451 = vmatprep.mubr.bf16.mxu0 %v11333_v16  ;;  %s11376_s25 = sld [smem:[#allocation48_spill]]  ;;  %vm2817_vm5 = vcmask 48128   ;;  %s11377_s5 = sld [smem:[#allocation45_spill]]  ;;  %vm3070_vm6 = vcmask 392192  }
  0xba   :  { %v8203_v8 = vld [vmem:[%s11371_s24 + $0x58] ss:$12 sps:$4 sm:$0xff]   ;;  %v8205_v9 = vld [vmem:[%s11371_s24 + $0x5c] ss:$12 sps:$4 sm:$0xff]   ;;  %v8206_v10 = vld [vmem:[%s11371_s24 + $0x54] ss:$12 sps:$4 sm:$0xff]  }
  0xbb   :  { %1419 = vmatprep.subr.bf16.mxu0 %v8203_v8  ;;  %v8207_v11 = vld [vmem:[%s11371_s24 + $0x70] ss:$12 sps:$4 sm:$0xff]   ;;  %7724 = vmatpush3.bf16.msra.mxu1 %v8205_v9  ;;  %v8209_v12 = vld [vmem:[%s11371_s24 + $0x74] ss:$12 sps:$4 sm:$0xff]   ;;  %v8210_v13 = vld [vmem:[%s11371_s24 + $0x6c] ss:$12 sps:$4 sm:$0xff]  }
  0xbc   :  { %1420 = vmatpush1.bf16.msra.mxu0 %v8206_v10  ;;  %7725 = vmatprep.subr.bf16.mxu1 %v11335_v7  ;;  %v8211_v14 = vld [vmem:[%s11371_s24 + $0x88] ss:$12 sps:$4 sm:$0xff]   ;;  %v8213_v15 = vld [vmem:[%s11371_s24 + $0x8c] ss:$12 sps:$4 sm:$0xff]   ;;  %v8214_v17 = vld [vmem:[%s11371_s24 + $0x84] ss:$12 sps:$4 sm:$0xff]  }
  0xbd   :  { %1421 = vmatprep.subr.bf16.mxu0 %v8207_v11  ;;  %v7043_v18 = vld [vmem:[%s11371_s24 + $0x9c] sm:$0xff]  ;;  %v8216_v19 = vld [vmem:[%s11371_s24 + $0xa4] ss:$0 sps:$4 sm:$0xff]   ;;  %v8222_v8 = vld [vmem:[%s11371_s24 + $0x8] ss:$12 sps:$4 sm:$0xff]  }
  0xbe   :  { %v7057_v20 = vcombine.low %v7043_v18, %v7043_v18  ;;  %v7058_v21 = vcombine.high %v7043_v18, %v7043_v18  ;;  %v1417_v22 = vsel %vm1409_vm1, %v8216_v19, 0  ;;  %v8221_v24 = vld [vmem:[%s11371_s24 + $0x4] ss:$12 sps:$4 sm:$0xff]   ;;  %v8218_v25 = vld [vmem:[%s11372_s28 + $0x18] sm:$0xff]   ;;  %v8219_v26 = vld [vmem:[%s11371_s24] ss:$12 sps:$4 sm:$0xff]  }
  0xbf   :  { %7726 = vmatpush3.bf16.msra.mxu1 %v8209_v12  ;;  %v8225_v9 = vld [vmem:[%s11371_s24 + $0x1c] ss:$12 sps:$4 sm:$0xff]   ;;  %v8223_v10 = vld [vmem:[%s11371_s24 + $0x18] ss:$12 sps:$4 sm:$0xff]   ;;  %v8227_v11 = vld [vmem:[%s11371_s24 + $0x20] ss:$12 sps:$4 sm:$0xff]  }
  0xc0   :  { %1422 = vmatpush1.bf16.msra.mxu0 %v8210_v13  ;;  %7727 = vmatprep.subr.bf16.mxu1 %v11335_v7  ;;  %v1411_v23 = vsel %vm1409_vm1, %v7057_v20, 0  ;;  %v8230_v12 = vld [vmem:[%s11371_s24 + $0x34] ss:$12 sps:$4 sm:$0xff]   ;;  %v1304_v13 = vld [vmem:[%s11371_s24 + $0x48] sm:$0xff]  ;;  %v8235_v20 = vld [vmem:[%s11371_s24 + $0x50] ss:$0 sps:$4 sm:$0xff]  }
  0xc1   :  { %1423 = vmatprep.subr.bf16.mxu0 %v8211_v14  ;;  %v8226_v14 = vld [vmem:[%s11372_s28 + $0x20] sm:$0xff]   ;;  %v7079_v18 = vcombine.low %v1304_v13, %v1304_v13  ;;  %v7080_v19 = vcombine.high %v1304_v13, %v1304_v13  ;;  %v7107_v13 = vld [vmem:[%s11371_s24 + $0xf0] sm:$0xff] }
  0xc3   :  { %7728 = vmatpush3.bf16.msra.mxu1 %v8213_v15  ;;  %v8228_v15 = vld [vmem:[%s11371_s24 + $0x30] ss:$12 sps:$4 sm:$0xff]  }
  0xc4   :  { %1424 = vmatpush1.bf16.msra.mxu0 %v8214_v17  ;;  %7729 = vmatprep.subr.bf16.mxu1 %v11335_v7  ;;  %v8232_v17 = vld [vmem:[%s11371_s24 + $0x38] ss:$12 sps:$4 sm:$0xff]  }
  0xc5   :  { %7060 = vmatprep.subr.msk.bf16.mxu0 %vm1409_vm1, %v7058_v21  ;;  %v1620_v21 = vsel %vm1409_vm1, %v7079_v18, 0  ;;  %v8250_v18 = vld [vmem:[%s11371_s24 + $0xe0] ss:$12 sps:$4 sm:$0xff]  }
  0xc7   :  { %7730 = vmatpush3.bf16.msra.mxu1 %v1417_v22  ;;  %v8239_v22 = vld [vmem:[%s11371_s24 + $0xac] ss:$12 sps:$4 sm:$0xff]  }
  0xc8   :  { %1426 = vmatpush1.bf16.msra.mxu0 %v1411_v23  ;;  %7743 = vmatprep.subr.bf16.mxu1 %v11335_v7  ;;  %v1626_v23 = vsel %vm1409_vm1, %v8235_v20, 0  ;;  %v8253_v20 = vld [vmem:[%s11371_s24 + $0xf8] ss:$0 sps:$4 sm:$0xff]  }
  0xc9   :  { %1628 = vmatprep.subr.bf16.mxu0 %v8221_v24  ;;  %v8231_v24 = vld [vmem:[%s11372_s28 + $0x28] sm:$0xff]  }
  0xca   :  { %7732 = vmatmul.mubr.msk.bf16.vlgmr.msra.gmra.mrb[0].mxu1 %vm1399_vm2, %v8218_v25 }
  0xcb   :  { %7061 = vmatmul.mubr.msk.bf16.vlgmr.msra.gmra.mrb[0].mxu0 %vm1399_vm2, %v8218_v25  ;;  %7744 = vmatpush3.bf16.msra.mxu1 %v8222_v8  ;;  %v8236_v25 = vld [vmem:[%s11372_s28] sm:$0xff]   ;;  %v8240_v8 = vld [vmem:[%s11371_s24 + $0xb0] ss:$12 sps:$4 sm:$0xff]  }
  0xcc   :  { %1629 = vmatpush1.bf16.msra.mxu0 %v8219_v26  ;;  %7735 = vmatprep.mubr.msk.bf16.mxu1 %vm8664_vm0, %v11335_v7  ;;  %v8237_v26 = vld [vmem:[%s11371_s24 + $0xa8] ss:$12 sps:$4 sm:$0xff]  }
  0xcd   :  { %1630 = vmatprep.subr.bf16.mxu0 %v8225_v9  ;;  %1461 = vmatprep.mubr.bf16.mxu0 %v11333_v16  ;;  %v8243_v9 = vld [vmem:[%s11371_s24 + $0xc4] ss:$12 sps:$4 sm:$0xff]  }
  0xce   :  { %7745 = vmatprep.subr.bf16.mxu1 %v11335_v7 }
  0xcf   :  { %7746 = vmatpush3.bf16.msra.mxu1 %v8227_v11  ;;  %v8245_v11 = vld [vmem:[%s11371_s24 + $0xc8] ss:$12 sps:$4 sm:$0xff]  }
  0xd0   :  { %1631 = vmatpush1.bf16.msra.mxu0 %v8223_v10  ;;  %7747 = vmatprep.subr.bf16.mxu1 %v11335_v7  ;;  %v8241_v10 = vld [vmem:[%s11371_s24 + $0xc0] ss:$12 sps:$4 sm:$0xff]  }
  0xd1   :  { %1632 = vmatprep.subr.bf16.mxu0 %v8230_v12  ;;  %v8248_v12 = vld [vmem:[%s11371_s24 + $0xdc] ss:$12 sps:$4 sm:$0xff]  }
  0xd2   :  { %7736 = vmatmul.mubr.msk.bf16.gmra.mrb[4].mxu1 %vm1399_vm2, %v8226_v14 }
  0xd3   :  { %7062 = vmatmul.mubr.msk.bf16.gmra.mrb[4].mxu0 %vm1399_vm2, %v8226_v14  ;;  %7739 = vmatprep.mubr.msk.bf16.mxu1 %vm8664_vm0, %v11335_v7  ;;  %v8244_v14 = vld [vmem:[%s11372_s28 + $0x8] sm:$0xff]  }
  0xd4   :  { %1633 = vmatpush1.bf16.msra.mxu0 %v8228_v15  ;;  %1471 = vmatprep.mubr.bf16.mxu0 %v11333_v16  ;;  %v8246_v15 = vld [vmem:[%s11371_s24 + $0xd8] ss:$12 sps:$4 sm:$0xff]  }
  0xd5   :  { %7748 = vmatpush3.bf16.msra.mxu1 %v8232_v17  ;;  %7082 = vmatprep.subr.msk.bf16.mxu0 %vm1409_vm1, %v7080_v19  ;;  %v7121_v17 = vcombine.low %v7107_v13, %v7107_v13  ;;  %v7122_v19 = vcombine.high %v7107_v13, %v7107_v13  ;;  %v7149_v13 = vld [vmem:[%s11371_s24 + $0x144] sm:$0xff] }
  0xd6   :  { %7749 = vmatprep.subr.bf16.mxu1 %v11335_v7 }
  0xd8   :  { %1635 = vmatpush1.bf16.msra.mxu0 %v1620_v21  ;;  %v1851_v21 = vsel %vm1409_vm1, %v7121_v17, 0  ;;  %v8268_v17 = vld [vmem:[%s11371_s24 + $0x134] ss:$12 sps:$4 sm:$0xff]  }
  0xd9   :  { %7750 = vmatpush3.bf16.msra.mxu1 %v1626_v23  ;;  %1859 = vmatprep.subr.bf16.mxu0 %v8239_v22  ;;  %v8257_v22 = vld [vmem:[%s11371_s24 + $0x100] ss:$12 sps:$4 sm:$0xff]   ;;  %v8249_v23 = vld [vmem:[%s11372_s28 + $0x10] sm:$0xff]  }
  0xda   :  { %7763 = vmatprep.subr.bf16.mxu1 %v11335_v7  ;;  %7740 = vmatmul.mubr.msk.bf16.gmra.mrb[8].mxu1 %vm1399_vm2, %v8231_v24 }
  0xdb   :  { %7063 = vmatmul.mubr.msk.bf16.gmra.mrb[8].mxu0 %vm1399_vm2, %v8231_v24  ;;  %7751 = vmatprep.mubr.msk.bf16.mxu1 %vm8664_vm0, %v11335_v7  ;;  %v1857_v24 = vsel %vm1409_vm1, %v8253_v20, 0  ;;  %v7164_v20 = vcombine.high %v7149_v13, %v7149_v13 }
  0xdc   :  { %1660 = vmatprep.mubr.bf16.mxu0 %v11333_v16 }
  0xe2   :  { %7752 = vmatmul.mubr.msk.bf16.vlgmr.msra.gmra.mrb[0].mxu1 %vm1399_vm2, %v8236_v25 }
  0xe3   :  { %7083 = vmatmul.mubr.msk.bf16.vlgmr.msra.gmra.mrb[0].mxu0 %vm1399_vm2, %v8236_v25  ;;  %7764 = vmatpush3.bf16.msra.mxu1 %v8240_v8  ;;  %v8254_v25 = vld [vmem:[%s11372_s28 + $0x30] sm:$0xff]  }
  0xe4   :  { %1860 = vmatpush1.bf16.msra.mxu0 %v8237_v26  ;;  %7755 = vmatprep.mubr.msk.bf16.mxu1 %vm8664_vm0, %v11335_v7  ;;  %v8255_v26 = vld [vmem:[%s11371_s24 + $0xfc] ss:$12 sps:$4 sm:$0xff]   ;;  %v8258_v8 = vld [vmem:[%s11371_s24 + $0x104] ss:$12 sps:$4 sm:$0xff]  }
  0xe5   :  { %1861 = vmatprep.subr.bf16.mxu0 %v8243_v9  ;;  %1670 = vmatprep.mubr.bf16.mxu0 %v11333_v16  ;;  %v8261_v9 = vld [vmem:[%s11371_s24 + $0x118] ss:$12 sps:$4 sm:$0xff]  }
  0xe6   :  { %7765 = vmatprep.subr.bf16.mxu1 %v11335_v7 }
  0xe7   :  { %7766 = vmatpush3.bf16.msra.mxu1 %v8245_v11  ;;  %v8263_v11 = vld [vmem:[%s11371_s24 + $0x11c] ss:$12 sps:$4 sm:$0xff]  }
  0xe8   :  { %1862 = vmatpush1.bf16.msra.mxu0 %v8241_v10  ;;  %7767 = vmatprep.subr.bf16.mxu1 %v11335_v7  ;;  %v8259_v10 = vld [vmem:[%s11371_s24 + $0x114] ss:$12 sps:$4 sm:$0xff]  }
  0xe9   :  { %1863 = vmatprep.subr.bf16.mxu0 %v8248_v12  ;;  %v8266_v12 = vld [vmem:[%s11371_s24 + $0x130] ss:$12 sps:$4 sm:$0xff]  }
  0xea   :  { %7756 = vmatmul.mubr.msk.bf16.gmra.mrb[4].mxu1 %vm1399_vm2, %v8244_v14 }
  0xeb   :  { %7084 = vmatmul.mubr.msk.bf16.gmra.mrb[4].mxu0 %vm1399_vm2, %v8244_v14  ;;  %7759 = vmatprep.mubr.msk.bf16.mxu1 %vm8664_vm0, %v11335_v7  ;;  %v8262_v14 = vld [vmem:[%s11372_s28 + $0x38] sm:$0xff]  }
  0xec   :  { %1864 = vmatpush1.bf16.msra.mxu0 %v8246_v15  ;;  %1680 = vmatprep.mubr.bf16.mxu0 %v11333_v16  ;;  %v8264_v15 = vld [vmem:[%s11371_s24 + $0x12c] ss:$12 sps:$4 sm:$0xff]  }
  0xed   :  { %7768 = vmatpush3.bf16.msra.mxu1 %v8250_v18  ;;  %7124 = vmatprep.subr.msk.bf16.mxu0 %vm1409_vm1, %v7122_v19  ;;  %v8271_v18 = vld [vmem:[%s11371_s24 + $0x14c] ss:$0 sps:$4 sm:$0xff]   ;;  %v7163_v19 = vcombine.low %v7149_v13, %v7149_v13  ;;  %v7191_v13 = vld [vmem:[%s11371_s24 + $0x198] sm:$0xff] }
  0xee   :  { %7769 = vmatprep.subr.bf16.mxu1 %v11335_v7 }
  0xf0   :  { %1866 = vmatpush1.bf16.msra.mxu0 %v1851_v21  ;;  %v8275_v21 = vld [vmem:[%s11371_s24 + $0x154] ss:$12 sps:$4 sm:$0xff]  }
  0xf1   :  { %7770 = vmatpush3.bf16.msra.mxu1 %v1857_v24  ;;  %2108 = vmatprep.subr.bf16.mxu0 %v8257_v22  ;;  %v8267_v22 = vld [vmem:[%s11372_s28 + $0x40] sm:$0xff]   ;;  %v2106_v24 = vsel %vm1409_vm1, %v8271_v18, 0  ;;  %v7205_v18 = vcombine.low %v7191_v13, %v7191_v13 }
  0xf2   :  { %7783 = vmatprep.subr.bf16.mxu1 %v11335_v7  ;;  %7760 = vmatmul.mubr.msk.bf16.gmra.mrb[8].mxu1 %vm1399_vm2, %v8249_v23 }
  0xf3   :  { %7085 = vmatmul.mubr.msk.bf16.gmra.mrb[8].mxu0 %vm1399_vm2, %v8249_v23  ;;  %7771 = vmatprep.mubr.msk.bf16.mxu1 %vm8664_vm0, %v11335_v7  ;;  %v2100_v23 = vsel %vm1409_vm1, %v7163_v19, 0  ;;  %v7206_v19 = vcombine.high %v7191_v13, %v7191_v13 }
  0xf4   :  { %1891 = vmatprep.mubr.bf16.mxu0 %v11333_v16 }
  0xfa   :  { %7772 = vmatmul.mubr.msk.bf16.vlgmr.msra.gmra.mrb[0].mxu1 %vm1399_vm2, %v8254_v25 }
  0xfb   :  { %7125 = vmatmul.mubr.msk.bf16.vlgmr.msra.gmra.mrb[0].mxu0 %vm1399_vm2, %v8254_v25  ;;  %7784 = vmatpush3.bf16.msra.mxu1 %v8258_v8  ;;  %v8272_v25 = vld [vmem:[%s11372_s28 + $0x48] sm:$0xff]   ;;  %v8276_v8 = vld [vmem:[%s11371_s24 + $0x158] ss:$12 sps:$4 sm:$0xff]  }
  0xfc   :  { %2109 = vmatpush1.bf16.msra.mxu0 %v8255_v26  ;;  %7775 = vmatprep.mubr.msk.bf16.mxu1 %vm8664_vm0, %v11335_v7  ;;  %v8273_v26 = vld [vmem:[%s11371_s24 + $0x150] ss:$12 sps:$4 sm:$0xff]  }
  0xfd   :  { %2110 = vmatprep.subr.bf16.mxu0 %v8261_v9  ;;  %1901 = vmatprep.mubr.bf16.mxu0 %v11333_v16  ;;  %v8279_v9 = vld [vmem:[%s11371_s24 + $0x16c] ss:$12 sps:$4 sm:$0xff]  }
  0xfe   :  { %7785 = vmatprep.subr.bf16.mxu1 %v11335_v7 }
  0xff   :  { %7786 = vmatpush3.bf16.msra.mxu1 %v8263_v11  ;;  %v8281_v11 = vld [vmem:[%s11371_s24 + $0x170] ss:$12 sps:$4 sm:$0xff]  }
 0x100   :  { %2111 = vmatpush1.bf16.msra.mxu0 %v8259_v10  ;;  %7787 = vmatprep.subr.bf16.mxu1 %v11335_v7  ;;  %v8277_v10 = vld [vmem:[%s11371_s24 + $0x168] ss:$12 sps:$4 sm:$0xff]  }
 0x101   :  { %2112 = vmatprep.subr.bf16.mxu0 %v8266_v12  ;;  %v8284_v12 = vld [vmem:[%s11371_s24 + $0x184] ss:$12 sps:$4 sm:$0xff]  }
 0x102   :  { %7776 = vmatmul.mubr.msk.bf16.gmra.mrb[4].mxu1 %vm1399_vm2, %v8262_v14 }
 0x103   :  { %7126 = vmatmul.mubr.msk.bf16.gmra.mrb[4].mxu0 %vm1399_vm2, %v8262_v14  ;;  %7779 = vmatprep.mubr.msk.bf16.mxu1 %vm8664_vm0, %v11335_v7  ;;  %v8280_v14 = vld [vmem:[%s11372_s28 + $0x50] sm:$0xff]  }
 0x104   :  { %2113 = vmatpush1.bf16.msra.mxu0 %v8264_v15  ;;  %1911 = vmatprep.mubr.bf16.mxu0 %v11333_v16  ;;  %v8282_v15 = vld [vmem:[%s11371_s24 + $0x180] ss:$12 sps:$4 sm:$0xff]  }
 0x105   :  { %7788 = vmatpush3.bf16.msra.mxu1 %v8268_v17  ;;  %7166 = vmatprep.subr.msk.bf16.mxu0 %vm1409_vm1, %v7164_v20  ;;  %v8286_v17 = vld [vmem:[%s11371_s24 + $0x188] ss:$12 sps:$4 sm:$0xff]   ;;  %v8289_v20 = vld [vmem:[%s11371_s24 + $0x1a0] ss:$0 sps:$4 sm:$0xff]  }
 0x106   :  { %7789 = vmatprep.subr.bf16.mxu1 %v11335_v7 }
 0x108   :  { %2115 = vmatpush1.bf16.msra.mxu0 %v2100_v23  ;;  %v8285_v23 = vld [vmem:[%s11372_s28 + $0x58] sm:$0xff]  }
 0x109   :  { %7790 = vmatpush3.bf16.msra.mxu1 %v2106_v24  ;;  %2357 = vmatprep.subr.bf16.mxu0 %v8275_v21  ;;  %v2349_v21 = vsel %vm1409_vm1, %v7205_v18, 0  ;;  %v8290_v24 = vld [vmem:[%s11372_s28 + $0x60] sm:$0xff]   ;;  %v2597_v18 = vld [vmem:[%s11373_s4 + $0x10] sm:$0xff] }
 0x10a   :  { %7803 = vmatprep.subr.bf16.mxu1 %v11335_v7  ;;  %7780 = vmatmul.mubr.msk.bf16.gmra.mrb[8].mxu1 %vm1399_vm2, %v8267_v22 }
 0x10b   :  { %7127 = vmatmul.mubr.msk.bf16.gmra.mrb[8].mxu0 %vm1399_vm2, %v8267_v22  ;;  %7791 = vmatprep.mubr.msk.bf16.mxu1 %vm8664_vm0, %v11335_v7  ;;  %v2355_v22 = vsel %vm1409_vm1, %v8289_v20, 0 }
 0x10c   :  { %2140 = vmatprep.mubr.bf16.mxu0 %v11333_v16 }
 0x112   :  { %7792 = vmatmul.mubr.msk.bf16.vlgmr.msra.gmra.mrb[0].mxu1 %vm1399_vm2, %v8272_v25 }
 0x113   :  { %7167 = vmatmul.mubr.msk.bf16.vlgmr.msra.gmra.mrb[0].mxu0 %vm1399_vm2, %v8272_v25  ;;  %7804 = vmatpush3.bf16.msra.mxu1 %v8276_v8  ;;  %v8291_v25 = vld [vmem:[%s11372_s28 + $0x68] sm:$0xff]   ;;  %v2611_v8 = vld [vmem:[%s11373_s4 + $0x80] sm:$0xff] }
 0x114   :  { %2358 = vmatpush1.bf16.msra.mxu0 %v8273_v26  ;;  %7795 = vmatprep.mubr.msk.bf16.mxu1 %vm8664_vm0, %v11335_v7  ;;  %v8292_v26 = vld [vmem:[%s11372_s28 + $0x70] sm:$0xff]  }
 0x115   :  { %2359 = vmatprep.subr.bf16.mxu0 %v8279_v9  ;;  %2150 = vmatprep.mubr.bf16.mxu0 %v11333_v16  ;;  %v2612_v9 = vld [vmem:[%s11373_s4 + $0x88] sm:$0xff] }
 0x116   :  { %7805 = vmatprep.subr.bf16.mxu1 %v11335_v7 }
 0x117   :  { %7806 = vmatpush3.bf16.msra.mxu1 %v8281_v11  ;;  %v2595_v11 = vld [vmem:[%s11373_s4] sm:$0xff] }
 0x118   :  { %2360 = vmatpush1.bf16.msra.mxu0 %v8277_v10  ;;  %7807 = vmatprep.subr.bf16.mxu1 %v11335_v7  ;;  %v7947_v10 = vpack.c.bf16 %v2612_v9, %v2611_v8  ;;  %v2617_v8 = vld [vmem:[%s11373_s4 + $0xb0] sm:$0xff]  ;;  %v2618_v9 = vld [vmem:[%s11373_s4 + $0xb8] sm:$0xff] }
 0x119   :  { %2361 = vmatprep.subr.bf16.mxu0 %v8284_v12  ;;  %v2596_v12 = vld [vmem:[%s11373_s4 + $0x8] sm:$0xff] }
 0x11a   :  { %7796 = vmatmul.mubr.msk.bf16.gmra.mrb[4].mxu1 %vm1399_vm2, %v8280_v14  ;;  %v7949_v13 = vpack.c.bf16 %v2596_v12, %v2595_v11  ;;  %v2601_v11 = vld [vmem:[%s11373_s4 + $0x30] sm:$0xff]  ;;  %v2602_v12 = vld [vmem:[%s11373_s4 + $0x38] sm:$0xff] }
 0x11b   :  { %7168 = vmatmul.mubr.msk.bf16.gmra.mrb[4].mxu0 %vm1399_vm2, %v8280_v14  ;;  %7799 = vmatprep.mubr.msk.bf16.mxu1 %vm8664_vm0, %v11335_v7  ;;  %v2613_v14 = vld [vmem:[%s11373_s4 + $0x90] sm:$0xff] }
 0x11c   :  { %2362 = vmatpush1.bf16.msra.mxu0 %v8282_v15  ;;  %2160 = vmatprep.mubr.bf16.mxu0 %v11333_v16  ;;  %v2614_v15 = vld [vmem:[%s11373_s4 + $0x98] sm:$0xff] }
 0x11d   :  { %7808 = vmatpush3.bf16.msra.mxu1 %v8286_v17  ;;  %7208 = vmatprep.subr.msk.bf16.mxu0 %vm1409_vm1, %v7206_v19  ;;  %v7951_v17 = vpack.c.bf16 %v2614_v15, %v2613_v14  ;;  %v2598_v19 = vld [vmem:[%s11373_s4 + $0x18] sm:$0xff]  ;;  %v2619_v14 = vld [vmem:[%s11373_s4 + $0xc0] sm:$0xff]  ;;  %v2620_v15 = vld [vmem:[%s11373_s4 + $0xc8] sm:$0xff] }
 0x11e   :  { %7809 = vmatprep.subr.bf16.mxu1 %v11335_v7  ;;  %v7953_v20 = vpack.c.bf16 %v2598_v19, %v2597_v18  ;;  %v2628_v18 = vld [vmem:[%s11373_s4 + $0x108] sm:$0xff]  ;;  %v7963_v19 = vpack.c.bf16 %v2620_v15, %v2619_v14  ;;  %v2623_v15 = vld [vmem:[%s11373_s4 + $0xe0] sm:$0xff] }
 0x120   :  { %2364 = vmatpush1.bf16.msra.mxu0 %v2349_v21  ;;  %v2615_v21 = vld [vmem:[%s11373_s4 + $0xa0] sm:$0xff] }
 0x121   :  { %7810 = vmatpush3.bf16.msra.mxu1 %v2355_v22  ;;  %7948 = vmatprep.subr.bf16.mxu0 %v7947_v10  ;;  %v2616_v22 = vld [vmem:[%s11373_s4 + $0xa8] sm:$0xff]  ;;  %v7959_v10 = vpack.c.bf16 %v2618_v9, %v2617_v8  ;;  %v2629_v8 = vld [vmem:[%s11373_s4 + $0x110] sm:$0xff]  ;;  %v2630_v9 = vld [vmem:[%s11373_s4 + $0x118] sm:$0xff] }
 0x122   :  { %7800 = vmatmul.mubr.msk.bf16.gmra.mrb[8].mxu1 %vm1399_vm2, %v8285_v23 }
 0x123   :  { %7169 = vmatmul.mubr.msk.bf16.gmra.mrb[8].mxu0 %vm1399_vm2, %v8285_v23  ;;  %7811 = vmatprep.mubr.msk.bf16.mxu1 %vm8664_vm0, %v11335_v7  ;;  %v7955_v23 = vpack.c.bf16 %v2616_v22, %v2615_v21  ;;  %v2604_v22 = vld [vmem:[%s11373_s4 + $0x48] sm:$0xff] }
 0x124   :  { %2389 = vmatprep.mubr.bf16.mxu0 %v11333_v16 }
 0x12a   :  { %7812 = vmatmul.mubr.msk.bf16.vlgmr.msra.gmra.mrb[0].mxu1 %vm1399_vm2, %v8290_v24 }
 0x12b   :  { %7209 = vmatmul.mubr.msk.bf16.vlgmr.msra.gmra.mrb[0].mxu0 %vm1399_vm2, %v8290_v24  ;;  %7815 = vmatprep.mubr.msk.bf16.mxu1 %vm8664_vm0, %v11335_v7  ;;  %v2599_v24 = vld [vmem:[%s11373_s4 + $0x20] sm:$0xff] }
 0x12c   :  { %2399 = vmatprep.mubr.bf16.mxu0 %v11333_v16  ;;  %7950 = vmatpush3.bf16.msra.mxu0 %v7949_v13  ;;  %v7961_v13 = vpack.c.bf16 %v2602_v12, %v2601_v11  ;;  %v2605_v11 = vld [vmem:[%s11373_s4 + $0x50] sm:$0xff]  ;;  %v7983_v12 = vpack.c.bf16 %v2630_v9, %v2629_v8  ;;  %v2626_v8 = vld [vmem:[%s11373_s4 + $0xf8] sm:$0xff] }
 0x12d   :  { %7952 = vmatprep.subr.bf16.mxu0 %v7951_v17  ;;  %v2627_v17 = vld [vmem:[%s11373_s4 + $0x100] sm:$0xff] }
 0x12e   :  { %v7980_v21 = vpack.c.bf16 %v2628_v18, %v2627_v17  ;;  %v2624_v17 = vld [vmem:[%s11373_s4 + $0xe8] sm:$0xff] }
 0x12f   :  { %v7971_v18 = vpack.c.bf16 %v2624_v17, %v2623_v15 }
 0x130   :  { %7954 = vmatpush3.bf16.msra.mxu0 %v7953_v20  ;;  %v2603_v20 = vld [vmem:[%s11373_s4 + $0x40] sm:$0xff] }
 0x131   :  { %7956 = vmatprep.subr.bf16.mxu0 %v7955_v23  ;;  %v11331_v23 = vmov 0.0|0.0  }
 0x132   :  { %7816 = vmatmul.mubr.msk.bf16.gmra.mrb[4].mxu1 %vm1399_vm2, %v8291_v25  ;;  %7979 = vmatprep.subr.bf16.mxu1 %v11331_v23 }
 0x133   :  { %7210 = vmatmul.mubr.msk.bf16.gmra.mrb[4].mxu0 %vm1399_vm2, %v8291_v25  ;;  %7819 = vmatprep.mubr.msk.bf16.mxu1 %vm8664_vm0, %v11335_v7  ;;  %v2600_v25 = vld [vmem:[%s11373_s4 + $0x28] sm:$0xff] }
 0x134   :  { %2409 = vmatprep.mubr.bf16.mxu0 %v11333_v16  ;;  %7981 = vmatpush3.bf16.msra.mxu1 %v7980_v21  ;;  %v2607_v21 = vld [vmem:[%s11373_s4 + $0x60] sm:$0xff] }
 0x135   :  { %7982 = vmatprep.subr.bf16.mxu1 %v11331_v23 }
 0x138   :  { %7984 = vmatpush3.bf16.msra.mxu1 %v7983_v12  ;;  %v2633_v12 = vld [vmem:[%s11373_s4 + $0x130] sm:$0xff] }
 0x139   :  { %7985 = vmatprep.subr.bf16.mxu1 %v11331_v23 }
 0x13a   :  { %7820 = vmatmul.mubr.msk.bf16.gmra.mrb[8].mxu1 %vm1399_vm2, %v8292_v26 }
 0x13b   :  { %7211 = vmatmul.mubr.msk.bf16.gmra.mrb[8].mxu0 %vm1399_vm2, %v8292_v26  ;;  %7837 = vmatprep.mubr.msk.f32.mxu1 %vm8664_vm0, %v11335_v7  ;;  %v7957_v26 = vpack.c.bf16 %v2600_v25, %v2599_v24  ;;  %v7965_v24 = vpack.c.bf16 %v2604_v22, %v2603_v20  ;;  %v2621_v25 = vld [vmem:[%s11373_s4 + $0xd0] sm:$0xff]  ;;  %v2632_v20 = vld [vmem:[%s11373_s4 + $0x128] sm:$0xff] }
 0x13d   :  { %7958 = vmatpush3.bf16.msra.mxu0 %v7957_v26  ;;  %v2622_v26 = vld [vmem:[%s11373_s4 + $0xd8] sm:$0xff] }
 0x13e   :  { %7960 = vmatprep.subr.bf16.mxu0 %v7959_v10  ;;  %v7967_v10 = vpack.c.bf16 %v2622_v26, %v2621_v25  ;;  %v2625_v26 = vld [vmem:[%s11373_s4 + $0xf0] sm:$0xff] }
 0x13f   :  { %v7975_v9 = vpack.c.bf16 %v2626_v8, %v2625_v26 }
 0x141   :  { %7962 = vmatpush3.bf16.msra.mxu0 %v7961_v13  ;;  %v2606_v13 = vld [vmem:[%s11373_s4 + $0x58] sm:$0xff] }
 0x142   :  { %7964 = vmatprep.subr.bf16.mxu0 %v7963_v19  ;;  %v7969_v14 = vpack.c.bf16 %v2606_v13, %v2605_v11  ;;  %v2631_v19 = vld [vmem:[%s11373_s4 + $0x120] sm:$0xff]  ;;  %v2610_v11 = vld [vmem:[%s11373_s4 + $0x78] sm:$0xff] }
 0x143   :  { %v7986_v22 = vpack.c.bf16 %v2632_v20, %v2631_v19 }
 0x145   :  { %7966 = vmatpush3.bf16.msra.mxu0 %v7965_v24  ;;  %v2608_v24 = vld [vmem:[%s11373_s4 + $0x68] sm:$0xff]  ;;  %7987 = vmatpush3.bf16.msra.mxu1 %v7986_v22 }
 0x146   :  { %7968 = vmatprep.subr.bf16.mxu0 %v7967_v10  ;;  %v7973_v25 = vpack.c.bf16 %v2608_v24, %v2607_v21  ;;  %7835 = vmatprep.subr.mxu1 %v11335_v7  ;;  %v2609_v10 = vld [vmem:[%s11373_s4 + $0x70] sm:$0xff]  ;;  %s11378_s4 = sld [smem:[#allocation46_spill]] }
 0x147   :  { %v7977_v13 = vpack.c.bf16 %v2610_v11, %v2609_v10 }
 0x149   :  { %7970 = vmatpush3.bf16.msra.mxu0 %v7969_v14  ;;  %7836 = vmatpush3.msra.mxu1 %v2633_v12 }
 0x14a   :  { %7972 = vmatprep.subr.bf16.mxu0 %v7971_v18 }
 0x14d   :  { %7974 = vmatpush3.bf16.msra.mxu0 %v7973_v25 }
 0x14e   :  { %7976 = vmatprep.subr.bf16.mxu0 %v7975_v9 }
 0x151   :  { %7978 = vmatpush3.bf16.msra.mxu0 %v7977_v13 }
 0x1fd   :  { %v10291_v14 = vpop.f32.mrb[0].mxu1 }
 0x1fe   :  { %v10293_v15 = vpop.f32.mrb[0].mxu0  ;;  %v2536_v17 = vmul.f32 %v10291_v14, %v10291_v14  ;;  %v7813_v18 = vpop.f32.mrb[1].mxu1  ;;  %v2517_v20 = vsel %vm1399_vm2, %v10291_v14, 0.0 }
 0x1ff   :  { %v10297_v19 = vpop.f32.mrb[1].mxu0  ;;  %v2534_v21 = vmul.f32 %v10293_v15, %v10293_v15  ;;  %v10303_v22 = vpop.f32.mrb[2].mxu1 }
 0x200   :  { %v10305_v24 = vpop.f32.mrb[2].mxu0  ;;  %v2535_v25 = vmul.f32 %v10297_v19, %v10297_v19  ;;  %v2518_v26 = vsel %vm1399_vm2, %v10303_v22, 0.0  ;;  %v2539_v8 = vmul.f32 %v10303_v22, %v10303_v22  ;;  %v7814_v10 = vpop.f32.mrb[3].mxu1  ;;  %v2574_v16 = vsel %vm1399_vm2, %v2536_v17, 0.0 }
 0x201   :  { %v2495_v9 = vadd.f32 %v10305_v24, %v10293_v15  ;;  %v10315_v11 = vpop.f32.mrb[3].mxu0  ;;  %v2519_v12 = vadd.f32 %v2518_v26, %v2517_v20  ;;  %v2537_v13 = vmul.f32 %v10305_v24, %v10305_v24 }
 0x202   :  { %v2506_v18 = vadd.f32 %v10315_v11, %v10297_v19  ;;  %v2538_v23 = vmul.f32 %v10315_v11, %v10315_v11  ;;  %v2575_v7 = vsel %vm1399_vm2, %v2539_v8, 0.0 }
 0x203   :  { %v2576_v6 = vadd.f32 %v2575_v7, %v2574_v16  ;;  %v2552_v59 = vadd.f32 %v2537_v13, %v2534_v21 }
 0x204   :  { %v2563_v5 = vadd.f32 %v2538_v23, %v2535_v25 }
 0x205   :  { %v10325_v10 = vpop.f32.mrb[4].mxu1 }
 0x206   :  { %v10327_v58 = vpop.f32.mrb[4].mxu0  ;;  %v2520_v20 = vsel %vm1399_vm2, %v10325_v10, 0.0  ;;  %v2542_v26 = vmul.f32 %v10325_v10, %v10325_v10  ;;  %v7817_v57 = vpop.f32.mrb[5].mxu1 }
 0x207   :  { %v2496_v4 = vadd.f32 %v2495_v9, %v10327_v58  ;;  %v2540_v17 = vmul.f32 %v10327_v58, %v10327_v58  ;;  %v10336_v8 = vpop.f32.mrb[5].mxu0  ;;  %v2521_v7 = vadd.f32 %v2520_v20, %v2519_v12  ;;  %v10341_v21 = vpop.f32.mrb[6].mxu1 }
 0x208   :  { %v2507_v16 = vadd.f32 %v2506_v18, %v10336_v8  ;;  %v2541_v23 = vmul.f32 %v10336_v8, %v10336_v8  ;;  %v10343_v25 = vpop.f32.mrb[6].mxu0  ;;  %v2577_v13 = vsel %vm1399_vm2, %v2542_v26, 0.0  ;;  %v2522_v9 = vsel %vm1399_vm2, %v10341_v21, 0.0  ;;  %v7818_v56 = vpop.f32.mrb[7].mxu1 }
 0x209   :  { %v2553_v3 = vadd.f32 %v2552_v59, %v2540_v17  ;;  %v2545_v57 = vmul.f32 %v10341_v21, %v10341_v21  ;;  %v10350_v12 = vpop.f32.mrb[7].mxu0  ;;  %v2578_v18 = vadd.f32 %v2577_v13, %v2576_v6  ;;  %v2523_v2 = vadd.f32 %v2522_v9, %v2521_v7 }
 0x20a   :  { %v2564_v20 = vadd.f32 %v2563_v5, %v2541_v23  ;;  %v2497_v55 = vadd.f32 %v2496_v4, %v10343_v25  ;;  %v2543_v26 = vmul.f32 %v10343_v25, %v10343_v25  ;;  %v2508_v59 = vadd.f32 %v2507_v16, %v10350_v12 }
 0x20b   :  { %v2579_v1 = vsel %vm1399_vm2, %v2545_v57, 0.0  ;;  %v2544_v17 = vmul.f32 %v10350_v12, %v10350_v12 }
 0x20c   :  { %v2580_v54 = vadd.f32 %v2579_v1, %v2578_v18  ;;  %v2554_v0 = vadd.f32 %v2553_v3, %v2543_v26 }
 0x20d   :  { %v2565_v56 = vadd.f32 %v2564_v20, %v2544_v17  ;;  %v10359_v53 = vpop.f32.mrb[8].mxu1 }
 0x20e   :  { %v10361_v6 = vpop.f32.mrb[8].mxu0  ;;  %v2524_v4 = vsel %vm1399_vm2, %v10359_v53, 0.0  ;;  %v2548_v5 = vmul.f32 %v10359_v53, %v10359_v53  ;;  %v7821_v23 = vpop.f32.mrb[9].mxu1 }
 0x20f   :  { %v2498_v7 = vadd.f32 %v2497_v55, %v10361_v6  ;;  %v2546_v16 = vmul.f32 %v10361_v6, %v10361_v6  ;;  %v10370_v13 = vpop.f32.mrb[9].mxu0  ;;  %v2525_v1 = vadd.f32 %v2524_v4, %v2523_v2  ;;  %v10375_v57 = vpop.f32.mrb[10].mxu1 }
 0x210   :  { %v2509_v3 = vadd.f32 %v2508_v59, %v10370_v13  ;;  %v2547_v9 = vmul.f32 %v10370_v13, %v10370_v13  ;;  %v10377_v18 = vpop.f32.mrb[10].mxu0  ;;  %v2581_v20 = vsel %vm1399_vm2, %v2548_v5, 0.0  ;;  %v2526_v55 = vsel %vm1399_vm2, %v10375_v57, 0.0  ;;  %v7822_v23 = vpop.f32.mrb[11].mxu1 }
 0x211   :  { %v2555_v26 = vadd.f32 %v2554_v0, %v2546_v16  ;;  %v2551_v17 = vmul.f32 %v10375_v57, %v10375_v57  ;;  %v10384_v2 = vpop.f32.mrb[11].mxu0  ;;  %v2582_v59 = vadd.f32 %v2581_v20, %v2580_v54  ;;  %v2527_v63 = vadd.f32 %v2526_v55, %v2525_v1 }
 0x212   :  { %v2566_v4 = vadd.f32 %v2565_v56, %v2547_v9  ;;  %v2499_v52 = vadd.f32 %v2498_v7, %v10377_v18  ;;  %v2549_v5 = vmul.f32 %v10377_v18, %v10377_v18  ;;  %v2510_v0 = vadd.f32 %v2509_v3, %v10384_v2 }
 0x213   :  { %v2583_v62 = vsel %vm1399_vm2, %v2551_v17, 0.0  ;;  %v2550_v16 = vmul.f32 %v10384_v2, %v10384_v2  ;;  %v2528_v51 = vrot.slane %v2527_v63, 4 }
 0x214   :  { %v2584_v61 = vadd.f32 %v2583_v62, %v2582_v59  ;;  %v2500_v23 = vrot.slane %v2499_v52, 4  ;;  %v2556_v50 = vadd.f32 %v2555_v26, %v2549_v5  ;;  %v2511_v60 = vrot.slane %v2510_v0, 4 }
 0x215   :  { %v2567_v54 = vadd.f32 %v2566_v4, %v2550_v16  ;;  %v2529_v56 = vadd.f32 %v2528_v51, %v2527_v63 }
 0x216   :  { %v2585_v1 = vrot.slane %v2584_v61, 4  ;;  %v2501_v9 = vadd.f32 %v2500_v23, %v2499_v52  ;;  %v2557_v7 = vrot.slane %v2556_v50, 4  ;;  %v2512_v20 = vadd.f32 %v2511_v60, %v2510_v0 }
 0x217   :  { %v2568_v55 = vrot.slane %v2567_v54, 4  ;;  %v2530_v17 = vrot.slane %v2529_v56, 2 }
 0x218   :  { %v2586_v49 = vadd.f32 %v2585_v1, %v2584_v61  ;;  %v2502_v37 = vrot.slane %v2501_v9, 2  ;;  %v2558_v48 = vadd.f32 %v2557_v7, %v2556_v50  ;;  %v2513_v3 = vrot.slane %v2512_v20, 2 }
 0x219   :  { %v2569_v36 = vadd.f32 %v2568_v55, %v2567_v54  ;;  %v2531_v47 = vadd.f32 %v2530_v17, %v2529_v56 }
 0x21a   :  { %v2587_v35 = vrot.slane %v2586_v49, 2  ;;  %v2503_v46 = vadd.f32 %v2502_v37, %v2501_v9  ;;  %v2559_v62 = vrot.slane %v2558_v48, 2  ;;  %v2514_v59 = vadd.f32 %v2513_v3, %v2512_v20 }
 0x21b   :  { %v2570_v26 = vrot.slane %v2569_v36, 2  ;;  %v2532_v5 = vrot.slane %v2531_v47, 1 }
 0x21c   :  { %v2588_v4 = vadd.f32 %v2587_v35, %v2586_v49  ;;  %v2504_v51 = vrot.slane %v2503_v46, 1  ;;  %v2560_v63 = vadd.f32 %v2559_v62, %v2558_v48  ;;  %v2515_v52 = vrot.slane %v2514_v59, 1 }
 0x21d   :  { %v2571_v16 = vadd.f32 %v2570_v26, %v2569_v36  ;;  %v2533_v23 = vadd.f32 %v2532_v5, %v2531_v47  ;;  %v11374_v36 = vmov 0.0   ;;  %v11375_v49 = vmov 0   ;;  %v2814_v47 = vld [vmem:[%s11376_s25] sm:$0x3f] }
 0x21e   :  { %v2589_v60 = vrot.slane %v2588_v4, 1  ;;  %v2561_v0 = vrot.slane %v2560_v63, 1  ;;  %v2505_v1 = vadd.f32 %v2504_v51, %v2503_v46  ;;  %v2516_v54 = vadd.f32 %v2515_v52, %v2514_v59  ;;  %v2815_v46 = vld [vmem:[%s11376_s25 + $0x8] sm:$0x3f] }
 0x21f   :  { %v2572_v61 = vrot.slane %v2571_v16, 1  ;;  %7216 = vmatprep.subr.msk.mxu1 %vm2821_vm4, %v2815_v46 }
 0x220   :  { %v2590_v50 = vadd.f32 %v2589_v60, %v2588_v4  ;;  %v2562_v7 = vadd.f32 %v2561_v0, %v2560_v63  ;;  %v8667_v63 = vmov 1966171168  }
 0x221   :  { %v2573_v56 = vadd.f32 %v2572_v61, %v2571_v16  ;;  %v2788_v52 = vunpack.c.l.s4 %v8667_v63  ;;  %v2790_v16 = vlaneseq }
 0x222   :  { %v2594_v37 = vsel %vm2591_vm3, %v2533_v23, %v2590_v50  ;;  %v2592_v48 = vsel %vm2591_vm3, %v2505_v1, %v2562_v7 }
 0x223   :  { %7838 = vmatmul.mubr.msk.f32.vlgmr.msra.gmra.mrb[12].mxu1 %vm1399_vm2, %v2594_v37  ;;  %v2593_v35 = vsel %vm2591_vm3, %v2516_v54, %v2573_v56  ;;  %v2789_v60 = vunpack.c.0.s8 %v2788_v52  ;;  %v2791_v0 = vshrl.u32 %v2790_v16, 7  ;;  %v2783_v54 = vld [vmem:[%s11309_s6] sm:$0x1] }
 0x224   :  { %2701 = vmatprep.mubr.f32.mxu0 %v2593_v35  ;;  %2895 = vmatprep.mubr.f32.mxu1 %v11374_v36  ;;  %v2804_v37 = vld [vmem:[%s11310_s7] sm:$0x1] }
 0x225   :  { %2702 = vmatmul.mubr.f32.vlgmr.msra.gmra.mrb[12].mxu0 %v2592_v48  ;;  %7217 = vmatpush1.msk.msra.mxu1 %vm2821_vm4, %v2814_v47  ;;  %v10408_v61 = vsub.s32 %v2789_v60, %v2791_v0  ;;  %v10418_v48 = vsub.s32 0, %v2791_v0 }
 0x226   :  { %3109 = vmatprep.mubr.bf16.mxu0 %v11375_v49  ;;  %7840 = vmatprep.subr.mxu1 %v11374_v36 }
 0x2f6   :  { %v2773_v9 = vpop.f32.mrb[12].mxu1 }
 0x2f7   :  { %v7839_v20 = vpop.f32.mrb[13].mxu1 }
 0x2f8   :  { %v7629_v55 = vpop.f32.mrb[12].mxu0 }
 0x2f9   :  { %v7630_v17 = vpop.f32.mrb[13].mxu0 }
 0x2fa   :  { %v7631_v3 = vadd.f32 %v7630_v17, %v7629_v55  ;;  %v10431_v55 = vld [vmem:[%s11377_s5] sm:$0xff]   ;;  %v10435_v17 = vsub.s32 1, %v2791_v0 }
 0x2fc   :  { %v2774_v62 = vadd.f32 %v7631_v3, %v2773_v9  ;;  %v2816_v9 = vld [vmem:[%s11376_s25 + $0x10] sm:$0x3f] }
 0x2fe   :  { %v2777_v59 = vmul.f32 0.00040064103, %v2774_v62 }
 0x300   :  { %v2778_v26 = vmul.f32 %v2777_v59, %v2777_v59 }
 0x302   :  { %v2780_v5 = vrot.slane %v2778_v26, 7 }
 0x304   :  { %v2782_v4 = vsub.f32 %v2777_v59, %v2780_v5 }
 0x306   :  { %v2784_v51 = vadd.f32 1e-05, %v2782_v4 }
 0x308   :  { %8415 = vrsqrt.f32 %v2784_v51 }
 0x312   :  { %v8416_v23 = vpop.eup %8415 }
 0x313   :  { %v2793_v50 = vrot.slane %v8416_v23, %v10408_v61 }
 0x315   :  { %v2794_v1 = vcombine.high %v2793_v50, %v2793_v50 }
 0x317   :  { %v2801_v56 = vrot.slane %v2794_v1, %v10408_v61 }
 0x319   :  { %v2803_v7 = vmul.f32 %v2801_v56, %v2783_v54 }
 0x31b   :  { %v2805_v35 = vmul.f32 %v2803_v7, %v2777_v59 }
 0x31d   :  { %v2806_v46 = vsub.f32 %v2804_v37, %v2805_v35 }
 0x31f   :  { %v2811_v47 = vrot.slane %v2806_v46, %v10418_v48 }
 0x321   :  { %v2813_v20 = vsel %vm2591_vm3, %v2803_v7, %v2811_v47 }
 0x322   :  { %7218 = vmatmul.mubr.msk.f32.vlgmr.msra.gmra.mrb[14].mxu1 %vm2817_vm5, %v2813_v20 }
 0x323   :  { %7841 = vmatpush3.msk.msra.mxu1 %vm2821_vm4, %v2816_v9  ;;  %7842 = vmatprep.mubr.msk.f32.mxu1 %vm8664_vm0, %v11374_v36 }
 0x326   :  { %7843 = vmatmul.mubr.msk.f32.vlgmr.msra.gmra.mrb[16].mxu1 %vm2817_vm5, %v2813_v20 }
 0x327   :  { %7851 = vmatprep.mubr.msk.bf16.mxu1 %vm3070_vm6, %v10431_v55 }
 0x3f5   :  { %v2897_v3 = vpop.f32.mrb[14].mxu1 }
 0x3f6   :  { %v2975_v62 = vrot.slane %v2897_v3, %v10418_v48  ;;  %v2899_v59 = vpop.f32.mrb[15].mxu1  ;;  %v3005_v26 = vrot.slane %v2897_v3, %v10435_v17 }
 0x3f7   :  { %v2979_v5 = vrot.slane %v2899_v59, %v10418_v48  ;;  %v3009_v4 = vrot.slane %v2899_v59, %v10435_v17 }
 0x3f8   :  { %v2984_v51 = vmul.f32 %v2975_v62, %v10293_v15  ;;  %v2987_v63 = vmul.f32 %v2975_v62, %v10305_v24  ;;  %v2990_v52 = vmul.f32 %v2975_v62, %v10327_v58  ;;  %v2993_v16 = vmul.f32 %v2975_v62, %v10343_v25 }
 0x3f9   :  { %v2968_v60 = vpop.f32.mrb[16].mxu1  ;;  %v2985_v0 = vmul.f32 %v2979_v5, %v10297_v19  ;;  %v2988_v23 = vmul.f32 %v2979_v5, %v10315_v11  ;;  %v2991_v50 = vmul.f32 %v2979_v5, %v10336_v8  ;;  %v2994_v1 = vmul.f32 %v2979_v5, %v10350_v12 }
 0x3fa   :  { %v2983_v54 = vrot.slane %v2968_v60, %v10418_v48  ;;  %v3013_v56 = vrot.slane %v2968_v60, %v10435_v17  ;;  %v7844_v15 = vpop.f32.mrb[17].mxu1  ;;  %v3014_v7 = vadd.f32 %v3005_v26, %v2984_v51  ;;  %v3017_v24 = vadd.f32 %v3005_v26, %v2987_v63 }
 0x3fb   :  { %v3015_v37 = vadd.f32 %v3009_v4, %v2985_v0  ;;  %v3018_v58 = vadd.f32 %v3009_v4, %v2988_v23  ;;  %v3021_v35 = vadd.f32 %v3009_v4, %v2991_v50  ;;  %v3024_v25 = vadd.f32 %v3009_v4, %v2994_v1 }
 0x3fc   :  { %v3032_v46 = vmax.f32 %v3014_v7, 0.0  ;;  %v3035_v47 = vmax.f32 %v3017_v24, 0.0  ;;  %v2986_v19 = vmul.f32 %v2983_v54, %v10291_v14  ;;  %v2989_v11 = vmul.f32 %v2983_v54, %v10303_v22 }
 0x3fd   :  { %v3033_v8 = vmax.f32 %v3015_v37, 0.0  ;;  %v3036_v9 = vmax.f32 %v3018_v58, 0.0  ;;  %v3039_v12 = vmax.f32 %v3021_v35, 0.0  ;;  %v3042_v20 = vmax.f32 %v3024_v25, 0.0 }
 0x3fe   :  { %v3050_v3 = vpack.c.bf16 %v3035_v47, %v3032_v46  ;;  %v3016_v59 = vadd.f32 %v3013_v56, %v2986_v19  ;;  %v3019_v60 = vadd.f32 %v3013_v56, %v2989_v11  ;;  %v3020_v15 = vadd.f32 %v3005_v26, %v2990_v52 }
 0x3ff   :  { %v3051_v51 = vpack.c.bf16 %v3036_v9, %v3033_v8  ;;  %v3054_v63 = vpack.c.bf16 %v3042_v20, %v3039_v12  ;;  %v3023_v0 = vadd.f32 %v3005_v26, %v2993_v16  ;;  %v2992_v23 = vmul.f32 %v2983_v54, %v10325_v10 }
 0x400   :  { %v3034_v50 = vmax.f32 %v3016_v59, 0.0  ;;  %v3037_v1 = vmax.f32 %v3019_v60, 0.0  ;;  %v3038_v7 = vmax.f32 %v3020_v15, 0.0  ;;  %v2995_v14 = vmul.f32 %v2983_v54, %v10341_v21  ;;  %v8297_v15 = vld [vmem:[%s11378_s4] ss:$8 sps:$4 sm:$0xff]  }
 0x401   :  { %3077 = vmatprep.subr.bf16.mxu0 %v3051_v51  ;;  %v3041_v22 = vmax.f32 %v3023_v0, 0.0  ;;  %v3022_v24 = vadd.f32 %v3013_v56, %v2992_v23  ;;  %v2997_v37 = vmul.f32 %v2979_v5, %v10370_v13  ;;  %v3000_v58 = vmul.f32 %v2979_v5, %v10384_v2  ;;  %v8308_v0 = vld [vmem:[%s11378_s4 + $0x14c] ss:$8 sps:$4 sm:$0xff]   ;;  %v8303_v23 = vld [vmem:[%s11378_s4 + $0x10] ss:$8 sps:$4 sm:$0xff]  }
 0x402   :  { %3078 = vmatpush1.bf16.msra.mxu0 %v3050_v3  ;;  %v3052_v35 = vpack.c.bf16 %v3037_v1, %v3034_v50  ;;  %v3025_v52 = vadd.f32 %v3013_v56, %v2995_v14  ;;  %v2996_v25 = vmul.f32 %v2975_v62, %v10361_v6  ;;  %v2999_v16 = vmul.f32 %v2975_v62, %v10377_v18  ;;  %v8306_v50 = vld [vmem:[%s11378_s4 + $0x148] ss:$8 sps:$4 sm:$0xff]   ;;  %v8311_v1 = vld [vmem:[%s11378_s4 + $0x24] ss:$8 sps:$4 sm:$0xff]  }
 0x403   :  { %3079 = vmatprep.subr.bf16.mxu0 %v3054_v63  ;;  %v3053_v10 = vpack.c.bf16 %v3041_v22, %v3038_v7  ;;  %v3040_v46 = vmax.f32 %v3022_v24, 0.0  ;;  %v3027_v47 = vadd.f32 %v3009_v4, %v2997_v37  ;;  %v3030_v19 = vadd.f32 %v3009_v4, %v3000_v58  ;;  %v8314_v7 = vld [vmem:[%s11378_s4 + $0x15c] ss:$8 sps:$4 sm:$0xff]   ;;  %v8309_v14 = vld [vmem:[%s11378_s4 + $0x20] ss:$8 sps:$4 sm:$0xff]  }
 0x404   :  { %7845 = vmatprep.subr.bf16.mxu1 %v3052_v35  ;;  %v3043_v21 = vmax.f32 %v3025_v52, 0.0  ;;  %v3026_v11 = vadd.f32 %v3005_v26, %v2996_v25  ;;  %v3029_v8 = vadd.f32 %v3005_v26, %v2999_v16  ;;  %v2998_v13 = vmul.f32 %v2983_v54, %v10359_v53  ;;  %v8312_v22 = vld [vmem:[%s11378_s4 + $0x158] ss:$8 sps:$4 sm:$0xff]   ;;  %v8317_v24 = vld [vmem:[%s11378_s4 + $0x34] ss:$8 sps:$4 sm:$0xff]  }
 0x405   :  { %7846 = vmatpush3.bf16.msra.mxu1 %v3052_v35  ;;  %v3045_v2 = vmax.f32 %v3027_v47, 0.0  ;;  %v3048_v5 = vmax.f32 %v3030_v19, 0.0  ;;  %v3001_v9 = vmul.f32 %v2983_v54, %v10375_v57  ;;  %v8294_v57 = vld [vmem:[%s11377_s5 + $0x8] ss:$0 sps:$4 sm:$0xff]   ;;  %v8302_v54 = vld [vmem:[%s11378_s4 + $0x13c] ss:$8 sps:$4 sm:$0xff]  }
 0x406   :  { %3080 = vmatpush1.bf16.msra.mxu0 %v3053_v10  ;;  %v3055_v6 = vpack.c.bf16 %v3043_v21, %v3040_v46  ;;  %v3044_v12 = vmax.f32 %v3026_v11, 0.0  ;;  %v3047_v18 = vmax.f32 %v3029_v8, 0.0  ;;  %v3028_v62 = vadd.f32 %v3013_v56, %v2998_v13  ;;  %v8320_v37 = vld [vmem:[%s11378_s4 + $0x16c] ss:$8 sps:$4 sm:$0xff]   ;;  %v8315_v58 = vld [vmem:[%s11378_s4 + $0x30] ss:$8 sps:$4 sm:$0xff]  }
 0x407   :  { %v3057_v20 = vpack.c.bf16 %v3048_v5, %v3045_v2  ;;  %v3031_v59 = vadd.f32 %v3013_v56, %v3001_v9  ;;  %v8299_v56 = vld [vmem:[%s11378_s4 + $0x4] ss:$8 sps:$4 sm:$0xff]   ;;  %v8321_v16 = vld [vmem:[%s11378_s4 + $0x40] ss:$8 sps:$4 sm:$0xff]   ;;  %v8329_v46 = vld [vmem:[%s11378_s4 + $0x54] ss:$8 sps:$4 sm:$0xff]  }
 0x408   :  { %7847 = vmatprep.subr.bf16.mxu1 %v3055_v6  ;;  %v3056_v4 = vpack.c.bf16 %v3047_v18, %v3044_v12  ;;  %v3046_v60 = vmax.f32 %v3028_v62, 0.0  ;;  %v8323_v52 = vld [vmem:[%s11378_s4 + $0x44] ss:$8 sps:$4 sm:$0xff]   ;;  %v8327_v19 = vld [vmem:[%s11378_s4 + $0x50] ss:$8 sps:$4 sm:$0xff]  }
 0x409   :  { %3081 = vmatprep.subr.bf16.mxu0 %v3057_v20  ;;  %7848 = vmatpush3.bf16.msra.mxu1 %v3055_v6  ;;  %v3049_v26 = vmax.f32 %v3031_v59, 0.0  ;;  %v8326_v25 = vld [vmem:[%s11378_s4 + $0x17c] ss:$8 sps:$4 sm:$0xff]   ;;  %v8332_v47 = vld [vmem:[%s11378_s4 + $0x18c] ss:$8 sps:$4 sm:$0xff]  }
 0x40a   :  { %3082 = vmatpush1.bf16.msra.mxu0 %v3056_v4  ;;  %v8330_v21 = vld [vmem:[%s11378_s4 + $0x188] ss:$8 sps:$4 sm:$0xff]   ;;  %v8335_v11 = vld [vmem:[%s11378_s4 + $0x64] ss:$8 sps:$4 sm:$0xff]   ;;  %v8336_v2 = vld [vmem:[%s11378_s4 + $0x198] ss:$8 sps:$4 sm:$0xff]  }
 0x40b   :  { %v3058_v53 = vpack.c.bf16 %v3049_v26, %v3046_v60  ;;  %7855 = vmatprep.subr.bf16.mxu0 %v3052_v35  ;;  %v8338_v8 = vld [vmem:[%s11378_s4 + $0x19c] ss:$8 sps:$4 sm:$0xff]   ;;  %v8333_v13 = vld [vmem:[%s11378_s4 + $0x60] ss:$8 sps:$4 sm:$0xff]   ;;  %v8344_v9 = vld [vmem:[%s11378_s4 + $0x1ac] ss:$8 sps:$4 sm:$0xff]  }
 0x40c   :  { %v8341_v5 = vld [vmem:[%s11378_s4 + $0x74] ss:$8 sps:$4 sm:$0xff]   ;;  %v8342_v12 = vld [vmem:[%s11378_s4 + $0x1a8] ss:$8 sps:$4 sm:$0xff]   ;;  %v8347_v18 = vld [vmem:[%s11378_s4 + $0x84] ss:$8 sps:$4 sm:$0xff]  }
 0x40d   :  { %7849 = vmatprep.subr.bf16.mxu1 %v3058_v53  ;;  %7223 = vmatmul.mubr.msk.bf16.vlgmr.msra.gmra.mrb[16].mxu0 %vm3070_vm6, %v10431_v55  ;;  %v8295_v55 = vld [vmem:[%s11377_s5 + $0xc] sm:$0xff]   ;;  %v8350_v62 = vld [vmem:[%s11378_s4 + $0x1bc] ss:$8 sps:$4 sm:$0xff]   ;;  %v8348_v59 = vld [vmem:[%s11378_s4 + $0x1b8] ss:$8 sps:$4 sm:$0xff]  }
 0x40e   :  { %7850 = vmatpush3.bf16.msra.mxu1 %v3058_v53  ;;  %7856 = vmatpush3.bf16.msra.mxu0 %v3052_v35  ;;  %v8318_v35 = vld [vmem:[%s11378_s4 + $0x168] ss:$8 sps:$4 sm:$0xff]   ;;  %v8356_v60 = vld [vmem:[%s11378_s4 + $0x1cc] ss:$8 sps:$4 sm:$0xff]  }
 0x40f   :  { %3194 = vmatprep.subr.bf16.mxu1 %v3051_v51  ;;  %7857 = vmatprep.subr.bf16.mxu0 %v3055_v6  ;;  %v8300_v51 = vld [vmem:[%s11378_s4 + $0x138] ss:$8 sps:$4 sm:$0xff]  }
 0x410   :  { %3119 = vmatprep.mubr.bf16.mxu0 %v11375_v49  ;;  %v8351_v26 = vld [vmem:[%s11378_s4 + $0x90] ss:$8 sps:$4 sm:$0xff]  }
 0x411   :  { %7852 = vmatmul.mubr.msk.bf16.vlgmr.msra.gmra.mrb[20].mxu1 %vm3070_vm6, %v8294_v57 }
 0x412   :  { %3195 = vmatpush1.bf16.msra.mxu1 %v3050_v3  ;;  %7858 = vmatpush3.bf16.msra.mxu0 %v3055_v6  ;;  %v8296_v3 = vld [vmem:[%s11377_s5 + $0x14] ss:$0 sps:$4 sm:$0xff]   ;;  %v8339_v6 = vld [vmem:[%s11378_s4 + $0x70] ss:$8 sps:$4 sm:$0xff]  }
 0x413   :  { %3196 = vmatprep.subr.bf16.mxu1 %v3054_v63  ;;  %7859 = vmatprep.subr.bf16.mxu0 %v3058_v53  ;;  %v8305_v63 = vld [vmem:[%s11378_s4 + $0x14] ss:$8 sps:$4 sm:$0xff]  }
 0x414   :  { %3226 = vmatprep.mubr.bf16.mxu1 %v11375_v49 }
 0x415   :  { %7224 = vmatmul.mubr.msk.bf16.gmra.mrb[20].mxu0 %vm3070_vm6, %v8294_v57  ;;  %v8359_v57 = vld [vmem:[%s11378_s4 + $0xa4] ss:$8 sps:$4 sm:$0xff]  }
 0x416   :  { %3197 = vmatpush1.bf16.msra.mxu1 %v3053_v10  ;;  %7860 = vmatpush3.bf16.msra.mxu0 %v3058_v53  ;;  %v8324_v10 = vld [vmem:[%s11378_s4 + $0x178] ss:$8 sps:$4 sm:$0xff]   ;;  %v8354_v53 = vld [vmem:[%s11378_s4 + $0x1c8] ss:$8 sps:$4 sm:$0xff]  }
 0x417   :  { %3198 = vmatprep.subr.bf16.mxu1 %v3057_v20  ;;  %7861 = vmatprep.mubr.msk.bf16.mxu0 %vm3070_vm6, %v8295_v55  ;;  %v8345_v20 = vld [vmem:[%s11378_s4 + $0x80] ss:$8 sps:$4 sm:$0xff]  }
 0x418   :  { %3897 = vmatprep.subr.bf16.mxu0 %v8302_v54  ;;  %v8357_v54 = vld [vmem:[%s11378_s4 + $0xa0] ss:$8 sps:$4 sm:$0xff]  }
 0x41a   :  { %3199 = vmatpush1.bf16.msra.mxu1 %v3056_v4  ;;  %v8353_v4 = vld [vmem:[%s11378_s4 + $0x94] ss:$8 sps:$4 sm:$0xff]  }
 0x41b   :  { %3554 = vmatprep.subr.bf16.mxu1 %v8299_v56  ;;  %v8360_v56 = vld [vmem:[%s11378_s4 + $0x1d8] ss:$8 sps:$4 sm:$0xff]  }
 0x41d   :  { %7232 = vmatmul.mubr.msk.bf16.vlgmr.msra.gmra.mrb[24].mxu1 %vm3070_vm6, %v8295_v55  ;;  %7862 = vmatmul.mubr.msk.bf16.vlgmr.msra.gmra.mrb[24].mxu0 %vm3070_vm6, %v8296_v3  ;;  %v8362_v55 = vld [vmem:[%s11378_s4 + $0x1dc] ss:$8 sps:$4 sm:$0xff]  }
 0x41e   :  { %3236 = vmatprep.mubr.bf16.mxu1 %v11375_v49  ;;  %3555 = vmatpush1.bf16.msra.mxu1 %v8297_v15  ;;  %v8365_v15 = vld [vmem:[%s11378_s4 + $0xb4] ss:$8 sps:$4 sm:$0xff]  }
 0x41f   :  { %3898 = vmatpush1.bf16.msra.mxu0 %v8300_v51  ;;  %3556 = vmatprep.subr.bf16.mxu1 %v8305_v63  ;;  %v8366_v51 = vld [vmem:[%s11378_s4 + $0x1e8] ss:$8 sps:$4 sm:$0xff]   ;;  %v8368_v63 = vld [vmem:[%s11378_s4 + $0x1ec] ss:$8 sps:$4 sm:$0xff]  }
 0x420   :  { %3899 = vmatprep.subr.bf16.mxu0 %v8308_v0  ;;  %v8371_v0 = vld [vmem:[%s11378_s4 + $0xc4] ss:$8 sps:$4 sm:$0xff]  }
 0x422   :  { %3557 = vmatpush1.bf16.msra.mxu1 %v8303_v23  ;;  %v8369_v23 = vld [vmem:[%s11378_s4 + $0xc0] ss:$8 sps:$4 sm:$0xff]  }
 0x423   :  { %3900 = vmatpush1.bf16.msra.mxu0 %v8306_v50  ;;  %3558 = vmatprep.subr.bf16.mxu1 %v8311_v1  ;;  %v8374_v50 = vld [vmem:[%s11378_s4 + $0x1fc] ss:$8 sps:$4 sm:$0xff]   ;;  %v8372_v1 = vld [vmem:[%s11378_s4 + $0x1f8] ss:$8 sps:$4 sm:$0xff]  }
 0x424   :  { %3901 = vmatprep.subr.bf16.mxu0 %v8314_v7  ;;  %v8377_v7 = vld [vmem:[%s11378_s4 + $0xd4] ss:$8 sps:$4 sm:$0xff]  }
 0x425   :  { %7233 = vmatmul.mubr.msk.bf16.gmra.mrb[28].mxu1 %vm3070_vm6, %v8296_v3  ;;  %v8363_v3 = vld [vmem:[%s11378_s4 + $0xb0] ss:$8 sps:$4 sm:$0xff]  }
 0x426   :  { %3559 = vmatpush1.bf16.msra.mxu1 %v8309_v14  ;;  %v8380_v14 = vld [vmem:[%s11378_s4 + $0x20c] ss:$8 sps:$4 sm:$0xff]  }
 0x427   :  { %3902 = vmatpush1.bf16.msra.mxu0 %v8312_v22  ;;  %3560 = vmatprep.subr.bf16.mxu1 %v8317_v24  ;;  %v8375_v22 = vld [vmem:[%s11378_s4 + $0xd0] ss:$8 sps:$4 sm:$0xff]  }
 0x428   :  { %3903 = vmatprep.subr.bf16.mxu0 %v8320_v37  ;;  %v8378_v24 = vld [vmem:[%s11378_s4 + $0x208] ss:$8 sps:$4 sm:$0xff]  }
 0x429   :  { %v8381_v37 = vld [vmem:[%s11378_s4 + $0xe0] ss:$8 sps:$4 sm:$0xff]  }
 0x42a   :  { %3561 = vmatpush1.bf16.msra.mxu1 %v8315_v58  ;;  %v8383_v58 = vld [vmem:[%s11378_s4 + $0xe4] ss:$8 sps:$4 sm:$0xff]  }
 0x42b   :  { %3904 = vmatpush1.bf16.msra.mxu0 %v8318_v35  ;;  %3562 = vmatprep.subr.bf16.mxu1 %v8323_v52  ;;  %v8384_v35 = vld [vmem:[%s11378_s4 + $0x218] ss:$8 sps:$4 sm:$0xff]   ;;  %v8386_v52 = vld [vmem:[%s11378_s4 + $0x21c] ss:$8 sps:$4 sm:$0xff]  }
 0x42c   :  { %3905 = vmatprep.subr.bf16.mxu0 %v8326_v25  ;;  %v8387_v25 = vld [vmem:[%s11378_s4 + $0xf0] ss:$8 sps:$4 sm:$0xff]  }
 0x42e   :  { %3563 = vmatpush1.bf16.msra.mxu1 %v8321_v16  ;;  %v8389_v16 = vld [vmem:[%s11378_s4 + $0xf4] ss:$8 sps:$4 sm:$0xff]  }
 0x42f   :  { %3906 = vmatpush1.bf16.msra.mxu0 %v8324_v10  ;;  %3564 = vmatprep.subr.bf16.mxu1 %v8329_v46  ;;  %v8390_v10 = vld [vmem:[%s11378_s4 + $0x228] ss:$8 sps:$4 sm:$0xff]   ;;  %v8392_v46 = vld [vmem:[%s11378_s4 + $0x22c] ss:$8 sps:$4 sm:$0xff]  }
 0x430   :  { %3907 = vmatprep.subr.bf16.mxu0 %v8332_v47  ;;  %v8395_v47 = vld [vmem:[%s11378_s4 + $0x104] ss:$8 sps:$4 sm:$0xff]  }
 0x432   :  { %3565 = vmatpush1.bf16.msra.mxu1 %v8327_v19  ;;  %v8398_v19 = vld [vmem:[%s11378_s4 + $0x23c] ss:$8 sps:$4 sm:$0xff]  }
 0x433   :  { %3908 = vmatpush1.bf16.msra.mxu0 %v8330_v21  ;;  %3566 = vmatprep.subr.bf16.mxu1 %v8335_v11 }
 0x434   :  { %3909 = vmatprep.subr.bf16.mxu0 %v8338_v8 }
 0x436   :  { %3567 = vmatpush1.bf16.msra.mxu1 %v8333_v13 }
 0x437   :  { %3910 = vmatpush1.bf16.msra.mxu0 %v8336_v2  ;;  %3568 = vmatprep.subr.bf16.mxu1 %v8341_v5 }
 0x438   :  { %3911 = vmatprep.subr.bf16.mxu0 %v8344_v9 }
 0x43a   :  { %3569 = vmatpush1.bf16.msra.mxu1 %v8339_v6 }
 0x43b   :  { %3912 = vmatpush1.bf16.msra.mxu0 %v8342_v12  ;;  %3570 = vmatprep.subr.bf16.mxu1 %v8347_v18 }
 0x43c   :  { %3913 = vmatprep.subr.bf16.mxu0 %v8350_v62 }
 0x43e   :  { %3571 = vmatpush1.bf16.msra.mxu1 %v8345_v20 }
 0x43f   :  { %3914 = vmatpush1.bf16.msra.mxu0 %v8348_v59  ;;  %3572 = vmatprep.subr.bf16.mxu1 %v8353_v4 }
 0x440   :  { %3915 = vmatprep.subr.bf16.mxu0 %v8356_v60 }
 0x442   :  { %3573 = vmatpush1.bf16.msra.mxu1 %v8351_v26 }
 0x443   :  { %3916 = vmatpush1.bf16.msra.mxu0 %v8354_v53  ;;  %3574 = vmatprep.subr.bf16.mxu1 %v8359_v57 }
 0x444   :  { %3917 = vmatprep.subr.bf16.mxu0 %v8362_v55 }
 0x446   :  { %3575 = vmatpush1.bf16.msra.mxu1 %v8357_v54 }
 0x447   :  { %3918 = vmatpush1.bf16.msra.mxu0 %v8360_v56  ;;  %3576 = vmatprep.subr.bf16.mxu1 %v8365_v15 }
 0x448   :  { %3919 = vmatprep.subr.bf16.mxu0 %v8368_v63 }
 0x44a   :  { %3577 = vmatpush1.bf16.msra.mxu1 %v8363_v3 }
 0x44b   :  { %3920 = vmatpush1.bf16.msra.mxu0 %v8366_v51  ;;  %3578 = vmatprep.subr.bf16.mxu1 %v8371_v0 }
 0x44c   :  { %3921 = vmatprep.subr.bf16.mxu0 %v8374_v50 }
 0x44e   :  { %3579 = vmatpush1.bf16.msra.mxu1 %v8369_v23 }
 0x44f   :  { %3922 = vmatpush1.bf16.msra.mxu0 %v8372_v1  ;;  %3580 = vmatprep.subr.bf16.mxu1 %v8377_v7 }
 0x450   :  { %3923 = vmatprep.subr.bf16.mxu0 %v8380_v14  ;;  %v8393_v14 = vld [vmem:[%s11378_s4 + $0x100] ss:$8 sps:$4 sm:$0xff]  }
 0x452   :  { %3581 = vmatpush1.bf16.msra.mxu1 %v8375_v22  ;;  %v8396_v22 = vld [vmem:[%s11378_s4 + $0x238] ss:$8 sps:$4 sm:$0xff]  }
 0x453   :  { %3924 = vmatpush1.bf16.msra.mxu0 %v8378_v24  ;;  %3582 = vmatprep.subr.bf16.mxu1 %v8383_v58  ;;  %v8401_v24 = vld [vmem:[%s11378_s4 + $0x114] ss:$8 sps:$4 sm:$0xff]  }
 0x454   :  { %3925 = vmatprep.subr.bf16.mxu0 %v8386_v52 }
 0x456   :  { %3583 = vmatpush1.bf16.msra.mxu1 %v8381_v37  ;;  %v8404_v37 = vld [vmem:[%s11378_s4 + $0x24c] ss:$8 sps:$4 sm:$0xff]  }
 0x457   :  { %3926 = vmatpush1.bf16.msra.mxu0 %v8384_v35  ;;  %3584 = vmatprep.subr.bf16.mxu1 %v8389_v16 }
 0x458   :  { %3927 = vmatprep.subr.bf16.mxu0 %v8392_v46  ;;  %v8402_v46 = vld [vmem:[%s11378_s4 + $0x248] ss:$8 sps:$4 sm:$0xff]  }
 0x45a   :  { %3585 = vmatpush1.bf16.msra.mxu1 %v8387_v25 }
 0x45b   :  { %3928 = vmatpush1.bf16.msra.mxu0 %v8390_v10  ;;  %3605 = vmatprep.subr.bf16.mxu1 %v8395_v47  ;;  %v8399_v10 = vld [vmem:[%s11378_s4 + $0x110] ss:$8 sps:$4 sm:$0xff]  }
 0x45c   :  { %3948 = vmatprep.subr.bf16.mxu0 %v8398_v19  ;;  %v3346_v19 = vld [vmem:[%s11378_s4 + $0x130] sm:$0xff] }
 0x4e0   :  { %v3111_v21 = vpop.f32.mrb[16].mxu0 }
 0x4e1   :  { %v3113_v11 = vpop.f32.mrb[17].mxu0 }
 0x4e2   :  { %v3115_v8 = vpop.f32.mrb[18].mxu0 }
 0x4e3   :  { %v3117_v13 = vpop.f32.mrb[19].mxu0 }
 0x4e4   :  { %v7853_v2 = vpop.f32.mrb[20].mxu1 }
 0x4e5   :  { %v3162_v5 = vpop.f32.mrb[21].mxu1 }
 0x4e6   :  { %v7854_v9 = vpop.f32.mrb[22].mxu1 }
 0x4e7   :  { %v3165_v6 = vpop.f32.mrb[23].mxu1  ;;  %v7275_v9 = vcombine.high %v3346_v19, %v3346_v19 }
 0x4e8   :  { %v3121_v12 = vpop.f32.mrb[20].mxu0 }
 0x4e9   :  { %v3123_v18 = vpop.f32.mrb[21].mxu0 }
 0x4ea   :  { %v3125_v62 = vpop.f32.mrb[22].mxu0 }
 0x4eb   :  { %v3126_v20 = vpop.f32.mrb[23].mxu0 }
 0x4f0   :  { %v3228_v59 = vpop.f32.mrb[24].mxu1  ;;  %v7863_v4 = vpop.f32.mrb[24].mxu0 }
 0x4f1   :  { %v3293_v60 = vmax.f32 %v3111_v21, %v3228_v59  ;;  %v3230_v26 = vpop.f32.mrb[25].mxu1  ;;  %v10679_v53 = vmax.f32 %v7853_v2, %v7863_v4  ;;  %v3279_v57 = vpop.f32.mrb[25].mxu0  ;;  %v8405_v2 = vld [vmem:[%s11378_s4 + $0x120] ss:$8 sps:$4 sm:$0xff]  }
 0x4f2   :  { %v3294_v55 = vmax.f32 %v3113_v11, %v3230_v26  ;;  %v3232_v54 = vpop.f32.mrb[26].mxu1  ;;  %v3295_v56 = vmax.f32 %v3162_v5, %v3279_v57  ;;  %v7864_v3 = vpop.f32.mrb[26].mxu0  ;;  %v8407_v11 = vld [vmem:[%s11378_s4 + $0x124] ss:$8 sps:$4 sm:$0xff]   ;;  %v8408_v5 = vld [vmem:[%s11378_s4 + $0x258] ss:$8 sps:$4 sm:$0xff]  }
 0x4f3   :  { %v3296_v15 = vmax.f32 %v3115_v8, %v3232_v54  ;;  %v3234_v51 = vpop.f32.mrb[27].mxu1  ;;  %v3282_v63 = vpop.f32.mrb[27].mxu0  ;;  %v8410_v8 = vld [vmem:[%s11378_s4 + $0x25c] ss:$8 sps:$4 sm:$0xff]   ;;  %v3307_v4 = vpack.c.bf16 %v10679_v53, %v10679_v53 }
 0x4f4   :  { %v3297_v0 = vmax.f32 %v3117_v13, %v3234_v51  ;;  %v3298_v23 = vmax.f32 %v3165_v6, %v3282_v63  ;;  %v7317_v13 = vld [vmem:[%s11378_s4 + $0x268] sm:$0xff]  ;;  %v7274_v6 = vcombine.low %v3346_v19, %v3346_v19 }
 0x4f5   :  { %v3302_v50 = vpack.c.bf16 %v3296_v15, %v3293_v60  ;;  %v7356_v62 = vcombine.low %v7317_v13, %v7317_v13 }
 0x4f6   :  { %v3303_v1 = vpack.c.bf16 %v3297_v0, %v3294_v55  ;;  %v3304_v7 = vpack.c.bf16 %v3298_v23, %v3295_v56  ;;  %v3549_v20 = vsel %vm1409_vm1, %v7274_v6, 0 }
 0x4f7   :  { %v3892_v59 = vsel %vm1409_vm1, %v7356_v62, 0 }
 0x4f8   :  { %v3238_v58 = vpop.f32.mrb[28].mxu1  ;;  %3586 = vmatprep.mubr.bf16.mxu1 %v3303_v1  ;;  %3929 = vmatprep.mubr.bf16.mxu0 %v3303_v1 }
 0x4f9   :  { %v3299_v35 = vmax.f32 %v3121_v12, %v3238_v58  ;;  %v3240_v52 = vpop.f32.mrb[29].mxu1  ;;  %3587 = vmatmul.mubr.bf16.vlgmr.msra.gmra.mrb[32].mxu1 %v3302_v50  ;;  %3930 = vmatmul.mubr.bf16.vlgmr.msra.gmra.mrb[28].mxu0 %v3302_v50 }
 0x4fa   :  { %v3300_v25 = vmax.f32 %v3123_v18, %v3240_v52  ;;  %v3242_v16 = vpop.f32.mrb[30].mxu1  ;;  %3606 = vmatpush1.bf16.msra.mxu1 %v8393_v14  ;;  %3949 = vmatpush1.bf16.msra.mxu0 %v8396_v22  ;;  %v7357_v18 = vcombine.high %v7317_v13, %v7317_v13 }
 0x4fb   :  { %v3243_v47 = vpop.f32.mrb[31].mxu1  ;;  %3607 = vmatprep.subr.bf16.mxu1 %v8401_v24  ;;  %3950 = vmatprep.subr.bf16.mxu0 %v8404_v37  ;;  %v3305_v12 = vpack.c.bf16 %v3299_v35, %v3299_v35 }
 0x4fc   :  { %v3306_v21 = vpack.c.bf16 %v3300_v25, %v3300_v25 }
 0x4fe   :  { %3608 = vmatpush1.bf16.msra.mxu1 %v8399_v10  ;;  %3951 = vmatpush1.bf16.msra.mxu0 %v8402_v46 }
 0x4ff   :  { %3596 = vmatprep.mubr.bf16.mxu1 %v3306_v21  ;;  %3939 = vmatprep.mubr.bf16.mxu0 %v3306_v21 }
 0x500   :  { %3609 = vmatprep.subr.bf16.mxu1 %v8407_v11  ;;  %3952 = vmatprep.subr.bf16.mxu0 %v8410_v8 }
 0x501   :  { %3597 = vmatmul.mubr.bf16.gmra.mrb[36].mxu1 %v3305_v12  ;;  %3940 = vmatmul.mubr.bf16.gmra.mrb[32].mxu0 %v3305_v12 }
 0x502   :  { %3610 = vmatpush1.bf16.msra.mxu1 %v8405_v2  ;;  %3953 = vmatpush1.bf16.msra.mxu0 %v8408_v5 }
 0x503   :  { %7276 = vmatprep.subr.msk.bf16.mxu1 %vm1409_vm1, %v7275_v9  ;;  %7358 = vmatprep.subr.msk.bf16.mxu0 %vm1409_vm1, %v7357_v18 }
 0x504   :  { %3637 = vmatprep.mubr.bf16.mxu1 %v11375_v49  ;;  %3980 = vmatprep.mubr.bf16.mxu0 %v11375_v49 }
 0x506   :  { %3612 = vmatpush1.bf16.msra.mxu1 %v3549_v20  ;;  %3955 = vmatpush1.bf16.msra.mxu0 %v3892_v59 }
 0x509   :  { %7277 = vmatmul.mubr.msk.bf16.vlgmr.msra.gmra.mrb[32].mxu1 %vm1399_vm2, %v3304_v7  ;;  %7359 = vmatmul.mubr.msk.bf16.vlgmr.msra.gmra.mrb[28].mxu0 %vm1399_vm2, %v3304_v7 }
 0x50a   :  { %3647 = vmatprep.mubr.bf16.mxu1 %v11375_v49  ;;  %3990 = vmatprep.mubr.bf16.mxu0 %v11375_v49 }
 0x511   :  { %7278 = vmatmul.mubr.msk.bf16.gmra.mrb[36].mxu1 %vm1399_vm2, %v3307_v4  ;;  %7360 = vmatmul.mubr.msk.bf16.gmra.mrb[32].mxu0 %vm1399_vm2, %v3307_v4 }
 0x5dc   :  { %v3639_v60 = vpop.f32.mrb[32].mxu1  ;;  %v3982_v26 = vpop.f32.mrb[28].mxu0 }
 0x5dd   :  { %v10731_v57 = vmax.f32 %v3639_v60, %v3982_v26  ;;  %v3641_v55 = vpop.f32.mrb[33].mxu1  ;;  %v3984_v54 = vpop.f32.mrb[29].mxu0 }
 0x5de   :  { %v10733_v56 = vmax.f32 %v3641_v55, %v3984_v54  ;;  %v3643_v3 = vpop.f32.mrb[34].mxu1  ;;  %v3986_v15 = vpop.f32.mrb[30].mxu0 }
 0x5df   :  { %v10735_v51 = vmax.f32 %v3643_v3, %v3986_v15  ;;  %v3645_v63 = vpop.f32.mrb[35].mxu1  ;;  %v3988_v0 = vpop.f32.mrb[31].mxu0 }
 0x5e0   :  { %v10737_v23 = vmax.f32 %v3645_v63, %v3988_v0 }
 0x5e4   :  { %v3649_v53 = vpop.f32.mrb[36].mxu1  ;;  %v3992_v50 = vpop.f32.mrb[32].mxu0 }
 0x5e5   :  { %v10739_v1 = vmax.f32 %v3649_v53, %v3992_v50  ;;  %v3651_v7 = vpop.f32.mrb[37].mxu1  ;;  %v3994_v14 = vpop.f32.mrb[33].mxu0 }
 0x5e6   :  { %v10741_v22 = vmax.f32 %v3651_v7, %v3994_v14  ;;  %v3653_v24 = vpop.f32.mrb[38].mxu1  ;;  %v3996_v37 = vpop.f32.mrb[34].mxu0 }
 0x5e7   :  { %v3654_v58 = vpop.f32.mrb[39].mxu1  ;;  %v3997_v35 = vpop.f32.mrb[35].mxu0 }
 0x5e8   :  { %8655 = dma.done.wait [#allocation5], 19200 }
 0x5e9   :  { %8656 = vsyncadd [#allocation5], 4294948096  ;;  %4340 = vmatprep.subr.bf16.mxu0 %v11375_v49  ;;  %vm4066_vm7 = vcmask 1046528   ;;  %v4070_v52 = vrot.slane %v10733_v56, 1  ;;  %v4071_v25 = vrot.slane %v10737_v23, 1  ;;  %vm4075_vm8 = vcmask 1042432  }
 0x5ea   :  { %v4079_v16 = vrot.slane %v10737_v23, 5  ;;  %v4080_v10 = vrot.slane %v10741_v22, 5  ;;  %vm4284_vm9 = vcmask 228352   ;;  %v8417_v21 = vld [vmem:[#allocation2 + $0xf4] ss:$12 sps:$4 sm:$0xff]   ;;  %v4067_v14 = vrot.slane %v10731_v57, 1 }
 0x5eb   :  { %v4072_v46 = vsel %vm4066_vm7, %v4070_v52, %v4071_v25  ;;  %v8419_v11 = vld [vmem:[#allocation2 + $0xf8] ss:$12 sps:$4 sm:$0xff]   ;;  %4297 = vmatprep.subr.bf16.mxu1 %v8417_v21  ;;  %v8420_v8 = vld [vmem:[#allocation2 + $0xf0] ss:$12 sps:$4 sm:$0xff]   ;;  %v8424_v5 = vld [vmem:[#allocation2 + $0x108] ss:$12 sps:$4 sm:$0xff]  }
 0x5ec   :  { %v4081_v47 = vsel %vm4075_vm8, %v4079_v16, %v4080_v10  ;;  %4341 = vmatpush1.bf16.msra.mxu0 %v8419_v11  ;;  %v8421_v13 = vld [vmem:[#allocation2 + $0x10c] ss:$12 sps:$4 sm:$0xff]   ;;  %4298 = vmatpush1.bf16.msra.mxu1 %v8420_v8  ;;  %v8423_v2 = vld [vmem:[#allocation2 + $0x110] ss:$12 sps:$4 sm:$0xff]   ;;  %v8427_v6 = vld [vmem:[#allocation2 + $0x128] ss:$12 sps:$4 sm:$0xff]  }
 0x5ed   :  { %v4085_v19 = vpack.c.bf16 %v4081_v47, %v4072_v46  ;;  %4342 = vmatprep.subr.bf16.mxu0 %v11375_v49  ;;  %4299 = vmatprep.subr.bf16.mxu1 %v8421_v13  ;;  %v8425_v9 = vld [vmem:[#allocation2 + $0x124] ss:$12 sps:$4 sm:$0xff]   ;;  %v8428_v12 = vld [vmem:[#allocation2 + $0x120] ss:$12 sps:$4 sm:$0xff]   ;;  %v8429_v18 = vld [vmem:[#allocation2 + $0x13c] ss:$12 sps:$4 sm:$0xff]  }
 0x5ee   :  { %v8431_v62 = vld [vmem:[#allocation2 + $0x140] ss:$12 sps:$4 sm:$0xff]   ;;  %v8432_v20 = vld [vmem:[#allocation2 + $0x138] ss:$12 sps:$4 sm:$0xff]   ;;  %v8436_v60 = vld [vmem:[#allocation2 + $0x150] ss:$12 sps:$4 sm:$0xff]  }
 0x5ef   :  { %7393 = vmatprep.mubr.msk.bf16.mxu0 %vm4284_vm9, %v4085_v19  ;;  %7392 = vmatprep.mubr.msk.bf16.mxu1 %vm4284_vm9, %v4085_v19  ;;  %v8433_v59 = vld [vmem:[#allocation2 + $0x154] ss:$12 sps:$4 sm:$0xff]   ;;  %v8435_v4 = vld [vmem:[#allocation2 + $0x158] ss:$12 sps:$4 sm:$0xff]   ;;  %v8439_v55 = vld [vmem:[#allocation2 + $0x170] ss:$12 sps:$4 sm:$0xff]  }
 0x5f0   :  { %4343 = vmatpush1.bf16.msra.mxu0 %v8423_v2  ;;  %4300 = vmatpush1.bf16.msra.mxu1 %v8424_v5  ;;  %v8437_v26 = vld [vmem:[#allocation2 + $0x16c] ss:$12 sps:$4 sm:$0xff]   ;;  %v8440_v54 = vld [vmem:[#allocation2 + $0x168] ss:$12 sps:$4 sm:$0xff]   ;;  %v8441_v3 = vld [vmem:[#allocation2 + $0x184] ss:$12 sps:$4 sm:$0xff]  }
 0x5f1   :  { %4344 = vmatprep.subr.bf16.mxu0 %v11375_v49  ;;  %4301 = vmatprep.subr.bf16.mxu1 %v8425_v9  ;;  %v8443_v15 = vld [vmem:[#allocation2 + $0x188] ss:$12 sps:$4 sm:$0xff]   ;;  %v8444_v63 = vld [vmem:[#allocation2 + $0x180] ss:$12 sps:$4 sm:$0xff]   ;;  %v8448_v50 = vld [vmem:[#allocation2 + $0x198] ss:$12 sps:$4 sm:$0xff]  }
 0x5f2   :  { %v8445_v0 = vld [vmem:[#allocation2 + $0x19c] ss:$12 sps:$4 sm:$0xff]   ;;  %v8447_v53 = vld [vmem:[#allocation2 + $0x1a0] ss:$12 sps:$4 sm:$0xff]   ;;  %v4068_v24 = vrot.slane %v10735_v51, 1  ;;  %v4076_v37 = vrot.slane %v10735_v51, 5 }
 0x5f3   :  { %v8449_v7 = vld [vmem:[#allocation2 + $0x1b4] ss:$12 sps:$4 sm:$0xff]   ;;  %v8451_v58 = vld [vmem:[#allocation2 + $0x1b8] ss:$12 sps:$4 sm:$0xff]   ;;  %v4077_v25 = vrot.slane %v10739_v1, 5  ;;  %v4017_v46 = vrot.slane %v10737_v23, 4 }
 0x5f4   :  { %4345 = vmatpush1.bf16.msra.mxu0 %v8427_v6  ;;  %4302 = vmatpush1.bf16.msra.mxu1 %v8428_v12  ;;  %v8453_v35 = vld [vmem:[#allocation2 + $0x1cc] ss:$12 sps:$4 sm:$0x3f]   ;;  %v8455_v52 = vld [vmem:[#allocation2 + $0x1d0] ss:$12 sps:$4 sm:$0x3f]   ;;  %v4069_v19 = vsel %vm4066_vm7, %v4067_v14, %v4068_v24 }
 0x5f5   :  { %4346 = vmatprep.subr.bf16.mxu0 %v11375_v49  ;;  %4303 = vmatprep.subr.bf16.mxu1 %v8429_v18  ;;  %v8452_v16 = vld [vmem:[#allocation2 + $0x1b0] ss:$12 sps:$4 sm:$0xff]   ;;  %v8456_v10 = vld [vmem:[#allocation2 + $0x1c8] ss:$12 sps:$4 sm:$0x3f]   ;;  %v4018_v47 = vrot.slane %v10741_v22, 4  ;;  %v4078_v21 = vsel %vm4075_vm8, %v4076_v37, %v4077_v25 }
 0x5f6   :  { %v4295_v11 = vsel %vm2821_vm4, %v8455_v52, 0  ;;  %v8459_v8 = vld [vmem:[#allocation2 + $0x4] ss:$12 sps:$4 sm:$0xff]   ;;  %v4289_v13 = vsel %vm2821_vm4, %v8456_v10, 0  ;;  %v4084_v2 = vpack.c.bf16 %v4078_v21, %v4069_v19  ;;  %v8460_v9 = vld [vmem:[#allocation2 + $0x8] ss:$12 sps:$4 sm:$0xff]  }
 0x5f7   :  { %v4019_v5 = vsel %vm1409_vm1, %v4017_v46, %v4018_v47  ;;  %v8457_v6 = vld [vmem:[#allocation2] ss:$12 sps:$4 sm:$0xff]   ;;  %v8463_v12 = vld [vmem:[#allocation2 + $0x1c] ss:$12 sps:$4 sm:$0xff]   ;;  %v8484_v14 = vld [vmem:[#allocation2 + $0x98] ss:$12 sps:$4 sm:$0xff]  }
 0x5f8   :  { %4347 = vmatpush1.bf16.msra.mxu0 %v8431_v62  ;;  %4304 = vmatpush1.bf16.msra.mxu1 %v8432_v20  ;;  %v4023_v18 = vpack.c.bf16 %v4019_v5, %v10733_v56  ;;  %v8464_v62 = vld [vmem:[#allocation2 + $0x20] ss:$12 sps:$4 sm:$0xff]   ;;  %v8461_v20 = vld [vmem:[#allocation2 + $0x18] ss:$12 sps:$4 sm:$0xff]   ;;  %v8481_v24 = vld [vmem:[#allocation2 + $0x90] ss:$12 sps:$4 sm:$0xff]  }
 0x5f9   :  { %4348 = vmatprep.subr.bf16.mxu0 %v11375_v49  ;;  %4305 = vmatprep.subr.bf16.mxu1 %v8433_v59  ;;  %v8467_v59 = vld [vmem:[#allocation2 + $0x34] ss:$12 sps:$4 sm:$0xff]   ;;  %v8487_v37 = vld [vmem:[#allocation2 + $0xac] ss:$12 sps:$4 sm:$0xff]   ;;  %v8491_v52 = vld [vmem:[#allocation2 + $0xc4] ss:$12 sps:$4 sm:$0xff]  }
 0x5fa   :  { %v8492_v25 = vld [vmem:[#allocation2 + $0xc8] ss:$12 sps:$4 sm:$0xff]   ;;  %v4015_v10 = vrot.slane %v10739_v1, 4  ;;  %v8495_v19 = vld [vmem:[#allocation2 + $0xe0] ss:$12 sps:$4 sm:$0x3f]  }
 0x5fb   :  { %v8493_v47 = vld [vmem:[#allocation2 + $0xdc] ss:$12 sps:$4 sm:$0x3f]   ;;  %v8489_v21 = vld [vmem:[#allocation2 + $0xc0] ss:$12 sps:$4 sm:$0xff]   ;;  %v4647_v5 = vrot.slane %v10741_v22, 6 }
 0x5fc   :  { %4349 = vmatpush1.bf16.msra.mxu0 %v8435_v4  ;;  %4306 = vmatpush1.bf16.msra.mxu1 %v8436_v60  ;;  %v8468_v4 = vld [vmem:[#allocation2 + $0x38] ss:$12 sps:$4 sm:$0xff]   ;;  %v8465_v60 = vld [vmem:[#allocation2 + $0x30] ss:$12 sps:$4 sm:$0xff]   ;;  %vm4642_vm10 = vcmask 1041408   ;;  %vm4953_vm11 = vcmask 1044480  }
 0x5fd   :  { %4350 = vmatprep.subr.bf16.mxu0 %v11375_v49  ;;  %4307 = vmatprep.subr.bf16.mxu1 %v8437_v26  ;;  %v8471_v26 = vld [vmem:[#allocation2 + $0x4c] ss:$12 sps:$4 sm:$0xff]   ;;  %vm5594_vm12 = vcmask 785408   ;;  %vm5866_vm13 = vcmask 130048  }
 0x600   :  { %4351 = vmatpush1.bf16.msra.mxu0 %v8439_v55  ;;  %4308 = vmatpush1.bf16.msra.mxu1 %v8440_v54  ;;  %v8472_v55 = vld [vmem:[#allocation2 + $0x50] ss:$12 sps:$4 sm:$0xff]   ;;  %v8469_v54 = vld [vmem:[#allocation2 + $0x48] ss:$12 sps:$4 sm:$0xff]  }
 0x601   :  { %4352 = vmatprep.subr.bf16.mxu0 %v11375_v49  ;;  %4309 = vmatprep.subr.bf16.mxu1 %v8441_v3  ;;  %v8475_v3 = vld [vmem:[#allocation2 + $0x64] ss:$12 sps:$4 sm:$0xff]  }
 0x604   :  { %4353 = vmatpush1.bf16.msra.mxu0 %v8443_v15  ;;  %4310 = vmatpush1.bf16.msra.mxu1 %v8444_v63  ;;  %v8476_v15 = vld [vmem:[#allocation2 + $0x68] ss:$12 sps:$4 sm:$0xff]   ;;  %v8473_v63 = vld [vmem:[#allocation2 + $0x60] ss:$12 sps:$4 sm:$0xff]  }
 0x605   :  { %4354 = vmatprep.subr.bf16.mxu0 %v11375_v49  ;;  %4311 = vmatprep.subr.bf16.mxu1 %v8445_v0  ;;  %v8479_v0 = vld [vmem:[#allocation2 + $0x7c] ss:$12 sps:$4 sm:$0xff]  }
 0x608   :  { %4355 = vmatpush1.bf16.msra.mxu0 %v8447_v53  ;;  %4312 = vmatpush1.bf16.msra.mxu1 %v8448_v50  ;;  %v8480_v53 = vld [vmem:[#allocation2 + $0x80] ss:$12 sps:$4 sm:$0xff]   ;;  %v8477_v50 = vld [vmem:[#allocation2 + $0x78] ss:$12 sps:$4 sm:$0xff]  }
 0x609   :  { %4356 = vmatprep.subr.bf16.mxu0 %v11375_v49  ;;  %4313 = vmatprep.subr.bf16.mxu1 %v8449_v7  ;;  %v8483_v7 = vld [vmem:[#allocation2 + $0x94] ss:$12 sps:$4 sm:$0xff]  }
 0x60c   :  { %4357 = vmatpush1.bf16.msra.mxu0 %v8451_v58  ;;  %4314 = vmatpush1.bf16.msra.mxu1 %v8452_v16  ;;  %v8485_v58 = vld [vmem:[#allocation2 + $0xa8] ss:$12 sps:$4 sm:$0xff]   ;;  %v4014_v16 = vrot.slane %v10735_v51, 4 }
 0x60d   :  { %4358 = vmatprep.subr.bf16.mxu0 %v11375_v49  ;;  %7391 = vmatprep.subr.msk.bf16.mxu1 %vm2821_vm4, %v8453_v35  ;;  %v8488_v35 = vld [vmem:[#allocation2 + $0xb0] ss:$12 sps:$4 sm:$0xff]  }
 0x610   :  { %4359 = vmatpush1.bf16.msra.mxu0 %v4295_v11  ;;  %4316 = vmatpush1.bf16.msra.mxu1 %v4289_v13  ;;  %v8496_v11 = vld [vmem:[#allocation2 + $0xd8] ss:$12 sps:$4 sm:$0x3f]   ;;  %v4638_v13 = vrot.slane %v10737_v23, 2 }
 0x611   :  { %4593 = vmatprep.subr.bf16.mxu0 %v11375_v49  ;;  %4550 = vmatprep.subr.bf16.mxu1 %v8459_v8  ;;  %v4637_v8 = vrot.slane %v10733_v56, 2 }
 0x613   :  { %4373 = vmatmul.mubr.bf16.vlgmr.msra.gmra.mrb[36].mxu0 %v4084_v2  ;;  %4330 = vmatmul.mubr.bf16.vlgmr.msra.gmra.mrb[40].mxu1 %v4084_v2  ;;  %v4646_v2 = vrot.slane %v10737_v23, 6 }
 0x614   :  { %4594 = vmatpush1.bf16.msra.mxu0 %v8460_v9  ;;  %4551 = vmatpush1.bf16.msra.mxu1 %v8457_v6  ;;  %v4016_v9 = vsel %vm1409_vm1, %v4014_v16, %v4015_v10  ;;  %v4548_v6 = vsel %vm2821_vm4, %v8495_v19, 0  ;;  %v8524_v10 = vld [vmem:[#allocation2 + $0x278] ss:$12 sps:$4 sm:$0xff]  }
 0x615   :  { %4595 = vmatprep.subr.bf16.mxu0 %v11375_v49  ;;  %4552 = vmatprep.subr.bf16.mxu1 %v8463_v12  ;;  %v4542_v12 = vsel %vm2821_vm4, %v8496_v11, 0  ;;  %v8527_v19 = vld [vmem:[#allocation2 + $0x28c] ss:$12 sps:$4 sm:$0xff]   ;;  %v8525_v11 = vld [vmem:[#allocation2 + $0x288] ss:$12 sps:$4 sm:$0xff]  }
 0x616   :  { %7426 = vmatprep.mubr.msk.bf16.mxu0 %vm4284_vm9, %v4023_v18  ;;  %7425 = vmatprep.mubr.msk.bf16.mxu1 %vm4284_vm9, %v4023_v18  ;;  %v8499_v18 = vld [vmem:[#allocation2 + $0x1e4] ss:$12 sps:$4 sm:$0xff]  }
 0x618   :  { %4596 = vmatpush1.bf16.msra.mxu0 %v8464_v62  ;;  %4553 = vmatpush1.bf16.msra.mxu1 %v8461_v20  ;;  %v4022_v62 = vpack.c.bf16 %v4016_v9, %v10731_v57  ;;  %v4639_v20 = vsel %vm2821_vm4, %v4637_v8, %v4638_v13  ;;  %v4634_v8 = vrot.slane %v10731_v57, 2  ;;  %v4635_v13 = vrot.slane %v10735_v51, 2 }
 0x619   :  { %4597 = vmatprep.subr.bf16.mxu0 %v11375_v49  ;;  %4554 = vmatprep.subr.bf16.mxu1 %v8467_v59  ;;  %v4648_v59 = vsel %vm4642_vm10, %v4646_v2, %v4647_v5  ;;  %v8531_v2 = vld [vmem:[#allocation2 + $0x2a4] ss:$12 sps:$4 sm:$0xff]   ;;  %v8529_v5 = vld [vmem:[#allocation2 + $0x2a0] ss:$12 sps:$4 sm:$0xff]   ;;  %v4643_v9 = vrot.slane %v10735_v51, 6 }
 0x61c   :  { %4598 = vmatpush1.bf16.msra.mxu0 %v8468_v4  ;;  %4555 = vmatpush1.bf16.msra.mxu1 %v8465_v60  ;;  %v8500_v4 = vld [vmem:[#allocation2 + $0x1e8] ss:$12 sps:$4 sm:$0xff]   ;;  %v8497_v60 = vld [vmem:[#allocation2 + $0x1e0] ss:$12 sps:$4 sm:$0xff]  }
 0x61d   :  { %4599 = vmatprep.subr.bf16.mxu0 %v11375_v49  ;;  %4556 = vmatprep.subr.bf16.mxu1 %v8471_v26  ;;  %v8503_v26 = vld [vmem:[#allocation2 + $0x1fc] ss:$12 sps:$4 sm:$0xff]  }
 0x620   :  { %4600 = vmatpush1.bf16.msra.mxu0 %v8472_v55  ;;  %4557 = vmatpush1.bf16.msra.mxu1 %v8469_v54  ;;  %v4652_v55 = vpack.c.bf16 %v4648_v59, %v4639_v20  ;;  %v8504_v54 = vld [vmem:[#allocation2 + $0x200] ss:$12 sps:$4 sm:$0xff]   ;;  %v8536_v20 = vld [vmem:[#allocation2 + $0x2b8] ss:$12 sps:$4 sm:$0x3f]   ;;  %v4957_v59 = vrot.slane %v10733_v56, 3 }
 0x621   :  { %4601 = vmatprep.subr.bf16.mxu0 %v11375_v49  ;;  %4558 = vmatprep.subr.bf16.mxu1 %v8475_v3  ;;  %v8501_v3 = vld [vmem:[#allocation2 + $0x1f8] ss:$12 sps:$4 sm:$0xff]  }
 0x624   :  { %4602 = vmatpush1.bf16.msra.mxu0 %v8476_v15  ;;  %4559 = vmatpush1.bf16.msra.mxu1 %v8473_v63  ;;  %v8507_v15 = vld [vmem:[#allocation2 + $0x214] ss:$12 sps:$4 sm:$0xff]   ;;  %v8508_v63 = vld [vmem:[#allocation2 + $0x218] ss:$12 sps:$4 sm:$0xff]  }
 0x625   :  { %4603 = vmatprep.subr.bf16.mxu0 %v11375_v49  ;;  %4560 = vmatprep.subr.bf16.mxu1 %v8479_v0  ;;  %v8505_v0 = vld [vmem:[#allocation2 + $0x210] ss:$12 sps:$4 sm:$0xff]  }
 0x628   :  { %4604 = vmatpush1.bf16.msra.mxu0 %v8480_v53  ;;  %4561 = vmatpush1.bf16.msra.mxu1 %v8477_v50  ;;  %v8511_v53 = vld [vmem:[#allocation2 + $0x22c] ss:$12 sps:$4 sm:$0xff]   ;;  %v8512_v50 = vld [vmem:[#allocation2 + $0x230] ss:$12 sps:$4 sm:$0xff]  }
 0x629   :  { %4605 = vmatprep.subr.bf16.mxu0 %v11375_v49  ;;  %4562 = vmatprep.subr.bf16.mxu1 %v8483_v7  ;;  %v8509_v7 = vld [vmem:[#allocation2 + $0x228] ss:$12 sps:$4 sm:$0xff]  }
 0x62c   :  { %4606 = vmatpush1.bf16.msra.mxu0 %v8484_v14  ;;  %4563 = vmatpush1.bf16.msra.mxu1 %v8481_v24  ;;  %v8515_v14 = vld [vmem:[#allocation2 + $0x244] ss:$12 sps:$4 sm:$0xff]   ;;  %v8516_v24 = vld [vmem:[#allocation2 + $0x248] ss:$12 sps:$4 sm:$0xff]  }
 0x62d   :  { %4607 = vmatprep.subr.bf16.mxu0 %v11375_v49  ;;  %4564 = vmatprep.subr.bf16.mxu1 %v8487_v37  ;;  %v8513_v37 = vld [vmem:[#allocation2 + $0x240] ss:$12 sps:$4 sm:$0xff]  }
 0x630   :  { %4608 = vmatpush1.bf16.msra.mxu0 %v8488_v35  ;;  %4565 = vmatpush1.bf16.msra.mxu1 %v8485_v58  ;;  %v8519_v58 = vld [vmem:[#allocation2 + $0x25c] ss:$12 sps:$4 sm:$0xff]   ;;  %v8520_v35 = vld [vmem:[#allocation2 + $0x260] ss:$12 sps:$4 sm:$0xff]  }
 0x631   :  { %4609 = vmatprep.subr.bf16.mxu0 %v11375_v49  ;;  %4566 = vmatprep.subr.bf16.mxu1 %v8491_v52  ;;  %v8517_v52 = vld [vmem:[#allocation2 + $0x258] ss:$12 sps:$4 sm:$0xff]  }
 0x634   :  { %4610 = vmatpush1.bf16.msra.mxu0 %v8492_v25  ;;  %4567 = vmatpush1.bf16.msra.mxu1 %v8489_v21  ;;  %v8523_v25 = vld [vmem:[#allocation2 + $0x274] ss:$12 sps:$4 sm:$0xff]   ;;  %v8528_v21 = vld [vmem:[#allocation2 + $0x290] ss:$12 sps:$4 sm:$0xff]  }
 0x635   :  { %4611 = vmatprep.subr.bf16.mxu0 %v11375_v49  ;;  %7424 = vmatprep.subr.msk.bf16.mxu1 %vm2821_vm4, %v8493_v47  ;;  %v8521_v47 = vld [vmem:[#allocation2 + $0x270] ss:$12 sps:$4 sm:$0xff]  }
 0x638   :  { %4612 = vmatpush1.bf16.msra.mxu0 %v4548_v6  ;;  %4569 = vmatpush1.bf16.msra.mxu1 %v4542_v12  ;;  %v4644_v6 = vrot.slane %v10739_v1, 6  ;;  %v8532_v12 = vld [vmem:[#allocation2 + $0x2a8] ss:$12 sps:$4 sm:$0xff]  }
 0x639   :  { %4906 = vmatprep.subr.bf16.mxu0 %v11375_v49  ;;  %4863 = vmatprep.subr.bf16.mxu1 %v8499_v18  ;;  %v8533_v18 = vld [vmem:[#allocation2 + $0x2bc] ss:$12 sps:$4 sm:$0x3f]  }
 0x63b   :  { %4626 = vmatmul.mubr.bf16.vlgmr.msra.gmra.mrb[36].mxu0 %v4022_v62  ;;  %4583 = vmatmul.mubr.bf16.vlgmr.msra.gmra.mrb[40].mxu1 %v4022_v62  ;;  %v8535_v62 = vld [vmem:[#allocation2 + $0x2c0] ss:$12 sps:$4 sm:$0x3f]  }
 0x63c   :  { %4907 = vmatpush1.bf16.msra.mxu0 %v8500_v4  ;;  %4864 = vmatpush1.bf16.msra.mxu1 %v8497_v60  ;;  %v4958_v4 = vrot.slane %v10737_v23, 3  ;;  %v4965_v60 = vrot.slane %v10737_v23, 7  ;;  %v8581_v23 = vld [vmem:[#allocation2 + $0x3d8] ss:$12 sps:$4 sm:$0xff]  }
 0x63d   :  { %4908 = vmatprep.subr.bf16.mxu0 %v11375_v49  ;;  %4865 = vmatprep.subr.bf16.mxu1 %v8503_v26  ;;  %v4966_v26 = vrot.slane %v10741_v22, 7 }
 0x63e   :  { %7459 = vmatprep.mubr.msk.bf16.mxu0 %vm4284_vm9, %v4652_v55  ;;  %7458 = vmatprep.mubr.msk.bf16.mxu1 %vm4284_vm9, %v4652_v55  ;;  %v4636_v55 = vsel %vm2821_vm4, %v4634_v8, %v4635_v13  ;;  %v8556_v8 = vld [vmem:[#allocation2 + $0x338] ss:$12 sps:$4 sm:$0xff]   ;;  %v8553_v13 = vld [vmem:[#allocation2 + $0x330] ss:$12 sps:$4 sm:$0xff]  }
 0x640   :  { %4909 = vmatpush1.bf16.msra.mxu0 %v8504_v54  ;;  %4866 = vmatpush1.bf16.msra.mxu1 %v8501_v3  ;;  %v4645_v54 = vsel %vm4642_vm10, %v4643_v9, %v4644_v6  ;;  %v4861_v3 = vsel %vm2821_vm4, %v8535_v62, 0  ;;  %v8557_v9 = vld [vmem:[#allocation2 + $0x348] ss:$12 sps:$4 sm:$0xff]   ;;  %v8563_v6 = vld [vmem:[#allocation2 + $0x364] ss:$12 sps:$4 sm:$0xff]  }
 0x641   :  { %4910 = vmatprep.subr.bf16.mxu0 %v11375_v49  ;;  %4867 = vmatprep.subr.bf16.mxu1 %v8507_v15  ;;  %v4855_v15 = vsel %vm2821_vm4, %v8536_v20, 0  ;;  %v8567_v62 = vld [vmem:[#allocation2 + $0x37c] ss:$12 sps:$4 sm:$0xff]   ;;  %v8568_v20 = vld [vmem:[#allocation2 + $0x380] ss:$12 sps:$4 sm:$0xff]  }
 0x644   :  { %4911 = vmatpush1.bf16.msra.mxu0 %v8508_v63  ;;  %4868 = vmatpush1.bf16.msra.mxu1 %v8505_v0  ;;  %v8539_v63 = vld [vmem:[#allocation2 + $0x2d4] ss:$12 sps:$4 sm:$0xff]   ;;  %v4651_v0 = vpack.c.bf16 %v4645_v54, %v4636_v55  ;;  %v4955_v55 = vrot.slane %v10735_v51, 3  ;;  %v4962_v54 = vrot.slane %v10735_v51, 7 }
 0x645   :  { %4912 = vmatprep.subr.bf16.mxu0 %v11375_v49  ;;  %4869 = vmatprep.subr.bf16.mxu1 %v8511_v53  ;;  %v4959_v53 = vsel %vm4953_vm11, %v4957_v59, %v4958_v4  ;;  %v8565_v59 = vld [vmem:[#allocation2 + $0x378] ss:$12 sps:$4 sm:$0xff]   ;;  %v8571_v4 = vld [vmem:[#allocation2 + $0x394] ss:$12 sps:$4 sm:$0xff]  }
 0x648   :  { %4913 = vmatpush1.bf16.msra.mxu0 %v8512_v50  ;;  %4870 = vmatpush1.bf16.msra.mxu1 %v8509_v7  ;;  %v4967_v50 = vsel %vm2591_vm3, %v4965_v60, %v4966_v26  ;;  %v8540_v7 = vld [vmem:[#allocation2 + $0x2d8] ss:$12 sps:$4 sm:$0xff]   ;;  %v4954_v26 = vrot.slane %v10731_v57, 3 }
 0x649   :  { %4914 = vmatprep.subr.bf16.mxu0 %v11375_v49  ;;  %4871 = vmatprep.subr.bf16.mxu1 %v8515_v14  ;;  %v8537_v14 = vld [vmem:[#allocation2 + $0x2d0] ss:$12 sps:$4 sm:$0xff]   ;;  %v8572_v60 = vld [vmem:[#allocation2 + $0x398] ss:$12 sps:$4 sm:$0xff]  }
 0x64c   :  { %4915 = vmatpush1.bf16.msra.mxu0 %v8516_v24  ;;  %4872 = vmatpush1.bf16.msra.mxu1 %v8513_v37  ;;  %v8543_v24 = vld [vmem:[#allocation2 + $0x2ec] ss:$12 sps:$4 sm:$0xff]   ;;  %v4971_v37 = vpack.c.bf16 %v4967_v50, %v4959_v53  ;;  %v8576_v53 = vld [vmem:[#allocation2 + $0x3a8] ss:$12 sps:$4 sm:$0x3f]   ;;  %v5274_v50 = vrot.slane %v10733_v56, 4 }
 0x64d   :  { %4916 = vmatprep.subr.bf16.mxu0 %v11375_v49  ;;  %4873 = vmatprep.subr.bf16.mxu1 %v8519_v58  ;;  %v8544_v58 = vld [vmem:[#allocation2 + $0x2f0] ss:$12 sps:$4 sm:$0xff]  }
 0x64e   :  { %v5275_v56 = vsel %vm1409_vm1, %v5274_v50, %v4017_v46  ;;  %v8587_v46 = vld [vmem:[#allocation2 + $0x3f4] ss:$12 sps:$4 sm:$0xff]  }
 0x64f   :  { %v5652_v50 = vld [vmem:[%s11313_s10 + $0x80] sm:$0xff] }
 0x650   :  { %4917 = vmatpush1.bf16.msra.mxu0 %v8520_v35  ;;  %4874 = vmatpush1.bf16.msra.mxu1 %v8517_v52  ;;  %v8541_v35 = vld [vmem:[#allocation2 + $0x2e8] ss:$12 sps:$4 sm:$0xff]   ;;  %v8547_v52 = vld [vmem:[#allocation2 + $0x304] ss:$12 sps:$4 sm:$0xff]  }
 0x651   :  { %4918 = vmatprep.subr.bf16.mxu0 %v11375_v49  ;;  %4875 = vmatprep.subr.bf16.mxu1 %v8523_v25  ;;  %v8548_v25 = vld [vmem:[#allocation2 + $0x308] ss:$12 sps:$4 sm:$0xff]  }
 0x654   :  { %4919 = vmatpush1.bf16.msra.mxu0 %v8524_v10  ;;  %4876 = vmatpush1.bf16.msra.mxu1 %v8521_v47  ;;  %v8545_v10 = vld [vmem:[#allocation2 + $0x300] ss:$12 sps:$4 sm:$0xff]   ;;  %v8551_v47 = vld [vmem:[#allocation2 + $0x31c] ss:$12 sps:$4 sm:$0xff]  }
 0x655   :  { %4920 = vmatprep.subr.bf16.mxu0 %v11375_v49  ;;  %4877 = vmatprep.subr.bf16.mxu1 %v8527_v19  ;;  %v8552_v19 = vld [vmem:[#allocation2 + $0x320] ss:$12 sps:$4 sm:$0xff]  }
 0x658   :  { %4921 = vmatpush1.bf16.msra.mxu0 %v8528_v21  ;;  %4878 = vmatpush1.bf16.msra.mxu1 %v8525_v11  ;;  %v8549_v21 = vld [vmem:[#allocation2 + $0x318] ss:$12 sps:$4 sm:$0xff]   ;;  %v8555_v11 = vld [vmem:[#allocation2 + $0x334] ss:$12 sps:$4 sm:$0xff]  }
 0x659   :  { %4922 = vmatprep.subr.bf16.mxu0 %v11375_v49  ;;  %4879 = vmatprep.subr.bf16.mxu1 %v8531_v2  ;;  %v8559_v2 = vld [vmem:[#allocation2 + $0x34c] ss:$12 sps:$4 sm:$0xff]  }
 0x65c   :  { %4923 = vmatpush1.bf16.msra.mxu0 %v8532_v12  ;;  %4880 = vmatpush1.bf16.msra.mxu1 %v8529_v5  ;;  %v8560_v5 = vld [vmem:[#allocation2 + $0x350] ss:$12 sps:$4 sm:$0xff]   ;;  %v8564_v12 = vld [vmem:[#allocation2 + $0x368] ss:$12 sps:$4 sm:$0xff]  }
 0x65d   :  { %4924 = vmatprep.subr.bf16.mxu0 %v11375_v49  ;;  %7457 = vmatprep.subr.msk.bf16.mxu1 %vm2821_vm4, %v8533_v18  ;;  %v8561_v18 = vld [vmem:[#allocation2 + $0x360] ss:$12 sps:$4 sm:$0xff]  }
 0x660   :  { %4925 = vmatpush1.bf16.msra.mxu0 %v4861_v3  ;;  %4882 = vmatpush1.bf16.msra.mxu1 %v4855_v15  ;;  %v4963_v3 = vrot.slane %v10739_v1, 7  ;;  %v8569_v15 = vld [vmem:[#allocation2 + $0x390] ss:$12 sps:$4 sm:$0xff]  }
 0x661   :  { %5225 = vmatprep.subr.bf16.mxu0 %v11375_v49  ;;  %5182 = vmatprep.subr.bf16.mxu1 %v8539_v63  ;;  %v8575_v63 = vld [vmem:[#allocation2 + $0x3b0] ss:$12 sps:$4 sm:$0x3f]  }
 0x663   :  { %4939 = vmatmul.mubr.bf16.vlgmr.msra.gmra.mrb[36].mxu0 %v4651_v0  ;;  %4896 = vmatmul.mubr.bf16.vlgmr.msra.gmra.mrb[40].mxu1 %v4651_v0  ;;  %v8573_v0 = vld [vmem:[#allocation2 + $0x3ac] ss:$12 sps:$4 sm:$0x3f]  }
 0x664   :  { %5226 = vmatpush1.bf16.msra.mxu0 %v8540_v7  ;;  %5183 = vmatpush1.bf16.msra.mxu1 %v8537_v14  ;;  %v4956_v7 = vsel %vm4953_vm11, %v4954_v26, %v4955_v55  ;;  %v4964_v14 = vsel %vm2591_vm3, %v4962_v54, %v4963_v3  ;;  %v8605_v26 = vld [vmem:[#allocation2 + $0x468] ss:$12 sps:$4 sm:$0xff]   ;;  %v8611_v55 = vld [vmem:[#allocation2 + $0x484] ss:$12 sps:$4 sm:$0xff]   ;;  %v5272_v3 = vrot.slane %v10731_v57, 4 }
 0x665   :  { %5227 = vmatprep.subr.bf16.mxu0 %v11375_v49  ;;  %5184 = vmatprep.subr.bf16.mxu1 %v8543_v24  ;;  %v5180_v24 = vsel %vm2821_vm4, %v8575_v63, 0  ;;  %v8612_v54 = vld [vmem:[#allocation2 + $0x488] ss:$12 sps:$4 sm:$0xff]   ;;  %v8615_v63 = vld [vmem:[#allocation2 + $0x4a0] ss:$12 sps:$4 sm:$0x3f]  }
 0x666   :  { %7492 = vmatprep.mubr.msk.bf16.mxu0 %vm4284_vm9, %v4971_v37  ;;  %7491 = vmatprep.mubr.msk.bf16.mxu1 %vm4284_vm9, %v4971_v37  ;;  %v5174_v37 = vsel %vm2821_vm4, %v8576_v53, 0  ;;  %v8616_v53 = vld [vmem:[#allocation2 + $0x498] ss:$12 sps:$4 sm:$0x3f]   ;;  %v5273_v57 = vsel %vm1409_vm1, %v5272_v3, %v4014_v16 }
 0x667   :  { %v5636_v16 = vld [vmem:[%s11313_s10] sm:$0xff] }
 0x668   :  { %5228 = vmatpush1.bf16.msra.mxu0 %v8544_v58  ;;  %5185 = vmatpush1.bf16.msra.mxu1 %v8541_v35  ;;  %v8579_v58 = vld [vmem:[#allocation2 + $0x3c4] ss:$12 sps:$4 sm:$0xff]   ;;  %v4970_v35 = vpack.c.bf16 %v4964_v14, %v4956_v7  ;;  %v5653_v7 = vld [vmem:[%s11313_s10 + $0x88] sm:$0xff]  ;;  %v5488_v14 = vsel %vm2821_vm4, %v8615_v63, 0 }
 0x669   :  { %5229 = vmatprep.subr.bf16.mxu0 %v11375_v49  ;;  %5186 = vmatprep.subr.bf16.mxu1 %v8547_v52  ;;  %v8580_v52 = vld [vmem:[#allocation2 + $0x3c8] ss:$12 sps:$4 sm:$0xff]   ;;  %v7988_v51 = vpack.c.bf16 %v5653_v7, %v5652_v50  ;;  %v5660_v3 = vld [vmem:[%s11313_s10 + $0xc0] sm:$0xff] }
 0x66a   :  { %v5674_v7 = vld [vmem:[%s11313_s10 + $0x130] sm:$0xff] }
 0x66c   :  { %5230 = vmatpush1.bf16.msra.mxu0 %v8548_v25  ;;  %5187 = vmatpush1.bf16.msra.mxu1 %v8545_v10  ;;  %v8577_v25 = vld [vmem:[#allocation2 + $0x3c0] ss:$12 sps:$4 sm:$0xff]   ;;  %v8583_v10 = vld [vmem:[#allocation2 + $0x3dc] ss:$12 sps:$4 sm:$0xff]  }
 0x66d   :  { %5231 = vmatprep.subr.bf16.mxu0 %v11375_v49  ;;  %5188 = vmatprep.subr.bf16.mxu1 %v8551_v47  ;;  %v5279_v47 = vpack.c.bf16 %v10741_v22, %v5275_v56  ;;  %v8585_v22 = vld [vmem:[#allocation2 + $0x3f0] ss:$12 sps:$4 sm:$0xff]   ;;  %v5278_v56 = vpack.c.bf16 %v10739_v1, %v5273_v57 }
 0x66e   :  { %v5638_v1 = vld [vmem:[%s11313_s10 + $0x10] sm:$0xff]  ;;  %v5675_v57 = vld [vmem:[%s11313_s10 + $0x138] sm:$0xff] }
 0x670   :  { %5232 = vmatpush1.bf16.msra.mxu0 %v8552_v19  ;;  %5189 = vmatpush1.bf16.msra.mxu1 %v8549_v21  ;;  %v8584_v19 = vld [vmem:[#allocation2 + $0x3e0] ss:$12 sps:$4 sm:$0xff]   ;;  %v8588_v21 = vld [vmem:[#allocation2 + $0x3f8] ss:$12 sps:$4 sm:$0xff]  }
 0x671   :  { %5233 = vmatprep.subr.bf16.mxu0 %v11375_v49  ;;  %5190 = vmatprep.subr.bf16.mxu1 %v8555_v11  ;;  %v8591_v11 = vld [vmem:[#allocation2 + $0x40c] ss:$12 sps:$4 sm:$0xff]  }
 0x674   :  { %5234 = vmatpush1.bf16.msra.mxu0 %v8556_v8  ;;  %5191 = vmatpush1.bf16.msra.mxu1 %v8553_v13  ;;  %v8592_v8 = vld [vmem:[#allocation2 + $0x410] ss:$12 sps:$4 sm:$0xff]   ;;  %v8589_v13 = vld [vmem:[#allocation2 + $0x408] ss:$12 sps:$4 sm:$0xff]  }
 0x675   :  { %5235 = vmatprep.subr.bf16.mxu0 %v11375_v49  ;;  %5192 = vmatprep.subr.bf16.mxu1 %v8559_v2  ;;  %v8595_v2 = vld [vmem:[#allocation2 + $0x424] ss:$12 sps:$4 sm:$0xff]  }
 0x678   :  { %5236 = vmatpush1.bf16.msra.mxu0 %v8560_v5  ;;  %5193 = vmatpush1.bf16.msra.mxu1 %v8557_v9  ;;  %v8596_v5 = vld [vmem:[#allocation2 + $0x428] ss:$12 sps:$4 sm:$0xff]   ;;  %v8593_v9 = vld [vmem:[#allocation2 + $0x420] ss:$12 sps:$4 sm:$0xff]  }
 0x679   :  { %5237 = vmatprep.subr.bf16.mxu0 %v11375_v49  ;;  %5194 = vmatprep.subr.bf16.mxu1 %v8563_v6  ;;  %v8599_v6 = vld [vmem:[#allocation2 + $0x43c] ss:$12 sps:$4 sm:$0xff]  }
 0x67c   :  { %5238 = vmatpush1.bf16.msra.mxu0 %v8564_v12  ;;  %5195 = vmatpush1.bf16.msra.mxu1 %v8561_v18  ;;  %v8600_v12 = vld [vmem:[#allocation2 + $0x440] ss:$12 sps:$4 sm:$0xff]   ;;  %v8597_v18 = vld [vmem:[#allocation2 + $0x438] ss:$12 sps:$4 sm:$0xff]  }
 0x67d   :  { %5239 = vmatprep.subr.bf16.mxu0 %v11375_v49  ;;  %5196 = vmatprep.subr.bf16.mxu1 %v8567_v62  ;;  %v8603_v62 = vld [vmem:[#allocation2 + $0x454] ss:$12 sps:$4 sm:$0xff]  }
 0x680   :  { %5240 = vmatpush1.bf16.msra.mxu0 %v8568_v20  ;;  %5197 = vmatpush1.bf16.msra.mxu1 %v8565_v59  ;;  %v8604_v20 = vld [vmem:[#allocation2 + $0x458] ss:$12 sps:$4 sm:$0xff]   ;;  %v8601_v59 = vld [vmem:[#allocation2 + $0x450] ss:$12 sps:$4 sm:$0xff]  }
 0x681   :  { %5241 = vmatprep.subr.bf16.mxu0 %v11375_v49  ;;  %5198 = vmatprep.subr.bf16.mxu1 %v8571_v4  ;;  %v8607_v4 = vld [vmem:[#allocation2 + $0x46c] ss:$12 sps:$4 sm:$0xff]  }
 0x684   :  { %5242 = vmatpush1.bf16.msra.mxu0 %v8572_v60  ;;  %5199 = vmatpush1.bf16.msra.mxu1 %v8569_v15  ;;  %v8608_v60 = vld [vmem:[#allocation2 + $0x470] ss:$12 sps:$4 sm:$0xff]   ;;  %v8609_v15 = vld [vmem:[#allocation2 + $0x480] ss:$12 sps:$4 sm:$0xff]  }
 0x685   :  { %5243 = vmatprep.subr.bf16.mxu0 %v11375_v49  ;;  %7490 = vmatprep.subr.msk.bf16.mxu1 %vm2821_vm4, %v8573_v0  ;;  %v8613_v0 = vld [vmem:[#allocation2 + $0x49c] ss:$12 sps:$4 sm:$0x3f]  }
 0x688   :  { %5244 = vmatpush1.bf16.msra.mxu0 %v5180_v24  ;;  %5201 = vmatpush1.bf16.msra.mxu1 %v5174_v37  ;;  %v5668_v24 = vld [vmem:[%s11313_s10 + $0x100] sm:$0xff]  ;;  %v5669_v37 = vld [vmem:[%s11313_s10 + $0x108] sm:$0xff] }
 0x689   :  { %5533 = vmatprep.subr.bf16.mxu0 %v11375_v49  ;;  %5490 = vmatprep.subr.bf16.mxu1 %v8579_v58  ;;  %v5482_v58 = vsel %vm2821_vm4, %v8616_v53, 0  ;;  %v5645_v53 = vld [vmem:[%s11313_s10 + $0x48] sm:$0xff] }
 0x68b   :  { %5258 = vmatmul.mubr.bf16.vlgmr.msra.gmra.mrb[36].mxu0 %v4970_v35  ;;  %5215 = vmatmul.mubr.bf16.vlgmr.msra.gmra.mrb[40].mxu1 %v4970_v35  ;;  %v5637_v35 = vld [vmem:[%s11313_s10 + $0x8] sm:$0xff] }
 0x68c   :  { %5534 = vmatpush1.bf16.msra.mxu0 %v8580_v52  ;;  %5491 = vmatpush1.bf16.msra.mxu1 %v8577_v25  ;;  %v5654_v52 = vld [vmem:[%s11313_s10 + $0x90] sm:$0xff]  ;;  %v5655_v25 = vld [vmem:[%s11313_s10 + $0x98] sm:$0xff] }
 0x68d   :  { %5535 = vmatprep.subr.bf16.mxu0 %v11375_v49  ;;  %5492 = vmatprep.subr.bf16.mxu1 %v8583_v10  ;;  %v8021_v10 = vpack.c.bf16 %v5669_v37, %v5668_v24  ;;  %v5662_v24 = vld [vmem:[%s11313_s10 + $0xd0] sm:$0xff]  ;;  %v5663_v37 = vld [vmem:[%s11313_s10 + $0xd8] sm:$0xff] }
 0x68e   :  { %7525 = vmatprep.mubr.msk.bf16.mxu0 %vm4284_vm9, %v5279_v47  ;;  %7524 = vmatprep.mubr.msk.bf16.mxu1 %vm4284_vm9, %v5279_v47  ;;  %v7990_v47 = vpack.c.bf16 %v5637_v35, %v5636_v16  ;;  %v5647_v16 = vld [vmem:[%s11313_s10 + $0x58] sm:$0xff] }
 0x690   :  { %5536 = vmatpush1.bf16.msra.mxu0 %v8584_v19  ;;  %5493 = vmatpush1.bf16.msra.mxu1 %v8581_v23  ;;  %v11379_v19 = vmov 0.0|0.0   ;;  %v7992_v23 = vpack.c.bf16 %v5655_v25, %v5654_v52  ;;  %v5677_v52 = vld [vmem:[%s11313_s10 + $0x148] sm:$0xff] }
 0x691   :  { %5537 = vmatprep.subr.bf16.mxu0 %v11375_v49  ;;  %5494 = vmatprep.subr.bf16.mxu1 %v8587_v46  ;;  %v5639_v46 = vld [vmem:[%s11313_s10 + $0x18] sm:$0xff] }
 0x694   :  { %5538 = vmatpush1.bf16.msra.mxu0 %v8588_v21  ;;  %5495 = vmatpush1.bf16.msra.mxu1 %v8585_v22  ;;  %v5656_v21 = vld [vmem:[%s11313_s10 + $0xa0] sm:$0xff]  ;;  %v5657_v22 = vld [vmem:[%s11313_s10 + $0xa8] sm:$0xff] }
 0x695   :  { %5539 = vmatprep.subr.bf16.mxu0 %v11375_v49  ;;  %5496 = vmatprep.subr.bf16.mxu1 %v8591_v11  ;;  %v7994_v11 = vpack.c.bf16 %v5639_v46, %v5638_v1  ;;  %v5649_v46 = vld [vmem:[%s11313_s10 + $0x68] sm:$0xff] }
 0x698   :  { %5540 = vmatpush1.bf16.msra.mxu0 %v8592_v8  ;;  %5497 = vmatpush1.bf16.msra.mxu1 %v8589_v13  ;;  %v7996_v8 = vpack.c.bf16 %v5657_v22, %v5656_v21  ;;  %v5640_v13 = vld [vmem:[%s11313_s10 + $0x20] sm:$0xff]  ;;  %v5678_v21 = vld [vmem:[%s11313_s10 + $0x150] sm:$0xff]  ;;  %v5679_v22 = vld [vmem:[%s11313_s10 + $0x158] sm:$0xff] }
 0x699   :  { %5541 = vmatprep.subr.bf16.mxu0 %v11375_v49  ;;  %5498 = vmatprep.subr.bf16.mxu1 %v8595_v2  ;;  %v5641_v2 = vld [vmem:[%s11313_s10 + $0x28] sm:$0xff] }
 0x69c   :  { %5542 = vmatpush1.bf16.msra.mxu0 %v8596_v5  ;;  %5499 = vmatpush1.bf16.msra.mxu1 %v8593_v9  ;;  %v7998_v5 = vpack.c.bf16 %v5641_v2, %v5640_v13  ;;  %v5670_v9 = vld [vmem:[%s11313_s10 + $0x110] sm:$0xff]  ;;  %v5667_v2 = vld [vmem:[%s11313_s10 + $0xf8] sm:$0xff] }
 0x69d   :  { %5543 = vmatprep.subr.bf16.mxu0 %v11375_v49  ;;  %5500 = vmatprep.subr.bf16.mxu1 %v8599_v6  ;;  %v5671_v6 = vld [vmem:[%s11313_s10 + $0x118] sm:$0xff]  ;;  %v5666_v13 = vld [vmem:[%s11313_s10 + $0xf0] sm:$0xff] }
 0x6a0   :  { %5544 = vmatpush1.bf16.msra.mxu0 %v8600_v12  ;;  %5501 = vmatpush1.bf16.msra.mxu1 %v8597_v18  ;;  %v8024_v12 = vpack.c.bf16 %v5671_v6, %v5670_v9  ;;  %v5658_v18 = vld [vmem:[%s11313_s10 + $0xb0] sm:$0xff]  ;;  %v8016_v9 = vpack.c.bf16 %v5667_v2, %v5666_v13  ;;  %v5651_v6 = vld [vmem:[%s11313_s10 + $0x78] sm:$0xff] }
 0x6a1   :  { %5545 = vmatprep.subr.bf16.mxu0 %v11375_v49  ;;  %5502 = vmatprep.subr.bf16.mxu1 %v8603_v62  ;;  %v5659_v62 = vld [vmem:[%s11313_s10 + $0xb8] sm:$0xff] }
 0x6a4   :  { %5546 = vmatpush1.bf16.msra.mxu0 %v8604_v20  ;;  %5503 = vmatpush1.bf16.msra.mxu1 %v8601_v59  ;;  %v8000_v20 = vpack.c.bf16 %v5659_v62, %v5658_v18  ;;  %v5642_v59 = vld [vmem:[%s11313_s10 + $0x30] sm:$0xff] }
 0x6a5   :  { %5547 = vmatprep.subr.bf16.mxu0 %v11375_v49  ;;  %5504 = vmatprep.subr.bf16.mxu1 %v8607_v4  ;;  %v5643_v4 = vld [vmem:[%s11313_s10 + $0x38] sm:$0xff] }
 0x6a8   :  { %5548 = vmatpush1.bf16.msra.mxu0 %v8608_v60  ;;  %5505 = vmatpush1.bf16.msra.mxu1 %v8605_v26  ;;  %v8002_v60 = vpack.c.bf16 %v5643_v4, %v5642_v59  ;;  %v5672_v26 = vld [vmem:[%s11313_s10 + $0x120] sm:$0xff] }
 0x6a9   :  { %5549 = vmatprep.subr.bf16.mxu0 %v11375_v49  ;;  %5506 = vmatprep.subr.bf16.mxu1 %v8611_v55  ;;  %v5673_v55 = vld [vmem:[%s11313_s10 + $0x128] sm:$0xff] }
 0x6ac   :  { %5550 = vmatpush1.bf16.msra.mxu0 %v8612_v54  ;;  %5507 = vmatpush1.bf16.msra.mxu1 %v8609_v15  ;;  %v8027_v54 = vpack.c.bf16 %v5673_v55, %v5672_v26  ;;  %v5661_v15 = vld [vmem:[%s11313_s10 + $0xc8] sm:$0xff] }
 0x6ad   :  { %5551 = vmatprep.subr.bf16.mxu0 %v11375_v49  ;;  %7523 = vmatprep.subr.msk.bf16.mxu1 %vm2821_vm4, %v8613_v0  ;;  %v8004_v63 = vpack.c.bf16 %v5661_v15, %v5660_v3  ;;  %v5644_v0 = vld [vmem:[%s11313_s10 + $0x40] sm:$0xff] }
 0x6ae   :  { %v8006_v50 = vpack.c.bf16 %v5645_v53, %v5644_v0 }
 0x6b0   :  { %5552 = vmatpush1.bf16.msra.mxu0 %v5488_v14  ;;  %5509 = vmatpush1.bf16.msra.mxu1 %v5482_v58  ;;  %v8030_v14 = vpack.c.bf16 %v5675_v57, %v5674_v7  ;;  %v8008_v58 = vpack.c.bf16 %v5663_v37, %v5662_v24 }
 0x6b1   :  { %8020 = vmatprep.subr.bf16.mxu0 %v11379_v19  ;;  %7989 = vmatprep.subr.bf16.mxu1 %v7988_v51  ;;  %v5646_v51 = vld [vmem:[%s11313_s10 + $0x50] sm:$0xff] }
 0x6b2   :  { %v8010_v35 = vpack.c.bf16 %v5647_v16, %v5646_v51 }
 0x6b3   :  { %5566 = vmatmul.mubr.bf16.vlgmr.msra.gmra.mrb[36].mxu0 %v5278_v56  ;;  %5523 = vmatmul.mubr.bf16.vlgmr.msra.gmra.mrb[40].mxu1 %v5278_v56  ;;  %v5676_v56 = vld [vmem:[%s11313_s10 + $0x140] sm:$0xff] }
 0x6b4   :  { %8022 = vmatpush3.bf16.msra.mxu0 %v8021_v10  ;;  %7991 = vmatpush3.bf16.msra.mxu1 %v7990_v47  ;;  %v8033_v25 = vpack.c.bf16 %v5677_v52, %v5676_v56  ;;  %v5664_v10 = vld [vmem:[%s11313_s10 + $0xe0] sm:$0xff]  ;;  %v5665_v47 = vld [vmem:[%s11313_s10 + $0xe8] sm:$0xff] }
 0x6b5   :  { %8023 = vmatprep.subr.bf16.mxu0 %v11379_v19  ;;  %7993 = vmatprep.subr.bf16.mxu1 %v7992_v23  ;;  %v5648_v23 = vld [vmem:[%s11313_s10 + $0x60] sm:$0xff]  ;;  %v8012_v1 = vpack.c.bf16 %v5665_v47, %v5664_v10 }
 0x6b6   :  { %7889 = vmatprep.mubr.msk.f32.mxu0 %vm8664_vm0, %v11374_v36 }
 0x6b8   :  { %7995 = vmatpush3.bf16.msra.mxu1 %v7994_v11  ;;  %8025 = vmatpush3.bf16.msra.mxu0 %v8024_v12  ;;  %v8014_v11 = vpack.c.bf16 %v5649_v46, %v5648_v23 }
 0x6b9   :  { %7997 = vmatprep.subr.bf16.mxu1 %v7996_v8  ;;  %8026 = vmatprep.subr.bf16.mxu0 %v11379_v19  ;;  %v8036_v8 = vpack.c.bf16 %v5679_v22, %v5678_v21 }
 0x6bc   :  { %7999 = vmatpush3.bf16.msra.mxu1 %v7998_v5  ;;  %8028 = vmatpush3.bf16.msra.mxu0 %v8027_v54  ;;  %v5650_v5 = vld [vmem:[%s11313_s10 + $0x70] sm:$0xff] }
 0x6bd   :  { %8001 = vmatprep.subr.bf16.mxu1 %v8000_v20  ;;  %8029 = vmatprep.subr.bf16.mxu0 %v11379_v19  ;;  %v8018_v12 = vpack.c.bf16 %v5651_v6, %v5650_v5 }
 0x6c0   :  { %8003 = vmatpush3.bf16.msra.mxu1 %v8002_v60  ;;  %8031 = vmatpush3.bf16.msra.mxu0 %v8030_v14 }
 0x6c1   :  { %8005 = vmatprep.subr.bf16.mxu1 %v8004_v63  ;;  %8032 = vmatprep.subr.bf16.mxu0 %v11379_v19 }
 0x6c4   :  { %8007 = vmatpush3.bf16.msra.mxu1 %v8006_v50  ;;  %8034 = vmatpush3.bf16.msra.mxu0 %v8033_v25 }
 0x6c5   :  { %8009 = vmatprep.subr.bf16.mxu1 %v8008_v58  ;;  %8035 = vmatprep.subr.bf16.mxu0 %v11379_v19 }
 0x6c8   :  { %8011 = vmatpush3.bf16.msra.mxu1 %v8010_v35  ;;  %8037 = vmatpush3.bf16.msra.mxu0 %v8036_v8 }
 0x6c9   :  { %8013 = vmatprep.subr.bf16.mxu1 %v8012_v1 }
 0x6cc   :  { %8015 = vmatpush3.bf16.msra.mxu1 %v8014_v11 }
 0x6cd   :  { %8017 = vmatprep.subr.bf16.mxu1 %v8016_v9 }
 0x6d0   :  { %8019 = vmatpush3.bf16.msra.mxu1 %v8018_v12 }
 0x786   :  { %v11016_v18 = vpop.f32.mrb[36].mxu0  ;;  %v11020_v20 = vpop.f32.mrb[40].mxu1 }
 0x787   :  { %v5606_v62 = vmul.f32 %v11016_v18, %v11016_v18  ;;  %v5569_v59 = vpop.f32.mrb[37].mxu0  ;;  %v11022_v4 = vpop.f32.mrb[41].mxu1  ;;  %v5595_v26 = vsel %vm5594_vm12, %v11016_v18, 0.0  ;;  %v5604_v55 = vmul.f32 %v11020_v20, %v11020_v20 }
 0x788   :  { %v11024_v60 = vpop.f32.mrb[38].mxu0  ;;  %v11034_v15 = vpop.f32.mrb[42].mxu1  ;;  %v5605_v14 = vmul.f32 %v11022_v4, %v11022_v4 }
 0x789   :  { %v5596_v54 = vsel %vm5594_vm12, %v11024_v60, 0.0  ;;  %v5609_v3 = vmul.f32 %v11024_v60, %v11024_v60  ;;  %v5572_v63 = vpop.f32.mrb[39].mxu0  ;;  %v5624_v0 = vsel %vm5594_vm12, %v5606_v62, 0.0  ;;  %v5580_v50 = vadd.f32 %v11034_v15, %v11020_v20  ;;  %v11041_v57 = vpop.f32.mrb[43].mxu1 }
 0x78a   :  { %v5597_v53 = vadd.f32 %v5596_v54, %v5595_v26  ;;  %v5607_v7 = vmul.f32 %v11034_v15, %v11034_v15  ;;  %v5587_v37 = vadd.f32 %v11041_v57, %v11022_v4  ;;  %v5608_v58 = vmul.f32 %v11041_v57, %v11041_v57 }
 0x78b   :  { %v5625_v24 = vsel %vm5594_vm12, %v5609_v3, 0.0  ;;  %v5581_v35 = vrot.slane %v5580_v50, 4 }
 0x78c   :  { %v5598_v51 = vrot.slane %v5597_v53, 4  ;;  %v5626_v16 = vadd.f32 %v5625_v24, %v5624_v0  ;;  %v5610_v56 = vadd.f32 %v5607_v7, %v5604_v55  ;;  %v5588_v52 = vrot.slane %v5587_v37, 4 }
 0x78d   :  { %v5617_v25 = vadd.f32 %v5608_v58, %v5605_v14  ;;  %v5582_v23 = vadd.f32 %v5581_v35, %v5580_v50 }
 0x78e   :  { %v5599_v10 = vadd.f32 %v5598_v51, %v5597_v53  ;;  %v5627_v47 = vrot.slane %v5626_v16, 4  ;;  %v5611_v1 = vrot.slane %v5610_v56, 4  ;;  %v5589_v46 = vadd.f32 %v5588_v52, %v5587_v37 }
 0x78f   :  { %v5618_v21 = vrot.slane %v5617_v25, 4  ;;  %v5583_v8 = vrot.slane %v5582_v23, 2 }
 0x790   :  { %v5600_v22 = vrot.slane %v5599_v10, 2  ;;  %v5628_v11 = vadd.f32 %v5627_v47, %v5626_v16  ;;  %v5612_v13 = vadd.f32 %v5611_v1, %v5610_v56  ;;  %v5590_v2 = vrot.slane %v5589_v46, 2  ;;  %v5864_v47 = vld [vmem:[%s11314_s11 + $0x20] sm:$0xff] }
 0x791   :  { %v5619_v5 = vadd.f32 %v5618_v21, %v5617_v25  ;;  %v5584_v12 = vadd.f32 %v5583_v8, %v5582_v23  ;;  %v5860_v23 = vld [vmem:[%s11314_s11] sm:$0xff] }
 0x792   :  { %v5601_v9 = vadd.f32 %v5600_v22, %v5599_v10  ;;  %v5629_v6 = vrot.slane %v5628_v11, 2  ;;  %v5613_v62 = vrot.slane %v5612_v13, 2  ;;  %v5591_v59 = vadd.f32 %v5590_v2, %v5589_v46  ;;  %v5861_v10 = vld [vmem:[%s11314_s11 + $0x8] sm:$0xff]  ;;  %v5863_v46 = vld [vmem:[%s11314_s11 + $0x18] sm:$0xff] }
 0x793   :  { %v5620_v26 = vrot.slane %v5619_v5, 2  ;;  %v5585_v3 = vrot.slane %v5584_v12, 1  ;;  %v8038_v1 = vpack.c.bf16 %v5864_v47, %v5861_v10  ;;  %v8040_v21 = vpack.c.bf16 %v5863_v46, %v5860_v23 }
 0x794   :  { %v5602_v55 = vrot.slane %v5601_v9, 1  ;;  %v5630_v54 = vadd.f32 %v5629_v6, %v5628_v11  ;;  %v5614_v63 = vadd.f32 %v5613_v62, %v5612_v13  ;;  %v5592_v0 = vrot.slane %v5591_v59, 1 }
 0x795   :  { %v5621_v53 = vadd.f32 %v5620_v26, %v5619_v5  ;;  %v5586_v58 = vadd.f32 %v5585_v3, %v5584_v12  ;;  %8039 = vmatprep.subr.bf16.mxu0 %v8038_v1 }
 0x796   :  { %v5631_v50 = vrot.slane %v5630_v54, 1  ;;  %v5615_v7 = vrot.slane %v5614_v63, 1  ;;  %v5603_v24 = vadd.f32 %v5602_v55, %v5601_v9  ;;  %v5593_v16 = vadd.f32 %v5592_v0, %v5591_v59  ;;  %v5850_v0 = vld [vmem:[%s11316_s13] sm:$0x1] }
 0x797   :  { %v5622_v14 = vrot.slane %v5621_v53, 1 }
 0x798   :  { %v5632_v37 = vadd.f32 %v5631_v50, %v5630_v54  ;;  %v5616_v51 = vadd.f32 %v5615_v7, %v5614_v63  ;;  %v5862_v50 = vld [vmem:[%s11314_s11 + $0x10] sm:$0xff]  ;;  %v5865_v7 = vld [vmem:[%s11314_s11 + $0x28] sm:$0xff] }
 0x799   :  { %v5623_v35 = vadd.f32 %v5622_v14, %v5621_v53 }
 0x79a   :  { %v5635_v56 = vsel %vm2591_vm3, %v5603_v24, %v5632_v37  ;;  %v5633_v52 = vsel %vm2591_vm3, %v5586_v58, %v5616_v51  ;;  %v8043_v37 = vpack.c.bf16 %v5865_v7, %v5862_v50 }
 0x79b   :  { %7890 = vmatmul.mubr.msk.f32.vlgmr.msra.gmra.mrb[14].mxu0 %vm5594_vm12, %v5635_v56  ;;  %v5634_v25 = vsel %vm2591_vm3, %v5593_v16, %v5623_v35 }
 0x79c   :  { %5747 = vmatprep.mubr.f32.mxu1 %v5634_v25  ;;  %5934 = vmatprep.mubr.f32.mxu0 %v11374_v36 }
 0x79d   :  { %5748 = vmatmul.mubr.f32.vlgmr.msra.gmra.mrb[18].mxu1 %v5633_v52  ;;  %8041 = vmatpush1.bf16.msra.mxu0 %v8040_v21 }
 0x79e   :  { %8042 = vmatprep.subr.bf16.mxu0 %v11379_v19  ;;  %v5829_v19 = vld [vmem:[%s11315_s12] sm:$0x1] }
 0x86e   :  { %v5819_v22 = vpop.f32.mrb[14].mxu0 }
 0x86f   :  { %v7891_v11 = vpop.f32.mrb[15].mxu0 }
 0x870   :  { %v7684_v8 = vpop.f32.mrb[18].mxu1 }
 0x871   :  { %v7685_v13 = vpop.f32.mrb[19].mxu1 }
 0x872   :  { %v7686_v2 = vadd.f32 %v7685_v13, %v7684_v8 }
 0x874   :  { %v5820_v5 = vadd.f32 %v7686_v2, %v5819_v22 }
 0x876   :  { %v5823_v9 = vmul.f32 0.0028409092, %v5820_v5 }
 0x878   :  { %v5824_v6 = vmul.f32 %v5823_v9, %v5823_v9 }
 0x87a   :  { %v5826_v12 = vrot.slane %v5824_v6, 7 }
 0x87c   :  { %v5828_v62 = vsub.f32 %v5823_v9, %v5826_v12 }
 0x87e   :  { %v5830_v59 = vadd.f32 1e-05, %v5828_v62 }
 0x880   :  { %8617 = vrsqrt.f32 %v5830_v59 }
 0x88a   :  { %v8618_v26 = vpop.eup %8617 }
 0x88b   :  { %v5839_v55 = vrot.slane %v8618_v26, %v10408_v61 }
 0x88d   :  { %v5840_v54 = vcombine.high %v5839_v55, %v5839_v55 }
 0x88f   :  { %v5847_v3 = vrot.slane %v5840_v54, %v10408_v61 }
 0x891   :  { %v5849_v63 = vmul.f32 %v5847_v3, %v5829_v19 }
 0x893   :  { %v5851_v53 = vmul.f32 %v5849_v63, %v5823_v9 }
 0x895   :  { %v5852_v14 = vsub.f32 %v5850_v0, %v5851_v53 }
 0x897   :  { %v5857_v24 = vrot.slane %v5852_v14, %v10418_v48 }
 0x899   :  { %v5859_v61 = vsel %vm2591_vm3, %v5849_v63, %v5857_v24 }
 0x89a   :  { %7527 = vmatmul.mubr.msk.f32.vlgmr.msra.gmra.mrb[40].mxu0 %vm5866_vm13, %v5859_v61 }
 0x89b   :  { %8044 = vmatpush3.bf16.msra.mxu0 %v8043_v37  ;;  %7896 = vmatprep.mubr.msk.f32.mxu0 %vm8664_vm0, %v11374_v36 }
 0x89e   :  { %7897 = vmatmul.mubr.msk.f32.vlgmr.msra.gmra.mrb[42].mxu0 %vm5866_vm13, %v5859_v61 }
 0x96d   :  { %v5936_v58 = vpop.f32.mrb[40].mxu0 }
 0x96e   :  { %v6014_v51 = vrot.slane %v5936_v58, %v10418_v48  ;;  %v5938_v16 = vpop.f32.mrb[41].mxu0  ;;  %v6032_v25 = vrot.slane %v5936_v58, %v10435_v17 }
 0x96f   :  { %v6018_v35 = vrot.slane %v5938_v16, %v10418_v48  ;;  %v6036_v23 = vrot.slane %v5938_v16, %v10435_v17 }
 0x970   :  { %v6023_v56 = vmul.f32 %v6014_v51, %v11020_v20  ;;  %v6026_v52 = vmul.f32 %v6014_v51, %v11034_v15 }
 0x971   :  { %v6024_v10 = vmul.f32 %v6018_v35, %v11022_v4  ;;  %v6027_v47 = vmul.f32 %v6018_v35, %v11041_v57  ;;  %v6007_v1 = vpop.f32.mrb[42].mxu0 }
 0x972   :  { %v6041_v46 = vadd.f32 %v6032_v25, %v6023_v56  ;;  %v6044_v21 = vadd.f32 %v6032_v25, %v6026_v52  ;;  %v6022_v22 = vrot.slane %v6007_v1, %v10418_v48  ;;  %v7898_v11 = vpop.f32.mrb[43].mxu0  ;;  %v6040_v20 = vrot.slane %v6007_v1, %v10435_v17 }
 0x973   :  { %v6042_v8 = vadd.f32 %v6036_v23, %v6024_v10  ;;  %v6045_v13 = vadd.f32 %v6036_v23, %v6027_v47 }
 0x974   :  { %v6047_v2 = vmax.f32 %v6041_v46, 0.0  ;;  %v6050_v15 = vmax.f32 %v6044_v21, 0.0  ;;  %v6025_v5 = vmul.f32 %v6022_v22, %v11016_v18  ;;  %v6028_v4 = vmul.f32 %v6022_v22, %v11024_v60 }
 0x975   :  { %v6048_v9 = vmax.f32 %v6042_v8, 0.0  ;;  %v6051_v57 = vmax.f32 %v6045_v13, 0.0 }
 0x976   :  { %v6043_v6 = vadd.f32 %v6040_v20, %v6025_v5  ;;  %v6046_v12 = vadd.f32 %v6040_v20, %v6028_v4 }
 0x978   :  { %v6049_v62 = vmax.f32 %v6043_v6, 0.0  ;;  %v6052_v59 = vmax.f32 %v6046_v12, 0.0 }
 0x979   :  { %8657 = dma.done.wait [#allocation5 + $0x1], 11264 }
 0x97a   :  { %8658 = vsyncadd [#allocation5 + $0x1], 4294956032  ;;  %v6059_v48 = vpack.c.bf16 %v6051_v57, %v6048_v9  ;;  %v6058_v26 = vpack.c.bf16 %v6050_v15, %v6047_v2  ;;  %6097 = vmatprep.mubr.bf16.mxu1 %v11375_v49  ;;  %7899 = vmatprep.subr.bf16.mxu0 %v11374_v36  ;;  %v6060_v17 = vpack.c.bf16 %v6052_v59, %v6049_v62  ;;  %v6061_v18 = vld [vmem:[%s11312_s9] sm:$0xf]  ;;  %v6239_v60 = vld [vmem:[#allocation3 + $0x8] sm:$0xff] }
 0x97b   :  { %7901 = vmatprep.mubr.msk.bf16.mxu0 %vm8664_vm0, %v11374_v36  ;;  %v6369_v55 = vld [vmem:[#allocation3 + $0x168] sm:$0xff]  ;;  %v7531_v54 = vld [vmem:[%s11312_s9 + $0x4] sm:$0xf]  ;;  %v6238_v19 = vld [vmem:[#allocation3] sm:$0xff] }
 0x97c   :  { %6065 = vmatprep.subr.bf16.mxu1 %v6059_v48  ;;  %7900 = vmatpush3.bf16.msra.mxu0 %v6060_v17  ;;  %v6368_v3 = vld [vmem:[#allocation3 + $0x160] sm:$0xff]  ;;  %v6241_v63 = vld [vmem:[#allocation3 + $0x18] sm:$0xff]  ;;  %v6240_v53 = vld [vmem:[#allocation3 + $0x10] sm:$0xff] }
 0x97d   :  { %6066 = vmatpush1.bf16.msra.mxu1 %v6058_v26  ;;  %7905 = vmatprep.subr.bf16.mxu0 %v11374_v36  ;;  %v6371_v0 = vld [vmem:[#allocation3 + $0x178] sm:$0xff]  ;;  %v6370_v50 = vld [vmem:[#allocation3 + $0x170] sm:$0xff]  ;;  %v6243_v7 = vld [vmem:[#allocation3 + $0x28] sm:$0xff] }
 0x97e   :  { %6151 = vmatprep.subr.bf16.mxu1 %v6059_v48  ;;  %v6373_v14 = vld [vmem:[#allocation3 + $0x188] sm:$0xff]  ;;  %v6242_v24 = vld [vmem:[#allocation3 + $0x20] sm:$0xff]  ;;  %v6245_v61 = vld [vmem:[#allocation3 + $0x38] sm:$0xff] }
 0x97f   :  { %7902 = vmatmul.mubr.msk.bf16.vlgmr.msra.gmra.mrb[44].mxu0 %vm5866_vm13, %v6061_v18  ;;  %v6372_v37 = vld [vmem:[#allocation3 + $0x180] sm:$0xff]  ;;  %v6375_v58 = vld [vmem:[#allocation3 + $0x198] sm:$0xff]  ;;  %v6244_v51 = vld [vmem:[#allocation3 + $0x30] sm:$0xff] }
 0x980   :  { %7529 = vmatmul.mubr.msk.bf16.vlgmr.msra.gmra.mrb[44].mxu1 %vm5866_vm13, %v6061_v18  ;;  %7906 = vmatpush3.bf16.msra.mxu0 %v6060_v17  ;;  %v6374_v16 = vld [vmem:[#allocation3 + $0x190] sm:$0xff]  ;;  %v6247_v35 = vld [vmem:[#allocation3 + $0x48] sm:$0xff]  ;;  %v6246_v52 = vld [vmem:[#allocation3 + $0x40] sm:$0xff] }
 0x981   :  { %6152 = vmatpush1.bf16.msra.mxu1 %v6058_v26  ;;  %6183 = vmatprep.mubr.bf16.mxu1 %v11375_v49  ;;  %v6377_v56 = vld [vmem:[#allocation3 + $0x1a8] sm:$0xff]  ;;  %v6376_v25 = vld [vmem:[#allocation3 + $0x1a0] sm:$0xff]  ;;  %v6249_v10 = vld [vmem:[#allocation3 + $0x58] sm:$0xff] }
 0x982   :  { %7907 = vmatprep.mubr.msk.bf16.mxu0 %vm8664_vm0, %v11374_v36  ;;  %6285 = vmatprep.subr.bf16.mxu1 %v6239_v60  ;;  %v6379_v47 = vld [vmem:[#allocation3 + $0x1b8] sm:$0xff]  ;;  %v6248_v23 = vld [vmem:[#allocation3 + $0x50] sm:$0xff]  ;;  %v6251_v46 = vld [vmem:[#allocation3 + $0x68] sm:$0xff] }
 0x983   :  { %6412 = vmatprep.subr.bf16.mxu0 %v6369_v55  ;;  %v6378_v1 = vld [vmem:[#allocation3 + $0x1b0] sm:$0xff]  ;;  %v6381_v21 = vld [vmem:[#allocation3 + $0x1c8] sm:$0xff]  ;;  %v6250_v22 = vld [vmem:[#allocation3 + $0x60] sm:$0xff] }
 0x984   :  { %v6380_v11 = vld [vmem:[#allocation3 + $0x1c0] sm:$0xff]  ;;  %v6253_v8 = vld [vmem:[#allocation3 + $0x78] sm:$0xff]  ;;  %v6252_v20 = vld [vmem:[#allocation3 + $0x70] sm:$0xff] }
 0x985   :  { %v6383_v13 = vld [vmem:[#allocation3 + $0x1d8] sm:$0xff]  ;;  %v6382_v2 = vld [vmem:[#allocation3 + $0x1d0] sm:$0xff]  ;;  %v6255_v15 = vld [vmem:[#allocation3 + $0x88] sm:$0xff] }
 0x986   :  { %v6385_v5 = vld [vmem:[#allocation3 + $0x1e8] sm:$0xff]  ;;  %v6254_v4 = vld [vmem:[#allocation3 + $0x80] sm:$0xff]  ;;  %v6257_v57 = vld [vmem:[#allocation3 + $0x98] sm:$0xff] }
 0x987   :  { %7908 = vmatmul.mubr.msk.bf16.vlgmr.msra.gmra.mrb[48].mxu0 %vm5866_vm13, %v7531_v54  ;;  %v6384_v9 = vld [vmem:[#allocation3 + $0x1e0] sm:$0xff]  ;;  %v6387_v6 = vld [vmem:[#allocation3 + $0x1f8] sm:$0xff]  ;;  %v6256_v12 = vld [vmem:[#allocation3 + $0x90] sm:$0xff] }
 0x988   :  { %7532 = vmatmul.mubr.msk.bf16.vlgmr.msra.gmra.mrb[48].mxu1 %vm5866_vm13, %v7531_v54  ;;  %6413 = vmatpush1.bf16.msra.mxu0 %v6368_v3  ;;  %v6386_v62 = vld [vmem:[#allocation3 + $0x1f0] sm:$0xff]  ;;  %v6259_v59 = vld [vmem:[#allocation3 + $0xa8] sm:$0xff]  ;;  %v6258_v26 = vld [vmem:[#allocation3 + $0xa0] sm:$0xff] }
 0x989   :  { %6286 = vmatpush1.bf16.msra.mxu1 %v6238_v19  ;;  %6414 = vmatprep.subr.bf16.mxu0 %v6371_v0  ;;  %v6389_v48 = vld [vmem:[#allocation3 + $0x208] sm:$0xff]  ;;  %v6388_v17 = vld [vmem:[#allocation3 + $0x200] sm:$0xff]  ;;  %v6261_v18 = vld [vmem:[#allocation3 + $0xb8] sm:$0xff] }
 0x98a   :  { %6287 = vmatprep.subr.bf16.mxu1 %v6241_v63  ;;  %v6391_v60 = vld [vmem:[#allocation3 + $0x218] sm:$0xff]  ;;  %v6260_v55 = vld [vmem:[#allocation3 + $0xb0] sm:$0xff]  ;;  %v6263_v19 = vld [vmem:[#allocation3 + $0xc8] sm:$0xff] }
 0x98b   :  { %v6390_v54 = vld [vmem:[#allocation3 + $0x210] sm:$0xff]  ;;  %v6393_v3 = vld [vmem:[#allocation3 + $0x228] sm:$0xff]  ;;  %v6262_v63 = vld [vmem:[#allocation3 + $0xc0] sm:$0xff] }
 0x98c   :  { %6415 = vmatpush1.bf16.msra.mxu0 %v6370_v50  ;;  %v6392_v0 = vld [vmem:[#allocation3 + $0x220] sm:$0xff]  ;;  %v6395_v50 = vld [vmem:[#allocation3 + $0x238] sm:$0xff] }
 0x98d   :  { %6288 = vmatpush1.bf16.msra.mxu1 %v6240_v53  ;;  %6416 = vmatprep.subr.bf16.mxu0 %v6373_v14  ;;  %v6265_v53 = vld [vmem:[#allocation3 + $0xd8] sm:$0xff]  ;;  %v6394_v14 = vld [vmem:[#allocation3 + $0x230] sm:$0xff] }
 0x98e   :  { %6289 = vmatprep.subr.bf16.mxu1 %v6243_v7  ;;  %v6264_v7 = vld [vmem:[#allocation3 + $0xd0] sm:$0xff] }
 0x990   :  { %6417 = vmatpush1.bf16.msra.mxu0 %v6372_v37  ;;  %v6397_v37 = vld [vmem:[#allocation3 + $0x248] sm:$0xff] }
 0x991   :  { %6290 = vmatpush1.bf16.msra.mxu1 %v6242_v24  ;;  %6418 = vmatprep.subr.bf16.mxu0 %v6375_v58  ;;  %v6267_v24 = vld [vmem:[#allocation3 + $0xe8] sm:$0xff]  ;;  %v6396_v58 = vld [vmem:[#allocation3 + $0x240] sm:$0xff] }
 0x992   :  { %6291 = vmatprep.subr.bf16.mxu1 %v6245_v61  ;;  %v6266_v61 = vld [vmem:[#allocation3 + $0xe0] sm:$0xff] }
 0x994   :  { %6419 = vmatpush1.bf16.msra.mxu0 %v6374_v16  ;;  %v6399_v16 = vld [vmem:[#allocation3 + $0x258] sm:$0xff] }
 0x995   :  { %6292 = vmatpush1.bf16.msra.mxu1 %v6244_v51  ;;  %6420 = vmatprep.subr.bf16.mxu0 %v6377_v56  ;;  %v6269_v51 = vld [vmem:[#allocation3 + $0xf8] sm:$0xff]  ;;  %v6398_v56 = vld [vmem:[#allocation3 + $0x250] sm:$0xff] }
 0x996   :  { %6293 = vmatprep.subr.bf16.mxu1 %v6247_v35  ;;  %v6268_v35 = vld [vmem:[#allocation3 + $0xf0] sm:$0xff] }
 0x998   :  { %6421 = vmatpush1.bf16.msra.mxu0 %v6376_v25  ;;  %v6401_v25 = vld [vmem:[#allocation3 + $0x268] sm:$0xff] }
 0x999   :  { %6294 = vmatpush1.bf16.msra.mxu1 %v6246_v52  ;;  %6422 = vmatprep.subr.bf16.mxu0 %v6379_v47  ;;  %v6271_v52 = vld [vmem:[#allocation3 + $0x108] sm:$0xff] }
 0x99a   :  { %6295 = vmatprep.subr.bf16.mxu1 %v6249_v10 }
 0x99c   :  { %6423 = vmatpush1.bf16.msra.mxu0 %v6378_v1 }
 0x99d   :  { %6296 = vmatpush1.bf16.msra.mxu1 %v6248_v23  ;;  %6424 = vmatprep.subr.bf16.mxu0 %v6381_v21 }
 0x99e   :  { %6297 = vmatprep.subr.bf16.mxu1 %v6251_v46 }
 0x9a0   :  { %6425 = vmatpush1.bf16.msra.mxu0 %v6380_v11 }
 0x9a1   :  { %6298 = vmatpush1.bf16.msra.mxu1 %v6250_v22  ;;  %6426 = vmatprep.subr.bf16.mxu0 %v6383_v13 }
 0x9a2   :  { %6299 = vmatprep.subr.bf16.mxu1 %v6253_v8 }
 0x9a4   :  { %6427 = vmatpush1.bf16.msra.mxu0 %v6382_v2 }
 0x9a5   :  { %6300 = vmatpush1.bf16.msra.mxu1 %v6252_v20  ;;  %6428 = vmatprep.subr.bf16.mxu0 %v6385_v5 }
 0x9a6   :  { %6301 = vmatprep.subr.bf16.mxu1 %v6255_v15 }
 0x9a8   :  { %6429 = vmatpush1.bf16.msra.mxu0 %v6384_v9 }
 0x9a9   :  { %6302 = vmatpush1.bf16.msra.mxu1 %v6254_v4  ;;  %6430 = vmatprep.subr.bf16.mxu0 %v6387_v6 }
 0x9aa   :  { %6303 = vmatprep.subr.bf16.mxu1 %v6257_v57 }
 0x9ac   :  { %6431 = vmatpush1.bf16.msra.mxu0 %v6386_v62 }
 0x9ad   :  { %6304 = vmatpush1.bf16.msra.mxu1 %v6256_v12  ;;  %6432 = vmatprep.subr.bf16.mxu0 %v6389_v48  ;;  %v6270_v48 = vld [vmem:[#allocation3 + $0x100] sm:$0xff] }
 0x9ae   :  { %6305 = vmatprep.subr.bf16.mxu1 %v6259_v59 }
 0x9b0   :  { %6433 = vmatpush1.bf16.msra.mxu0 %v6388_v17  ;;  %v6273_v17 = vld [vmem:[#allocation3 + $0x118] sm:$0xff] }
 0x9b1   :  { %6306 = vmatpush1.bf16.msra.mxu1 %v6258_v26  ;;  %6434 = vmatprep.subr.bf16.mxu0 %v6391_v60  ;;  %v6400_v26 = vld [vmem:[#allocation3 + $0x260] sm:$0xff]  ;;  %v6272_v60 = vld [vmem:[#allocation3 + $0x110] sm:$0xff] }
 0x9b2   :  { %6307 = vmatprep.subr.bf16.mxu1 %v6261_v18  ;;  %v6403_v18 = vld [vmem:[#allocation3 + $0x278] sm:$0xff] }
 0x9b4   :  { %6435 = vmatpush1.bf16.msra.mxu0 %v6390_v54  ;;  %v6275_v54 = vld [vmem:[#allocation3 + $0x128] sm:$0xff] }
 0x9b5   :  { %6308 = vmatpush1.bf16.msra.mxu1 %v6260_v55  ;;  %6436 = vmatprep.subr.bf16.mxu0 %v6393_v3  ;;  %v6402_v55 = vld [vmem:[#allocation3 + $0x270] sm:$0xff]  ;;  %v6274_v3 = vld [vmem:[#allocation3 + $0x120] sm:$0xff] }
 0x9b6   :  { %6309 = vmatprep.subr.bf16.mxu1 %v6263_v19  ;;  %v6405_v19 = vld [vmem:[#allocation3 + $0x288] sm:$0xff] }
 0x9b8   :  { %6437 = vmatpush1.bf16.msra.mxu0 %v6392_v0  ;;  %v6277_v0 = vld [vmem:[#allocation3 + $0x138] sm:$0xff] }
 0x9b9   :  { %6310 = vmatpush1.bf16.msra.mxu1 %v6262_v63  ;;  %6438 = vmatprep.subr.bf16.mxu0 %v6395_v50  ;;  %v6404_v63 = vld [vmem:[#allocation3 + $0x280] sm:$0xff]  ;;  %v6276_v50 = vld [vmem:[#allocation3 + $0x130] sm:$0xff] }
 0x9ba   :  { %6311 = vmatprep.subr.bf16.mxu1 %v6265_v53  ;;  %v6407_v53 = vld [vmem:[#allocation3 + $0x298] sm:$0xff] }
 0x9bc   :  { %6439 = vmatpush1.bf16.msra.mxu0 %v6394_v14  ;;  %v6279_v14 = vld [vmem:[#allocation3 + $0x148] sm:$0xff] }
 0x9bd   :  { %6312 = vmatpush1.bf16.msra.mxu1 %v6264_v7  ;;  %6440 = vmatprep.subr.bf16.mxu0 %v6397_v37  ;;  %v6406_v7 = vld [vmem:[#allocation3 + $0x290] sm:$0xff]  ;;  %v6278_v37 = vld [vmem:[#allocation3 + $0x140] sm:$0xff] }
 0x9be   :  { %6313 = vmatprep.subr.bf16.mxu1 %v6267_v24  ;;  %v6409_v24 = vld [vmem:[#allocation3 + $0x2a8] sm:$0xff] }
 0x9c0   :  { %6441 = vmatpush1.bf16.msra.mxu0 %v6396_v58  ;;  %v6281_v58 = vld [vmem:[#allocation3 + $0x158] sm:$0xff] }
 0x9c1   :  { %6314 = vmatpush1.bf16.msra.mxu1 %v6266_v61  ;;  %6442 = vmatprep.subr.bf16.mxu0 %v6399_v16  ;;  %v6408_v61 = vld [vmem:[#allocation3 + $0x2a0] sm:$0xff]  ;;  %v6280_v16 = vld [vmem:[#allocation3 + $0x150] sm:$0xff] }
 0x9c2   :  { %6315 = vmatprep.subr.bf16.mxu1 %v6269_v51  ;;  %v6411_v51 = vld [vmem:[#allocation3 + $0x2b8] sm:$0xff] }
 0x9c4   :  { %6443 = vmatpush1.bf16.msra.mxu0 %v6398_v56 }
 0x9c5   :  { %6316 = vmatpush1.bf16.msra.mxu1 %v6268_v35  ;;  %6453 = vmatprep.subr.bf16.mxu0 %v6401_v25  ;;  %v6410_v35 = vld [vmem:[#allocation3 + $0x2b0] sm:$0xff] }
 0x9c6   :  { %6326 = vmatprep.subr.bf16.mxu1 %v6271_v52 }
 0xa52   :  { %v6140_v47 = vpop.f32.mrb[44].mxu0 }
 0xa53   :  { %v6099_v10 = vpop.f32.mrb[44].mxu1  ;;  %v7903_v1 = vpop.f32.mrb[45].mxu0 }
 0xa54   :  { %v6101_v23 = vpop.f32.mrb[45].mxu1  ;;  %v6143_v21 = vpop.f32.mrb[46].mxu0 }
 0xa55   :  { %v6103_v46 = vpop.f32.mrb[46].mxu1  ;;  %v7904_v11 = vpop.f32.mrb[47].mxu0 }
 0xa56   :  { %v6104_v22 = vpop.f32.mrb[47].mxu1 }
 0xa5a   :  { %v6226_v13 = vpop.f32.mrb[48].mxu0 }
 0xa5b   :  { %v6185_v8 = vpop.f32.mrb[48].mxu1  ;;  %v6234_v15 = vmax.f32 %v6140_v47, %v6226_v13  ;;  %v7909_v5 = vpop.f32.mrb[49].mxu0 }
 0xa5c   :  { %v6232_v20 = vmax.f32 %v6099_v10, %v6185_v8  ;;  %v6187_v2 = vpop.f32.mrb[49].mxu1  ;;  %v6229_v57 = vpop.f32.mrb[50].mxu0 }
 0xa5d   :  { %v6233_v4 = vmax.f32 %v6101_v23, %v6187_v2  ;;  %v6189_v9 = vpop.f32.mrb[50].mxu1  ;;  %v7910_v12 = vpop.f32.mrb[51].mxu0  ;;  %v6237_v56 = vpack.c.bf16 %v6234_v15, %v6234_v15 }
 0xa5e   :  { %v6190_v6 = vpop.f32.mrb[51].mxu1  ;;  %v6235_v59 = vpack.c.bf16 %v6232_v20, %v6232_v20 }
 0xa5f   :  { %v6236_v62 = vpack.c.bf16 %v6233_v4, %v6233_v4 }
 0xa61   :  { %6317 = vmatprep.mubr.bf16.mxu1 %v6236_v62  ;;  %6444 = vmatprep.mubr.bf16.mxu0 %v6236_v62 }
 0xa62   :  { %6318 = vmatmul.mubr.bf16.vlgmr.msra.gmra.mrb[52].mxu1 %v6235_v59  ;;  %6445 = vmatmul.mubr.bf16.vlgmr.msra.gmra.mrb[52].mxu0 %v6235_v59 }
 0xa63   :  { %6327 = vmatpush1.bf16.msra.mxu1 %v6270_v48  ;;  %6454 = vmatpush1.bf16.msra.mxu0 %v6400_v26 }
 0xa64   :  { %6328 = vmatprep.subr.bf16.mxu1 %v6273_v17  ;;  %6455 = vmatprep.subr.bf16.mxu0 %v6403_v18 }
 0xa65   :  { %6358 = vmatprep.mubr.bf16.mxu1 %v11375_v49  ;;  %6485 = vmatprep.mubr.bf16.mxu0 %v11375_v49 }
 0xa67   :  { %6329 = vmatpush1.bf16.msra.mxu1 %v6272_v60  ;;  %6456 = vmatpush1.bf16.msra.mxu0 %v6402_v55 }
 0xa68   :  { %6330 = vmatprep.subr.bf16.mxu1 %v6275_v54  ;;  %6457 = vmatprep.subr.bf16.mxu0 %v6405_v19 }
 0xa6b   :  { %6331 = vmatpush1.bf16.msra.mxu1 %v6274_v3  ;;  %6458 = vmatpush1.bf16.msra.mxu0 %v6404_v63 }
 0xa6c   :  { %6332 = vmatprep.subr.bf16.mxu1 %v6277_v0  ;;  %6459 = vmatprep.subr.bf16.mxu0 %v6407_v53 }
 0xa6f   :  { %6333 = vmatpush1.bf16.msra.mxu1 %v6276_v50  ;;  %6460 = vmatpush1.bf16.msra.mxu0 %v6406_v7 }
 0xa70   :  { %6334 = vmatprep.subr.bf16.mxu1 %v6279_v14  ;;  %6461 = vmatprep.subr.bf16.mxu0 %v6409_v24 }
 0xa73   :  { %6335 = vmatpush1.bf16.msra.mxu1 %v6278_v37  ;;  %6462 = vmatpush1.bf16.msra.mxu0 %v6408_v61 }
 0xa74   :  { %6336 = vmatprep.subr.bf16.mxu1 %v6281_v58  ;;  %6463 = vmatprep.subr.bf16.mxu0 %v6411_v51 }
 0xa77   :  { %6337 = vmatpush1.bf16.msra.mxu1 %v6280_v16  ;;  %6464 = vmatpush1.bf16.msra.mxu0 %v6410_v35 }
 0xa78   :  { %6534 = vmatprep.subr.bf16.mxu1 %v11375_v49  ;;  %6577 = vmatprep.subr.bf16.mxu0 %v11375_v49 }
 0xa7a   :  { %7534 = vmatmul.mubr.msk.bf16.vlgmr.msra.gmra.mrb[52].mxu1 %vm5594_vm12, %v6237_v56  ;;  %7535 = vmatmul.mubr.msk.bf16.vlgmr.msra.gmra.mrb[52].mxu0 %vm5594_vm12, %v6237_v56 }
 0xb4d   :  { %v6360_v52 = vpop.f32.mrb[52].mxu1  ;;  %v6487_v25 = vpop.f32.mrb[52].mxu0 }
 0xb4e   :  { %v6494_v10 = vmax.f32 %v6360_v52, %v6487_v25  ;;  %v6362_v47 = vpop.f32.mrb[53].mxu1  ;;  %v6489_v23 = vpop.f32.mrb[53].mxu0 }
 0xb4f   :  { %v6495_v1 = vmax.f32 %v6362_v47, %v6489_v23  ;;  %v6364_v46 = vpop.f32.mrb[54].mxu1  ;;  %v6491_v21 = vpop.f32.mrb[54].mxu0 }
 0xb50   :  { %v6365_v22 = vpop.f32.mrb[55].mxu1  ;;  %v6492_v11 = vpop.f32.mrb[55].mxu0 }
 0xb51   :  { %v6502_v8 = vpack.c.bf16 %v6495_v1, %v6495_v1 }
 0xb52   :  { %8659 = dma.done.wait [#allocation5 + $0x2], 5632 }
 0xb53   :  { %8660 = vsyncadd [#allocation5 + $0x2], 4294961664  ;;  %6535 = vmatpush1.bf16.msra.mxu1 %v9686_v38  ;;  %6578 = vmatpush1.bf16.msra.mxu0 %v9631_v27  ;;  %v6529_v13 = vrot.slane %v6502_v8, 1  ;;  %v11380_v27 = vld [vmem:[#allocation18_spill] sm:$0xff]  ;;  %v6630_v38 = vrot.slane %v6502_v8, 2  ;;  %v11392_v20 = vld [vmem:[#allocation24_spill] sm:$0xff] }
 0xb54   :  { %6536 = vmatprep.subr.bf16.mxu1 %v11375_v49  ;;  %6579 = vmatprep.subr.bf16.mxu0 %v11375_v49  ;;  %v11393_v2 = vld [vmem:[#allocation35_spill] sm:$0xff]  ;;  %v11394_v15 = vld [vmem:[#allocation25_spill] sm:$0xff]  ;;  %v11395_v5 = vld [vmem:[#allocation36_spill] sm:$0xff]  ;;  %vm6812_vm14 = vcmask 982016   ;;  %vm6912_vm15 = vcmask 687104  }
 0xb55   :  { %7537 = vmatprep.mubr.msk.bf16.mxu0 %vm3070_vm6, %v6502_v8  ;;  %7536 = vmatprep.mubr.msk.bf16.mxu1 %vm3070_vm6, %v6529_v13  ;;  %v11396_v4 = vld [vmem:[#allocation26_spill] sm:$0xff]  ;;  %v11397_v9 = vld [vmem:[#allocation37_spill] sm:$0xff]  ;;  %v11398_v57 = vld [vmem:[#allocation27_spill] sm:$0xff] }
 0xb56   :  { %v11399_v6 = vld [vmem:[#allocation38_spill] sm:$0xff]  ;;  %v11400_v12 = vld [vmem:[#allocation28_spill] sm:$0xff]  ;;  %v11401_v62 = vld [vmem:[#allocation39_spill] sm:$0xff] }
 0xb57   :  { %6537 = vmatpush1.bf16.msra.mxu1 %v9691_v39  ;;  %6580 = vmatpush1.bf16.msra.mxu0 %v9636_v28  ;;  %v11381_v28 = vld [vmem:[#allocation15_spill] sm:$0xff]  ;;  %v6689_v39 = vrot.slane %v6502_v8, 3  ;;  %v11402_v59 = vld [vmem:[#allocation29_spill] sm:$0xff]  ;;  %v11403_v48 = vld [vmem:[#allocation40_spill] sm:$0xff] }
 0xb58   :  { %6538 = vmatprep.subr.bf16.mxu1 %v11375_v49  ;;  %6581 = vmatprep.subr.bf16.mxu0 %v11375_v49  ;;  %v11404_v26 = vld [vmem:[#allocation30_spill] sm:$0xff]  ;;  %v11405_v17 = vld [vmem:[#allocation41_spill] sm:$0xff]  ;;  %v11406_v55 = vld [vmem:[#allocation31_spill] sm:$0xff] }
 0xb59   :  { %v11407_v54 = vld [vmem:[#allocation42_spill] sm:$0xff]  ;;  %v8622_v63 = vld [vmem:[%s11320_s17 + $0x18] sm:$0xff]   ;;  %v8623_v0 = vld [vmem:[%s11320_s17 + $0x20] sm:$0xff]  }
 0xb5a   :  { %v8620_v19 = vld [vmem:[%s11320_s17 + $0x8] sm:$0xff]   ;;  %v8621_v3 = vld [vmem:[%s11320_s17 + $0x10] sm:$0xff]   ;;  %v8626_v7 = vld [vmem:[%s11320_s17 + $0x38] ss:$0 sps:$4 sm:$0xff]  }
 0xb5b   :  { %6539 = vmatpush1.bf16.msra.mxu1 %v9696_v40  ;;  %6582 = vmatpush1.bf16.msra.mxu0 %v9641_v29  ;;  %v11162_v29 = vpack.c.bf16 %v6494_v10, %v6494_v10  ;;  %v11386_v40 = vld [vmem:[#allocation21_spill] sm:$0xff]  ;;  %v8625_v50 = vld [vmem:[%s11320_s17 + $0x30] sm:$0xff]   ;;  %v6817_v14 = vsel %vm1409_vm1, %v8626_v7, 0  ;;  %v8630_v58 = vld [vmem:[%s11322_s19 + $0x18] sm:$0xff]  }
 0xb5c   :  { %6540 = vmatprep.subr.bf16.mxu1 %v11375_v49  ;;  %6583 = vmatprep.subr.bf16.mxu0 %v11375_v49  ;;  %v8624_v53 = vld [vmem:[%s11320_s17 + $0x28] sm:$0xff]   ;;  %v8627_v24 = vld [vmem:[%s11322_s19] sm:$0xff]   ;;  %v8629_v61 = vld [vmem:[%s11322_s19 + $0x10] sm:$0xff]  }
 0xb5d   :  { %v6629_v18 = vrot.slane %v11162_v29, 2  ;;  %v6688_v60 = vrot.slane %v11162_v29, 3  ;;  %v8628_v37 = vld [vmem:[%s11322_s19 + $0x8] sm:$0xff]   ;;  %v7540_v8 = vld [vmem:[%s11319_s16] ss:$0 sm:$0xff] }
 0xb5f   :  { %6541 = vmatpush1.bf16.msra.mxu1 %v9701_v41  ;;  %6584 = vmatpush1.bf16.msra.mxu0 %v9646_v30  ;;  %v11382_v30 = vld [vmem:[#allocation19_spill] sm:$0xff]  ;;  %v11387_v41 = vld [vmem:[#allocation32_spill] sm:$0xff] }
 0xb60   :  { %6542 = vmatprep.subr.bf16.mxu1 %v11375_v49  ;;  %6585 = vmatprep.subr.bf16.mxu0 %v11375_v49 }
 0xb63   :  { %6543 = vmatpush1.bf16.msra.mxu1 %v9706_v42  ;;  %6586 = vmatpush1.bf16.msra.mxu0 %v9651_v31  ;;  %v11383_v31 = vld [vmem:[#allocation16_spill] sm:$0xff]  ;;  %v11388_v42 = vld [vmem:[#allocation22_spill] sm:$0xff] }
 0xb64   :  { %6544 = vmatprep.subr.bf16.mxu1 %v11375_v49  ;;  %6587 = vmatprep.subr.bf16.mxu0 %v11375_v49 }
 0xb67   :  { %6545 = vmatpush1.bf16.msra.mxu1 %v9711_v43  ;;  %6588 = vmatpush1.bf16.msra.mxu0 %v9656_v32  ;;  %v6528_v32 = vrot.slane %v11162_v29, 1  ;;  %v11389_v43 = vld [vmem:[#allocation33_spill] sm:$0xff] }
 0xb68   :  { %6546 = vmatprep.subr.bf16.mxu1 %v11375_v49  ;;  %6589 = vmatprep.subr.bf16.mxu0 %v11375_v49 }
 0xb6b   :  { %6547 = vmatpush1.bf16.msra.mxu1 %v9716_v44  ;;  %6590 = vmatpush1.bf16.msra.mxu0 %v9661_v33  ;;  %v11384_v33 = vld [vmem:[#allocation20_spill] sm:$0xff]  ;;  %v11390_v44 = vld [vmem:[#allocation23_spill] sm:$0xff] }
 0xb6c   :  { %6548 = vmatprep.subr.bf16.mxu1 %v11375_v49  ;;  %6591 = vmatprep.subr.bf16.mxu0 %v11375_v49 }
 0xb6f   :  { %6549 = vmatpush1.bf16.msra.mxu1 %v9721_v45  ;;  %6592 = vmatpush1.bf16.msra.mxu0 %v9666_v34  ;;  %v11385_v34 = vld [vmem:[#allocation17_spill] sm:$0xff]  ;;  %v11391_v45 = vld [vmem:[#allocation34_spill] sm:$0xff] }
 0xb70   :  { %6550 = vmatprep.subr.bf16.mxu1 %v11375_v49  ;;  %6593 = vmatprep.subr.bf16.mxu0 %v11375_v49 }
 0xb73   :  { %6551 = vmatpush1.bf16.msra.mxu1 %v11380_v27  ;;  %6594 = vmatpush1.bf16.msra.mxu0 %v11381_v28 }
 0xb74   :  { %6552 = vmatprep.subr.bf16.mxu1 %v11375_v49  ;;  %6595 = vmatprep.subr.bf16.mxu0 %v11375_v49 }
 0xb77   :  { %6553 = vmatpush1.bf16.msra.mxu1 %v11382_v30  ;;  %6596 = vmatpush1.bf16.msra.mxu0 %v11383_v31 }
 0xb78   :  { %6554 = vmatprep.subr.bf16.mxu1 %v11375_v49  ;;  %6597 = vmatprep.subr.bf16.mxu0 %v11375_v49 }
 0xb7b   :  { %6555 = vmatpush1.bf16.msra.mxu1 %v11384_v33  ;;  %6598 = vmatpush1.bf16.msra.mxu0 %v11385_v34  ;;  %v8631_v34 = vld [vmem:[%s11322_s19 + $0x20] sm:$0xff]  }
 0xb7c   :  { %6635 = vmatprep.subr.bf16.mxu1 %v11375_v49  ;;  %6694 = vmatprep.subr.bf16.mxu0 %v11375_v49 }
 0xb7e   :  { %6567 = vmatmul.mubr.bf16.vlgmr.msra.gmra.mrb[56].mxu1 %v6528_v32  ;;  %6610 = vmatmul.mubr.bf16.vlgmr.msra.gmra.mrb[56].mxu0 %v11162_v29 }
 0xb7f   :  { %6636 = vmatpush1.bf16.msra.mxu1 %v11386_v40  ;;  %6695 = vmatpush1.bf16.msra.mxu0 %v11387_v41  ;;  %v7541_v40 = vld [vmem:[%s11321_s18] ss:$0 sm:$0xff] }
 0xb80   :  { %6637 = vmatprep.subr.bf16.mxu1 %v11375_v49  ;;  %6696 = vmatprep.subr.bf16.mxu0 %v11375_v49 }
 0xb81   :  { %7538 = vmatprep.mubr.msk.bf16.mxu1 %vm3070_vm6, %v6630_v38  ;;  %7539 = vmatprep.mubr.msk.bf16.mxu0 %vm3070_vm6, %v6689_v39  ;;  %v8632_v38 = vld [vmem:[%s11322_s19 + $0x28] ss:$0 sps:$4 sm:$0x33]   ;;  %s8668_s19 = smov [#allocation6]  }
 0xb82   :  { %v6917_v39 = vsel %vm4642_vm10, %v8632_v38, 0  ;;  %s6967_s5 = sshll.u32 %s8668_s19, 4  ;;  %s6968_s5 = int_to_ptr.vmem [resolvable:$true] %s6967_s5 }
 0xb83   :  { %6638 = vmatpush1.bf16.msra.mxu1 %v11388_v42  ;;  %6697 = vmatpush1.bf16.msra.mxu0 %v11389_v43  ;;  %s8633_s18 = scalar_lea.vmem %s6968_s5, 32  ;;  %p8638_p1 = scmp.lt.s32.totalorder %s6968_s5, %s6968_s5 }
 0xb84   :  { %6639 = vmatprep.subr.bf16.mxu1 %v11375_v49  ;;  %6698 = vmatprep.subr.bf16.mxu0 %v11375_v49  ;;  %p8634_p0 = scmp.ne.s32.totalorder %s6968_s5, %s8633_s18  ;;  %p8639_p2 = scmp.lt.s32.totalorder %s8633_s18, %s8633_s18 }
 0xb86   :  { %p8640_p3 = por %p8639_p2, %p8638_p1 }
 0xb87   :  { %6640 = vmatpush1.bf16.msra.mxu1 %v11390_v44  ;;  %6699 = vmatpush1.bf16.msra.mxu0 %v11391_v45 }
 0xb88   :  { %6641 = vmatprep.subr.bf16.mxu1 %v11375_v49  ;;  %6700 = vmatprep.subr.bf16.mxu0 %v11375_v49  ;;  %p8641_p4 = pnand %p8640_p3, %p8634_p0 }
 0xb8b   :  { %6642 = vmatpush1.bf16.msra.mxu1 %v11392_v20  ;;  %6701 = vmatpush1.bf16.msra.mxu0 %v11393_v2 }
 0xb8c   :  { %6643 = vmatprep.subr.bf16.mxu1 %v11375_v49  ;;  %6702 = vmatprep.subr.bf16.mxu0 %v11375_v49 }
 0xb8f   :  { %6644 = vmatpush1.bf16.msra.mxu1 %v11394_v15  ;;  %6703 = vmatpush1.bf16.msra.mxu0 %v11395_v5 }
 0xb90   :  { %6645 = vmatprep.subr.bf16.mxu1 %v11375_v49  ;;  %6704 = vmatprep.subr.bf16.mxu0 %v11375_v49 }
 0xb93   :  { %6646 = vmatpush1.bf16.msra.mxu1 %v11396_v4  ;;  %6705 = vmatpush1.bf16.msra.mxu0 %v11397_v9 }
 0xb94   :  { %6647 = vmatprep.subr.bf16.mxu1 %v11375_v49  ;;  %6706 = vmatprep.subr.bf16.mxu0 %v11375_v49 }
 0xb97   :  { %6648 = vmatpush1.bf16.msra.mxu1 %v11398_v57  ;;  %6707 = vmatpush1.bf16.msra.mxu0 %v11399_v6 }
 0xb98   :  { %6649 = vmatprep.subr.bf16.mxu1 %v11375_v49  ;;  %6708 = vmatprep.subr.bf16.mxu0 %v11375_v49 }
 0xb9b   :  { %6650 = vmatpush1.bf16.msra.mxu1 %v11400_v12  ;;  %6709 = vmatpush1.bf16.msra.mxu0 %v11401_v62 }
 0xb9c   :  { %6651 = vmatprep.subr.bf16.mxu1 %v11375_v49  ;;  %6710 = vmatprep.subr.bf16.mxu0 %v11375_v49 }
 0xb9f   :  { %6652 = vmatpush1.bf16.msra.mxu1 %v11402_v59  ;;  %6711 = vmatpush1.bf16.msra.mxu0 %v11403_v48 }
 0xba0   :  { %6653 = vmatprep.subr.bf16.mxu1 %v11375_v49  ;;  %6712 = vmatprep.subr.bf16.mxu0 %v11375_v49 }
 0xba3   :  { %6654 = vmatpush1.bf16.msra.mxu1 %v11404_v26  ;;  %6713 = vmatpush1.bf16.msra.mxu0 %v11405_v17 }
 0xba4   :  { %6655 = vmatprep.subr.bf16.mxu1 %v11375_v49  ;;  %6714 = vmatprep.subr.bf16.mxu0 %v11375_v49  ;;  %v8619_v49 = vld [vmem:[%s11320_s17] sm:$0xff]  }
 0xba7   :  { %6656 = vmatpush1.bf16.msra.mxu1 %v11406_v55  ;;  %6715 = vmatpush1.bf16.msra.mxu0 %v11407_v54 }
 0xba8   :  { %7911 = vmatprep.subr.bf16.mxu1 %v11374_v36  ;;  %7931 = vmatprep.subr.bf16.mxu0 %v11374_v36 }
 0xbaa   :  { %6668 = vmatmul.mubr.bf16.vlgmr.msra.gmra.mrb[60].mxu1 %v6629_v18  ;;  %6727 = vmatmul.mubr.bf16.vlgmr.msra.gmra.mrb[60].mxu0 %v6688_v60 }
 0xbab   :  { %7927 = vmatprep.mubr.msk.bf16.mxu1 %vm8664_vm0, %v11374_v36  ;;  %7943 = vmatprep.mubr.msk.bf16.mxu0 %vm8664_vm0, %v11374_v36  ;;  %vm6959_vm0 = vcmask 74752  }
 0xbac   :  { %7912 = vmatpush3.bf16.msra.mxu1 %v8619_v49  ;;  %7932 = vmatpush3.bf16.msra.mxu0 %v8627_v24 }
 0xbad   :  { %7913 = vmatprep.subr.bf16.mxu1 %v11374_v36  ;;  %7933 = vmatprep.subr.bf16.mxu0 %v11374_v36 }
 0xbb0   :  { %7914 = vmatpush3.bf16.msra.mxu1 %v8620_v19  ;;  %7934 = vmatpush3.bf16.msra.mxu0 %v8628_v37 }
 0xbb1   :  { %7915 = vmatprep.subr.bf16.mxu1 %v11374_v36  ;;  %7935 = vmatprep.subr.bf16.mxu0 %v11374_v36 }
 0xbb4   :  { %7916 = vmatpush3.bf16.msra.mxu1 %v8621_v3  ;;  %7936 = vmatpush3.bf16.msra.mxu0 %v8629_v61 }
 0xbb5   :  { %7917 = vmatprep.subr.bf16.mxu1 %v11374_v36  ;;  %7937 = vmatprep.subr.bf16.mxu0 %v11374_v36 }
 0xbb8   :  { %7918 = vmatpush3.bf16.msra.mxu1 %v8622_v63  ;;  %7938 = vmatpush3.bf16.msra.mxu0 %v8630_v58 }
 0xbb9   :  { %7919 = vmatprep.subr.bf16.mxu1 %v11374_v36  ;;  %7939 = vmatprep.subr.bf16.mxu0 %v11374_v36 }
 0xbbc   :  { %7920 = vmatpush3.bf16.msra.mxu1 %v8623_v0  ;;  %7940 = vmatpush3.bf16.msra.mxu0 %v8631_v34 }
 0xbbd   :  { %7921 = vmatprep.subr.bf16.mxu1 %v11374_v36  ;;  %7941 = vmatprep.subr.bf16.mxu0 %v11374_v36 }
 0xbc0   :  { %7922 = vmatpush3.bf16.msra.mxu1 %v8624_v53  ;;  %7942 = vmatpush3.bf16.msra.mxu0 %v6917_v39 }
 0xbc1   :  { %7923 = vmatprep.subr.bf16.mxu1 %v11374_v36 }
 0xbc4   :  { %7924 = vmatpush3.bf16.msra.mxu1 %v8625_v50 }
 0xbc5   :  { %7925 = vmatprep.subr.bf16.mxu1 %v11374_v36  ;;  %v7551_v36 = vld [vmem:[%s11323_s20] ss:$0 sm:$0xff] }
 0xbc8   :  { %7926 = vmatpush3.bf16.msra.mxu1 %v6817_v14 }
 0xc51   :  { %v6568_v51 = vpop.f32.mrb[56].mxu1  ;;  %v6611_v16 = vpop.f32.mrb[56].mxu0 }
 0xc52   :  { %v6612_v35 = vadd.f32 %v6611_v16, %v6568_v51  ;;  %v6570_v56 = vpop.f32.mrb[57].mxu1  ;;  %v6613_v52 = vpop.f32.mrb[57].mxu0 }
 0xc53   :  { %v6571_v25 = vpop.f32.mrb[58].mxu1  ;;  %v6614_v10 = vpop.f32.mrb[58].mxu0 }
 0xc54   :  { %v6572_v47 = vpop.f32.mrb[59].mxu1  ;;  %v6615_v23 = vpop.f32.mrb[59].mxu0 }
 0xc7d   :  { %v6669_v1 = vpop.f32.mrb[60].mxu1  ;;  %v6728_v46 = vpop.f32.mrb[60].mxu0 }
 0xc7e   :  { %v6675_v21 = vadd.f32 %v6669_v1, %v6612_v35  ;;  %v6671_v22 = vpop.f32.mrb[61].mxu1  ;;  %v6730_v11 = vpop.f32.mrb[61].mxu0 }
 0xc7f   :  { %v6672_v13 = vpop.f32.mrb[62].mxu1  ;;  %v6731_v27 = vpop.f32.mrb[62].mxu0 }
 0xc80   :  { %v6734_v28 = vadd.f32 %v6728_v46, %v6675_v21  ;;  %v6673_v29 = vpop.f32.mrb[63].mxu1  ;;  %v6732_v30 = vpop.f32.mrb[63].mxu0 }
 0xc82   :  { %v6742_v31 = vadd.f32 %v7540_v8, %v6734_v28 }
 0xc84   :  { %v6743_v32 = vmax.f32 %v6742_v31, 0.0 }
 0xc86   :  { %v6744_v33 = vpack.c.bf16 %v6743_v32, %v6743_v32 }
 0xc88   :  { %7928 = vmatmul.mubr.msk.bf16.vlgmr.msra.gmra.mrb[64].mxu1 %vm6812_vm14, %v6744_v33 }
 0xd5b   :  { %v6853_v41 = vpop.f32.mrb[64].mxu1 }
 0xd5c   :  { %v6854_v42 = vadd.f32 %v7541_v40, %v6853_v41  ;;  %v7929_v43 = vpop.f32.mrb[65].mxu1 }
 0xd5d   :  { %v6856_v44 = vpop.f32.mrb[66].mxu1 }
 0xd5e   :  { %v6859_v45 = vmax.f32 %v6854_v42, 0.0  ;;  %v7930_v20 = vpop.f32.mrb[67].mxu1 }
 0xd60   :  { %v6860_v2 = vpack.c.bf16 %v6859_v45, %v6859_v45 }
 0xd62   :  { %7944 = vmatmul.mubr.msk.bf16.vlgmr.msra.gmra.mrb[64].mxu0 %vm6912_vm15, %v6860_v2 }
 0xe35   :  { %v6953_v15 = vpop.f32.mrb[64].mxu0 }
 0xe36   :  { %v6954_v5 = vadd.f32 %v7551_v36, %v6953_v15  ;;  %v7945_v4 = vpop.f32.mrb[65].mxu0 }
 0xe37   :  { %v6956_v9 = vpop.f32.mrb[66].mxu0 }
 0xe38   :  { %v7946_v57 = vpop.f32.mrb[67].mxu0  ;;  %6960 = vst.msk [vmem:[#allocation6] sm:$0x3] %vm6959_vm0, %v6954_v5 }
 0xe39   :  { %8644 = shalt.err (!%p8641_p4)
}
 0xe3a   :  { %s8645_s20 = scalar_lea.hbm %s11324_s21, 32 }
 0xe3b   :  { %p8646_p5 = scmp.ne.s32.totalorder %s11324_s21, %s8645_s20  ;;  %p8649_p6 = scmp.lt.u32.totalorder %s8645_s20, %s11324_s21 }
 0xe3d   :  { %p8651_p7 = pnand %p8649_p6, %p8646_p5 }
 0xe3f   :  { %8654 = shalt.err (!%p8651_p7)
}
 0xe40   :  { %6970 = dma.vmem_to_hbm [thread:$0]  %s6968_s5, 32, %s11324_s21, [#allocation7]  }
 0xe41   :  { %8661 = dma.done.wait [#allocation7], 32  }
 0xe42   :  { %8662 = vsyncadd [#allocation7], 4294967264 }
 0xe43   :  { %6974 = vsyncpa [#allocation7], 1 }
 0xe44   :  { %6975 = vsyncmov [#allocation5] }
 0xe47   :  { %s6976_s26 = vpop.sfrf %6975 }
 0xe48   :  { %p7559_p8 = scmp.ne.s32.totalorder %s6976_s26, 0 }
 0xe4a   :  { %6980 = shalt.err (%p7559_p8)  }
 0xe4b   :  { %6982 = vsyncmov [#allocation5 + $0x1] }
 0xe4e   :  { %s6983_s27 = vpop.sfrf %6982 }
 0xe4f   :  { %p7560_p9 = scmp.ne.s32.totalorder %s6983_s27, 0 }
 0xe51   :  { %6987 = shalt.err (%p7560_p9)  }
 0xe52   :  { %6989 = vsyncmov [#allocation5 + $0x2] }
 0xe55   :  { %s6990_s4 = vpop.sfrf %6989 }
 0xe56   :  { %p7561_p10 = scmp.ne.s32.totalorder %s6990_s4, 0 }
 0xe58   :  { %6994 = shalt.err (%p7561_p10)  }

</bundles_post_ra>
